<compile_context>
chip_gen: v5e
topology: v5e:2x2
jax: 0.10.0
libtpu: 0.0.40
codegen_flags: <defaults>
</compile_context>

<pallas_src>
import functools
import math

import jax
import jax.numpy as jnp
from jax import lax
from jax.experimental import pallas as pl
from jax.experimental.pallas import tpu as pltpu

LN_EPS = 1e-5          # torch.nn.LayerNorm default
_NEG_INF = -1e30       # finite mask value (avoids inf-inf NaNs in online softmax)


# ----------------------------------------------------------------------------
# Small helpers
# ----------------------------------------------------------------------------

def _round_up(n, m):
    return ((n + m - 1) // m) * m


def _row_tile(n):
    """Largest sublane-friendly row tile (<=256) that divides n.

    n is always a multiple of 8 here (sequence dims are padded to 8), so this
    never falls back to "whole array as one block".  Capped at 256 so the
    double-buffered FFN weights + hidden activations fit v7x's 64 MiB VMEM.
    """
    for t in (256, 128, 64, 32, 16, 8):
        if n % t == 0:
            return t
    return 8


def _seq_pad_and_tile(s, max_tile=256):
    """Pad a sequence length so a tile of at most `max_tile` divides it."""
    if s <= max_tile:
        sp = _round_up(s, 8)
        return sp, sp
    sp = _round_up(s, max_tile)
    return sp, max_tile


@functools.lru_cache(maxsize=1)
def _vmem_limit_bytes():
    """Per-generation VMEM budget: 3/4 of physical (v5e/v6e ~96MiB, v7x ~48MiB)."""
    try:
        cap = int(pltpu.get_tpu_info().vmem_capacity_bytes)
    except Exception:
        cap = 64 * 1024 * 1024
    return int(cap * 3 // 4)


def _compiler_params(dimension_semantics):
    return pltpu.CompilerParams(
        dimension_semantics=dimension_semantics,
        vmem_limit_bytes=_vmem_limit_bytes())


def _layer_norm_f32(x, g, b, eps):
    x = x.astype(jnp.float32)
    mean = jnp.mean(x, axis=-1, keepdims=True)
    var = jnp.mean(jnp.square(x - mean), axis=-1, keepdims=True)
    return (x - mean) * lax.rsqrt(var + eps) * g + b


# ----------------------------------------------------------------------------
# Projection / FFN / LayerNorm kernels (row-tiled over B*S rows)
# ----------------------------------------------------------------------------

def _ln_qkv_kernel(x_ref, g_ref, b_ref, w_ref, wb_ref, q_ref, k_ref, v_ref,
                   *, d_model, eps):
    """y = LN(x) @ Wqkv + b; split into q, k, v (bf16, single cast)."""
    xn = _layer_norm_f32(x_ref[...], g_ref[...], b_ref[...], eps)
    y = jnp.dot(xn.astype(jnp.bfloat16), w_ref[...],
                preferred_element_type=jnp.float32) + wb_ref[...]
    y = y.astype(jnp.bfloat16)
    q_ref[...] = y[:, 0 * d_model:1 * d_model]
    k_ref[...] = y[:, 1 * d_model:2 * d_model]
    v_ref[...] = y[:, 2 * d_model:3 * d_model]


def _ln_linear_kernel(x_ref, g_ref, b_ref, w_ref, wb_ref, o_ref, *, eps):
    """y = LN(x) @ W + b  (bf16 output)."""
    xn = _layer_norm_f32(x_ref[...], g_ref[...], b_ref[...], eps)
    y = jnp.dot(xn.astype(jnp.bfloat16), w_ref[...],
                preferred_element_type=jnp.float32) + wb_ref[...]
    o_ref[...] = y.astype(o_ref.dtype)


def _kv_linear_kernel(x_ref, w_ref, wb_ref, k_ref, v_ref, *, d_model):
    """y = x @ Wkv + b; split into k, v (bf16, single cast)."""
    y = jnp.dot(x_ref[...].astype(jnp.bfloat16), w_ref[...],
                preferred_element_type=jnp.float32) + wb_ref[...]
    y = y.astype(jnp.bfloat16)
    k_ref[...] = y[:, 0 * d_model:1 * d_model]
    v_ref[...] = y[:, 1 * d_model:2 * d_model]


def _ffn_kernel(x_ref, g_ref, b_ref, w1_ref, b1_ref, w2_ref, b2_ref, o_ref,
                *, eps):
    """LN -> Linear -> ReLU -> Linear -> +residual (f32 add, bf16 out)."""
    x = x_ref[...]
    xn = _layer_norm_f32(x, g_ref[...], b_ref[...], eps)
    h = jnp.dot(xn.astype(jnp.bfloat16), w1_ref[...],
                preferred_element_type=jnp.float32) + b1_ref[...]
    h = jnp.maximum(h, 0.0)
    y = jnp.dot(h.astype(jnp.bfloat16), w2_ref[...],
                preferred_element_type=jnp.float32) + b2_ref[...]
    o_ref[...] = (x.astype(jnp.float32) + y).astype(o_ref.dtype)


def _layernorm_kernel(x_ref, g_ref, b_ref, o_ref, *, eps):
    o_ref[...] = _layer_norm_f32(x_ref[...], g_ref[...], b_ref[...],
                                 eps).astype(o_ref.dtype)


# ----------------------------------------------------------------------------
# Flash attention kernels (grid = (B, Sq/TQ, Sk/TK), online softmax)
# ----------------------------------------------------------------------------

def _online_softmax_step(h, q_h, k_h, v_h, mask, scale, m_ref, l_ref, acc_ref):
    """One (q-tile, k-tile) update of head h's running softmax state."""
    s = lax.dot_general(q_h, k_h, (((1,), (1,)), ((), ())),
                        preferred_element_type=jnp.float32) * scale   # (TQ, TK)
    s = jnp.where(mask, s, _NEG_INF)
    m_prev = m_ref[h]                                                 # (TQ, 1)
    m_new = jnp.maximum(m_prev, jnp.max(s, axis=-1, keepdims=True))
    alpha = jnp.exp(m_prev - m_new)
    p = jnp.exp(s - m_new)
    l_ref[h] = alpha * l_ref[h] + jnp.sum(p, axis=-1, keepdims=True)
    acc_ref[h] = alpha * acc_ref[h] + jnp.dot(
        p.astype(jnp.bfloat16), v_h, preferred_element_type=jnp.float32)
    m_ref[h] = m_new


def _attn_output(num_heads, dk, x_ref, wo_ref, bo_ref, o_ref, acc_ref, l_ref):
    """Normalize per-head context, apply Wo per head slice, add residual."""
    out = None
    for h in range(num_heads):
        ctx_h = (acc_ref[h] / l_ref[h]).astype(jnp.bfloat16)          # (TQ, dk)
        part = jnp.dot(ctx_h, wo_ref[h * dk:(h + 1) * dk, :],
                       preferred_element_type=jnp.float32)            # (TQ, D)
        out = part if out is None else out + part
    out = out + bo_ref[...]
    o_ref[0] = (x_ref[0].astype(jnp.float32) + out).astype(o_ref.dtype)


def _self_attn_kernel(x_ref, q_ref, k_ref, v_ref, wo_ref, bo_ref, o_ref,
                      acc_ref, m_ref, l_ref, *, num_heads):
    """Causal flash self-attention + output projection + residual."""
    qi = pl.program_id(1)
    ki = pl.program_id(2)
    nk = pl.num_programs(2)
    tq = q_ref.shape[1]
    tk = k_ref.shape[1]
    d = q_ref.shape[2]
    dk = d // num_heads
    scale = 1.0 / math.sqrt(dk)

    @pl.when(ki == 0)
    def _init():
        acc_ref[...] = jnp.zeros(acc_ref.shape, jnp.float32)
        m_ref[...] = jnp.full(m_ref.shape, _NEG_INF, jnp.float32)
        l_ref[...] = jnp.zeros(l_ref.shape, jnp.float32)

    q_start = qi * tq
    k_start = ki * tk

    @pl.when(q_start + (tq - 1) >= k_start)   # skip fully-future K tiles (causal)
    def _compute():
        row = q_start + lax.broadcasted_iota(jnp.int32, (tq, tk), 0)
        col = k_start + lax.broadcasted_iota(jnp.int32, (tq, tk), 1)
        mask = row >= col
        for h in range(num_heads):
            d0, d1 = h * dk, (h + 1) * dk
            _online_softmax_step(h, q_ref[0, :, d0:d1], k_ref[0, :, d0:d1],
                                 v_ref[0, :, d0:d1], mask, scale,
                                 m_ref, l_ref, acc_ref)

    @pl.when(ki == nk - 1)
    def _finalize():
        _attn_output(num_heads, dk, x_ref, wo_ref, bo_ref, o_ref, acc_ref, l_ref)


def _cross_attn_kernel(x_ref, q_ref, k_ref, v_ref, mask_ref, wo_ref, bo_ref,
                       o_ref, acc_ref, m_ref, l_ref, *, num_heads):
    """Flash cross-attention (source padding mask) + out projection + residual."""
    ki = pl.program_id(2)
    nk = pl.num_programs(2)
    d = q_ref.shape[2]
    dk = d // num_heads
    scale = 1.0 / math.sqrt(dk)

    @pl.when(ki == 0)
    def _init():
        acc_ref[...] = jnp.zeros(acc_ref.shape, jnp.float32)
        m_ref[...] = jnp.full(m_ref.shape, _NEG_INF, jnp.float32)
        l_ref[...] = jnp.zeros(l_ref.shape, jnp.float32)

    mask = mask_ref[0] != 0.0                       # (1, TK) broadcasts over TQ
    for h in range(num_heads):
        d0, d1 = h * dk, (h + 1) * dk
        _online_softmax_step(h, q_ref[0, :, d0:d1], k_ref[0, :, d0:d1],
                             v_ref[0, :, d0:d1], mask, scale,
                             m_ref, l_ref, acc_ref)

    @pl.when(ki == nk - 1)
    def _finalize():
        _attn_output(num_heads, dk, x_ref, wo_ref, bo_ref, o_ref, acc_ref, l_ref)


# ----------------------------------------------------------------------------
# pallas_call wrappers
# ----------------------------------------------------------------------------

def ln_qkv_proj(x2d, g, b, w, wb, d_model):
    n = x2d.shape[0]
    d3 = w.shape[1]
    tm = _row_tile(n)
    flops = 2 * n * d_model * d3 + 10 * n * d_model
    bytes_acc = n * d_model * 2 + d_model * d3 * 2 + d3 * 4 + 3 * n * d_model * 2
    sds = jax.ShapeDtypeStruct((n, d_model), jnp.bfloat16)
    return pl.pallas_call(
        functools.partial(_ln_qkv_kernel, d_model=d_model, eps=LN_EPS),
        out_shape=(sds, sds, sds),
        grid=(n // tm,),
        in_specs=[
            pl.BlockSpec((tm, d_model), lambda i: (i, 0)),
            pl.BlockSpec((1, d_model), lambda i: (0, 0)),
            pl.BlockSpec((1, d_model), lambda i: (0, 0)),
            pl.BlockSpec((d_model, d3), lambda i: (0, 0)),
            pl.BlockSpec((1, d3), lambda i: (0, 0)),
        ],
        out_specs=(pl.BlockSpec((tm, d_model), lambda i: (i, 0)),) * 3,
        compiler_params=_compiler_params(("parallel",)),
        cost_estimate=pl.CostEstimate(flops=int(flops), transcendentals=int(n),
                                      bytes_accessed=int(bytes_acc)),
    )(x2d, g, b, w, wb)


def ln_linear(x2d, g, b, w, wb):
    n, d_in = x2d.shape
    d_out = w.shape[1]
    tm = _row_tile(n)
    flops = 2 * n * d_in * d_out + 10 * n * d_in
    bytes_acc = n * d_in * 2 + d_in * d_out * 2 + d_out * 4 + n * d_out * 2
    return pl.pallas_call(
        functools.partial(_ln_linear_kernel, eps=LN_EPS),
        out_shape=jax.ShapeDtypeStruct((n, d_out), jnp.bfloat16),
        grid=(n // tm,),
        in_specs=[
            pl.BlockSpec((tm, d_in), lambda i: (i, 0)),
            pl.BlockSpec((1, d_in), lambda i: (0, 0)),
            pl.BlockSpec((1, d_in), lambda i: (0, 0)),
            pl.BlockSpec((d_in, d_out), lambda i: (0, 0)),
            pl.BlockSpec((1, d_out), lambda i: (0, 0)),
        ],
        out_specs=pl.BlockSpec((tm, d_out), lambda i: (i, 0)),
        compiler_params=_compiler_params(("parallel",)),
        cost_estimate=pl.CostEstimate(flops=int(flops), transcendentals=int(n),
                                      bytes_accessed=int(bytes_acc)),
    )(x2d, g, b, w, wb)


def kv_proj(x2d, w, wb, d_model):
    n = x2d.shape[0]
    d2 = w.shape[1]
    tm = _row_tile(n)
    flops = 2 * n * d_model * d2
    bytes_acc = n * d_model * 2 + d_model * d2 * 2 + d2 * 4 + 2 * n * d_model * 2
    sds = jax.ShapeDtypeStruct((n, d_model), jnp.bfloat16)
    return pl.pallas_call(
        functools.partial(_kv_linear_kernel, d_model=d_model),
        out_shape=(sds, sds),
        grid=(n // tm,),
        in_specs=[
            pl.BlockSpec((tm, d_model), lambda i: (i, 0)),
            pl.BlockSpec((d_model, d2), lambda i: (0, 0)),
            pl.BlockSpec((1, d2), lambda i: (0, 0)),
        ],
        out_specs=(pl.BlockSpec((tm, d_model), lambda i: (i, 0)),) * 2,
        compiler_params=_compiler_params(("parallel",)),
        cost_estimate=pl.CostEstimate(flops=int(flops), transcendentals=0,
                                      bytes_accessed=int(bytes_acc)),
    )(x2d, w, wb)


def self_attention(x, q, k, v, wo, bo, num_heads, tq, tk):
    b, s, d = x.shape
    dk = d // num_heads
    nq, nk = s // tq, s // tk
    flops = 2 * b * s * s * d + 2 * b * s * d * d          # causal ~half counted
    trans = b * num_heads * s * s // 2 + b * num_heads * s
    bytes_acc = 5 * b * s * d * 2 + d * d * 2 + d * 4
    return pl.pallas_call(
        functools.partial(_self_attn_kernel, num_heads=num_heads),
        out_shape=jax.ShapeDtypeStruct((b, s, d), jnp.bfloat16),
        grid=(b, nq, nk),
        in_specs=[
            pl.BlockSpec((1, tq, d), lambda bi, qi, ki: (bi, qi, 0)),   # residual
            pl.BlockSpec((1, tq, d), lambda bi, qi, ki: (bi, qi, 0)),   # q
            pl.BlockSpec((1, tk, d), lambda bi, qi, ki: (bi, ki, 0)),   # k
            pl.BlockSpec((1, tk, d), lambda bi, qi, ki: (bi, ki, 0)),   # v
            pl.BlockSpec((d, d), lambda bi, qi, ki: (0, 0)),            # wo
            pl.BlockSpec((1, d), lambda bi, qi, ki: (0, 0)),            # bo
        ],
        out_specs=pl.BlockSpec((1, tq, d), lambda bi, qi, ki: (bi, qi, 0)),
        scratch_shapes=[
            pltpu.VMEM((num_heads, tq, dk), jnp.float32),   # acc
            pltpu.VMEM((num_heads, tq, 1), jnp.float32),    # running max
            pltpu.VMEM((num_heads, tq, 1), jnp.float32),    # running sum
        ],
        compiler_params=_compiler_params(("parallel", "parallel", "arbitrary")),
        cost_estimate=pl.CostEstimate(flops=int(flops), transcendentals=int(trans),
                                      bytes_accessed=int(bytes_acc)),
    )(x, q, k, v, wo, bo)


def cross_attention(x, q, k, v, mask, wo, bo, num_heads, tq, tk):
    b, sq, d = x.shape
    sk = k.shape[1]
    dk = d // num_heads
    nq, nk = sq // tq, sk // tk
    flops = 4 * b * sq * sk * d + 2 * b * sq * d * d
    trans = b * num_heads * sq * sk + b * num_heads * sq
    bytes_acc = (3 * b * sq * d * 2 + 2 * b * sk * d * 2 + b * sk * 4
                 + d * d * 2 + d * 4)
    return pl.pallas_call(
        functools.partial(_cross_attn_kernel, num_heads=num_heads),
        out_shape=jax.ShapeDtypeStruct((b, sq, d), jnp.bfloat16),
        grid=(b, nq, nk),
        in_specs=[
            pl.BlockSpec((1, tq, d), lambda bi, qi, ki: (bi, qi, 0)),   # residual
            pl.BlockSpec((1, tq, d), lambda bi, qi, ki: (bi, qi, 0)),   # q
            pl.BlockSpec((1, tk, d), lambda bi, qi, ki: (bi, ki, 0)),   # k
            pl.BlockSpec((1, tk, d), lambda bi, qi, ki: (bi, ki, 0)),   # v
            pl.BlockSpec((1, 1, tk), lambda bi, qi, ki: (bi, 0, ki)),   # src mask
            pl.BlockSpec((d, d), lambda bi, qi, ki: (0, 0)),            # wo
            pl.BlockSpec((1, d), lambda bi, qi, ki: (0, 0)),            # bo
        ],
        out_specs=pl.BlockSpec((1, tq, d), lambda bi, qi, ki: (bi, qi, 0)),
        scratch_shapes=[
            pltpu.VMEM((num_heads, tq, dk), jnp.float32),
            pltpu.VMEM((num_heads, tq, 1), jnp.float32),
            pltpu.VMEM((num_heads, tq, 1), jnp.float32),
        ],
        compiler_params=_compiler_params(("parallel", "parallel", "arbitrary")),
        cost_estimate=pl.CostEstimate(flops=int(flops), transcendentals=int(trans),
                                      bytes_accessed=int(bytes_acc)),
    )(x, q, k, v, mask, wo, bo)


def ffn_block(x, lp):
    b, s, d = x.shape
    n = b * s
    dff = lp["ffn_w1"].shape[1]
    tm = _row_tile(n)
    flops = 4 * n * d * dff + 12 * n * d
    bytes_acc = 2 * n * d * 2 + 2 * d * dff * 2 + (d + dff) * 4 + 2 * d * 4
    out = pl.pallas_call(
        functools.partial(_ffn_kernel, eps=LN_EPS),
        out_shape=jax.ShapeDtypeStruct((n, d), jnp.bfloat16),
        grid=(n // tm,),
        in_specs=[
            pl.BlockSpec((tm, d), lambda i: (i, 0)),
            pl.BlockSpec((1, d), lambda i: (0, 0)),
            pl.BlockSpec((1, d), lambda i: (0, 0)),
            pl.BlockSpec((d, dff), lambda i: (0, 0)),
            pl.BlockSpec((1, dff), lambda i: (0, 0)),
            pl.BlockSpec((dff, d), lambda i: (0, 0)),
            pl.BlockSpec((1, d), lambda i: (0, 0)),
        ],
        out_specs=pl.BlockSpec((tm, d), lambda i: (i, 0)),
        compiler_params=_compiler_params(("parallel",)),
        cost_estimate=pl.CostEstimate(flops=int(flops), transcendentals=int(n),
                                      bytes_accessed=int(bytes_acc)),
    )(x.reshape(n, d), lp["ln3_g"], lp["ln3_b"],
      lp["ffn_w1"], lp["ffn_b1"], lp["ffn_w2"], lp["ffn_b2"])
    return out.reshape(b, s, d)


def final_layernorm(x, g, b_):
    b, s, d = x.shape
    n = b * s
    tm = _row_tile(n)
    out = pl.pallas_call(
        functools.partial(_layernorm_kernel, eps=LN_EPS),
        out_shape=jax.ShapeDtypeStruct((n, d), jnp.float32),
        grid=(n // tm,),
        in_specs=[
            pl.BlockSpec((tm, d), lambda i: (i, 0)),
            pl.BlockSpec((1, d), lambda i: (0, 0)),
            pl.BlockSpec((1, d), lambda i: (0, 0)),
        ],
        out_specs=pl.BlockSpec((tm, d), lambda i: (i, 0)),
        compiler_params=_compiler_params(("parallel",)),
        cost_estimate=pl.CostEstimate(flops=int(10 * n * d), transcendentals=int(n),
                                      bytes_accessed=int(n * d * 6 + 2 * d * 4)),
    )(x.reshape(n, d), g, b_)
    return out.reshape(b, s, d)


# ----------------------------------------------------------------------------
# Decoder forward (loop over layers + final LayerNorm)
# ----------------------------------------------------------------------------

def decoder_forward(x, encoder_output, src_mask, tgt_mask, params, num_heads):
    """x: (B, S_tgt, D); encoder_output: (B, S_src, D);
    src_mask: (B, 1, 1, S_src) padding mask; tgt_mask: causal (regenerated
    in-kernel, see TODO at top of file)."""
    del tgt_mask
    b, sq, d = x.shape
    sk = encoder_output.shape[1]
    assert d % num_heads == 0

    sq_pad, tq = _seq_pad_and_tile(sq)
    sk_pad, tk = _seq_pad_and_tile(sk)

    # bf16 activations in HBM between sublayers (f32 math inside the kernels).
    xb = x.astype(jnp.bfloat16)
    enc = encoder_output.astype(jnp.bfloat16)
    mask = src_mask.reshape(b, 1, sk).astype(jnp.float32)
    if sq_pad != sq:
        xb = jnp.pad(xb, ((0, 0), (0, sq_pad - sq), (0, 0)))
    if sk_pad != sk:
        enc = jnp.pad(enc, ((0, 0), (0, sk_pad - sk), (0, 0)))
        mask = jnp.pad(mask, ((0, 0), (0, 0), (0, sk_pad - sk)))

    n_tgt = b * sq_pad
    enc2d = enc.reshape(b * sk_pad, d)

    for lp in params["layers"]:
        # --- masked self-attention sublayer ---
        q, k, v = ln_qkv_proj(xb.reshape(n_tgt, d), lp["ln1_g"], lp["ln1_b"],
                              lp["sa_wqkv"], lp["sa_bqkv"], d)
        q = q.reshape(b, sq_pad, d)
        k = k.reshape(b, sq_pad, d)
        v = v.reshape(b, sq_pad, d)
        xb = self_attention(xb, q, k, v, lp["sa_wo"], lp["sa_bo"],
                            num_heads, tq, tq)

        # --- cross-attention sublayer (K/V of encoder computed once/layer) ---
        q = ln_linear(xb.reshape(n_tgt, d), lp["ln2_g"], lp["ln2_b"],
                      lp["ca_wq"], lp["ca_bq"]).reshape(b, sq_pad, d)
        ck, cv = kv_proj(enc2d, lp["ca_wkv"], lp["ca_bkv"], d)
        ck = ck.reshape(b, sk_pad, d)
        cv = cv.reshape(b, sk_pad, d)
        xb = cross_attention(xb, q, ck, cv, mask, lp["ca_wo"], lp["ca_bo"],
                             num_heads, tq, tk)

        # --- feed-forward sublayer ---
        xb = ffn_block(xb, lp)

    out = final_layernorm(xb, params["final_ln_g"], params["final_ln_b"])
    return out[:, :sq, :]


# ----------------------------------------------------------------------------
# Deterministic parameter init (weights bf16, biases / LN params f32)
# ----------------------------------------------------------------------------

def _init_linear(key, din, dout):
    kw, kb = jax.random.split(key)
    w = (jax.random.normal(kw, (din, dout), jnp.float32) / math.sqrt(din)
         ).astype(jnp.bfloat16)
    b = 0.01 * jax.random.normal(kb, (1, dout), jnp.float32)
    return w, b


def init_decoder_params(key, n_layers, d_model, d_ff):
    layers = []
    for _ in range(n_layers):
        key, k_qkv, k_so, k_cq, k_ckv, k_co, k_f1, k_f2 = jax.random.split(key, 8)
        sa_wqkv, sa_bqkv = _init_linear(k_qkv, d_model, 3 * d_model)
        sa_wo, sa_bo = _init_linear(k_so, d_model, d_model)
        ca_wq, ca_bq = _init_linear(k_cq, d_model, d_model)
        ca_wkv, ca_bkv = _init_linear(k_ckv, d_model, 2 * d_model)
        ca_wo, ca_bo = _init_linear(k_co, d_model, d_model)
        w1, b1 = _init_linear(k_f1, d_model, d_ff)
        w2, b2 = _init_linear(k_f2, d_ff, d_model)
        ones = jnp.ones((1, d_model), jnp.float32)
        zeros = jnp.zeros((1, d_model), jnp.float32)
        layers.append(dict(
            sa_wqkv=sa_wqkv, sa_bqkv=sa_bqkv, sa_wo=sa_wo, sa_bo=sa_bo,
            ca_wq=ca_wq, ca_bq=ca_bq, ca_wkv=ca_wkv, ca_bkv=ca_bkv,
            ca_wo=ca_wo, ca_bo=ca_bo,
            ffn_w1=w1, ffn_b1=b1, ffn_w2=w2, ffn_b2=b2,
            ln1_g=ones, ln1_b=zeros,
            ln2_g=ones, ln2_b=zeros,
            ln3_g=ones, ln3_b=zeros,
        ))
    return dict(layers=layers,
                final_ln_g=jnp.ones((1, d_model), jnp.float32),
                final_ln_b=jnp.zeros((1, d_model), jnp.float32))


# ----------------------------------------------------------------------------
# Main
# ----------------------------------------------------------------------------

if __name__ == "__main__":
    B, S_TGT, S_SRC, D_MODEL, N_HEADS, D_FF, N_LAYERS = 2, 8, 8, 32, 4, 64, 2

    root = jax.random.PRNGKey(0)
    k_x, k_enc, k_params = jax.random.split(root, 3)

    x = jax.random.normal(k_x, (B, S_TGT, D_MODEL), jnp.float32)
    encoder_output = jax.random.normal(k_enc, (B, S_SRC, D_MODEL), jnp.float32)

    # src_mask: all-ones padding mask (B, 1, 1, S_src)
    src_mask = jnp.ones((B, 1, 1, S_SRC), jnp.float32)
    # tgt_mask: standard causal mask (B, 1, S_tgt, S_tgt) -- regenerated in-kernel.
    causal = jnp.tril(jnp.ones((S_TGT, S_TGT), jnp.float32))
    tgt_mask = jnp.broadcast_to(causal, (B, 1, S_TGT, S_TGT))

    params = init_decoder_params(k_params, N_LAYERS, D_MODEL, D_FF)

    fwd = jax.jit(decoder_forward, static_argnums=(5,))
    out = jax.block_until_ready(
        fwd(x, encoder_output, src_mask, tgt_mask, params, N_HEADS))

    assert out.shape == (B, S_TGT, D_MODEL)
    assert bool(jnp.isfinite(out).all())
    print("KERNEL_OK")
</pallas_src>

<mosaic_0001>
module attributes {stable_mosaic.version = 11 : i64} {
  func.func @_self_attn_kernel(%arg0: i32, %arg1: i32, %arg2: i32, %arg3: memref<1x8x32xbf16, #tpu.memory_space<vmem>>, %arg4: memref<1x8x32xbf16, #tpu.memory_space<vmem>>, %arg5: memref<1x8x32xbf16, #tpu.memory_space<vmem>>, %arg6: memref<1x8x32xbf16, #tpu.memory_space<vmem>>, %arg7: memref<32x32xbf16, #tpu.memory_space<vmem>>, %arg8: memref<1x32xf32, #tpu.memory_space<vmem>>, %arg9: memref<1x8x32xbf16, #tpu.memory_space<vmem>>, %arg10: memref<4x8x8xf32, #tpu.memory_space<vmem>>, %arg11: memref<4x8x1xf32, #tpu.memory_space<vmem>>, %arg12: memref<4x8x1xf32, #tpu.memory_space<vmem>>) attributes {dimension_semantics = [#tpu.dimension_semantics<parallel>, #tpu.dimension_semantics<parallel>, #tpu.dimension_semantics<arbitrary>], iteration_bounds = array<i64: 2, 1, 1>, scalar_prefetch = 0 : i64, scratch_operands = 3 : i64, tpu.core_type = #tpu.core_type<tc>, window_params = [{transform_indices = @transform_0, window_bounds = array<i64: 1, 8, 32>}, {transform_indices = @transform_1, window_bounds = array<i64: 1, 8, 32>}, {transform_indices = @transform_2, window_bounds = array<i64: 1, 8, 32>}, {transform_indices = @transform_3, window_bounds = array<i64: 1, 8, 32>}, {pipeline_mode = #tpu.pipeline_mode<synchronous>, transform_indices = @transform_4, window_bounds = array<i64: 32, 32>}, {pipeline_mode = #tpu.pipeline_mode<synchronous>, transform_indices = @transform_5, window_bounds = array<i64: 1, 32>}, {transform_indices = @transform_6, window_bounds = array<i64: 1, 8, 32>}]} {
    %c0_i32 = arith.constant 0 : i32
    %0 = arith.cmpi eq, %arg2, %c0_i32 : i32
    %1 = arith.extui %0 : i1 to i32
    %c0_i32_0 = arith.constant 0 : i32
    %2 = arith.cmpi ne, %1, %c0_i32_0 : i32
    scf.if %2 {
      %cst = arith.constant 0.000000e+00 : f32
      %12 = vector.broadcast %cst : f32 to vector<4x8x8xf32>
      %c0 = arith.constant 0 : index
      %c0_5 = arith.constant 0 : index
      %c0_6 = arith.constant 0 : index
      %13 = vector.load %arg10[%c0, %c0_5, %c0_6] : memref<4x8x8xf32, #tpu.memory_space<vmem>>, vector<4x8x8xf32>
      tpu.vector_store %arg10[%c0, %c0_5, %c0_6], %12 {strides = array<i32>} : memref<4x8x8xf32, #tpu.memory_space<vmem>>, vector<4x8x8xf32>,
      %cst_7 = arith.constant -1.000000e+30 : f32
      %14 = vector.broadcast %cst_7 : f32 to vector<4x8x1xf32>
      %c0_8 = arith.constant 0 : index
      %c0_9 = arith.constant 0 : index
      %c0_10 = arith.constant 0 : index
      %15 = vector.load %arg11[%c0_8, %c0_9, %c0_10] : memref<4x8x1xf32, #tpu.memory_space<vmem>>, vector<4x8x1xf32>
      tpu.vector_store %arg11[%c0_8, %c0_9, %c0_10], %14 {strides = array<i32>} : memref<4x8x1xf32, #tpu.memory_space<vmem>>, vector<4x8x1xf32>,
      %cst_11 = arith.constant 0.000000e+00 : f32
      %16 = vector.broadcast %cst_11 : f32 to vector<4x8x1xf32>
      %c0_12 = arith.constant 0 : index
      %c0_13 = arith.constant 0 : index
      %c0_14 = arith.constant 0 : index
      %17 = vector.load %arg12[%c0_12, %c0_13, %c0_14] : memref<4x8x1xf32, #tpu.memory_space<vmem>>, vector<4x8x1xf32>
      tpu.vector_store %arg12[%c0_12, %c0_13, %c0_14], %16 {strides = array<i32>} : memref<4x8x1xf32, #tpu.memory_space<vmem>>, vector<4x8x1xf32>,
    } else {
    }
    %c8_i32 = arith.constant 8 : i32
    %3 = arith.muli %arg1, %c8_i32 : i32
    %c8_i32_1 = arith.constant 8 : i32
    %4 = arith.muli %arg2, %c8_i32_1 : i32
    %c7_i32 = arith.constant 7 : i32
    %5 = arith.addi %3, %c7_i32 : i32
    %6 = arith.cmpi sge, %5, %4 : i32
    %7 = arith.extui %6 : i1 to i32
    %c0_i32_2 = arith.constant 0 : i32
    %8 = arith.cmpi ne, %7, %c0_i32_2 : i32
    scf.if %8 {
      %12 = tpu.iota {dimensions = array<i32: 0>} : vector<8x8xi32>
      %13 = vector.broadcast %3 : i32 to vector<8x8xi32>
      %14 = arith.addi %13, %12 : vector<8x8xi32>
      %15 = tpu.iota {dimensions = array<i32: 1>} : vector<8x8xi32>
      %16 = vector.broadcast %4 : i32 to vector<8x8xi32>
      %17 = arith.addi %16, %15 : vector<8x8xi32>
      %18 = arith.cmpi sge, %14, %17 : vector<8x8xi32>
      %c0 = arith.constant 0 : index
      %c0_5 = arith.constant 0 : index
      %c0_6 = arith.constant 0 : index
      %19 = vector.load %arg4[%c0, %c0_5, %c0_6] : memref<1x8x32xbf16, #tpu.memory_space<vmem>>, vector<1x8x8xbf16>
      %20 = vector.shape_cast %19 : vector<1x8x8xbf16> to vector<8x8xbf16>
      %c0_7 = arith.constant 0 : index
      %c0_8 = arith.constant 0 : index
      %c0_9 = arith.constant 0 : index
      %21 = vector.load %arg5[%c0_7, %c0_8, %c0_9] : memref<1x8x32xbf16, #tpu.memory_space<vmem>>, vector<1x8x8xbf16>
      %22 = vector.shape_cast %21 : vector<1x8x8xbf16> to vector<8x8xbf16>
      %c0_10 = arith.constant 0 : index
      %c0_11 = arith.constant 0 : index
      %c0_12 = arith.constant 0 : index
      %23 = vector.load %arg6[%c0_10, %c0_11, %c0_12] : memref<1x8x32xbf16, #tpu.memory_space<vmem>>, vector<1x8x8xbf16>
      %24 = vector.shape_cast %23 : vector<1x8x8xbf16> to vector<8x8xbf16>
      %cst = arith.constant dense<0.000000e+00> : vector<8x8xf32>
      %25 = tpu.matmul %20, %22, %cst {dimension_numbers = #tpu.dot_dimension_numbers<[1], [1], [0], [0], [0, 0, 1, 0], [], []>} : vector<8x8xbf16>, vector<8x8xbf16>, vector<8x8xf32> -> vector<8x8xf32>
      %cst_13 = arith.constant 0.353553385 : f32
      %26 = vector.broadcast %cst_13 : f32 to vector<8x8xf32>
      %27 = arith.mulf %25, %26 : vector<8x8xf32>
      %cst_14 = arith.constant -1.000000e+30 : f32
      %28 = vector.broadcast %cst_14 : f32 to vector<8x8xf32>
      %29 = arith.select %18, %27, %28 : vector<8x8xi1>, vector<8x8xf32>
      %c0_15 = arith.constant 0 : index
      %c0_16 = arith.constant 0 : index
      %c0_17 = arith.constant 0 : index
      %30 = vector.load %arg11[%c0_15, %c0_16, %c0_17] : memref<4x8x1xf32, #tpu.memory_space<vmem>>, vector<1x8x1xf32>
      %31 = vector.shape_cast %30 : vector<1x8x1xf32> to vector<8x1xf32>
      %cst_18 = arith.constant dense<0xFF800000> : vector<8xf32>
      %32 = vector.multi_reduction <maximumf>, %29, %cst_18 [1] : vector<8x8xf32> to vector<8xf32>
      %33 = vector.shape_cast %32 : vector<8xf32> to vector<8x1xf32>
      %34 = arith.maximumf %31, %33 : vector<8x1xf32>
      %35 = arith.subf %31, %34 : vector<8x1xf32>
      %36 = math.exp %35 : vector<8x1xf32>
      %37 = vector.broadcast %34 : vector<8x1xf32> to vector<8x8xf32>
      %38 = arith.subf %29, %37 : vector<8x8xf32>
      %39 = math.exp %38 : vector<8x8xf32>
      %c0_19 = arith.constant 0 : index
      %c0_20 = arith.constant 0 : index
      %c0_21 = arith.constant 0 : index
      %40 = vector.load %arg12[%c0_19, %c0_20, %c0_21] : memref<4x8x1xf32, #tpu.memory_space<vmem>>, vector<1x8x1xf32>
      %41 = vector.shape_cast %40 : vector<1x8x1xf32> to vector<8x1xf32>
      %42 = arith.mulf %36, %41 : vector<8x1xf32>
      %cst_22 = arith.constant dense<0.000000e+00> : vector<8xf32>
      %43 = vector.multi_reduction <add>, %39, %cst_22 [1] : vector<8x8xf32> to vector<8xf32>
      %44 = vector.shape_cast %43 : vector<8xf32> to vector<8x1xf32>
      %45 = arith.addf %42, %44 : vector<8x1xf32>
      %c0_23 = arith.constant 0 : index
      %c0_24 = arith.constant 0 : index
      %c0_25 = arith.constant 0 : index
      %46 = vector.load %arg12[%c0_23, %c0_24, %c0_25] : memref<4x8x1xf32, #tpu.memory_space<vmem>>, vector<1x8x1xf32>
      %47 = vector.shape_cast %46 : vector<1x8x1xf32> to vector<8x1xf32>
      %48 = vector.shape_cast %45 : vector<8x1xf32> to vector<1x8x1xf32>
      tpu.vector_store %arg12[%c0_23, %c0_24, %c0_25], %48 {strides = array<i32>} : memref<4x8x1xf32, #tpu.memory_space<vmem>>, vector<1x8x1xf32>,
      %c0_26 = arith.constant 0 : index
      %c0_27 = arith.constant 0 : index
      %c0_28 = arith.constant 0 : index
      %49 = vector.load %arg10[%c0_26, %c0_27, %c0_28] : memref<4x8x8xf32, #tpu.memory_space<vmem>>, vector<1x8x8xf32>
      %50 = vector.shape_cast %49 : vector<1x8x8xf32> to vector<8x8xf32>
      %51 = vector.broadcast %36 : vector<8x1xf32> to vector<8x8xf32>
      %52 = arith.mulf %51, %50 : vector<8x8xf32>
      %53 = arith.truncf %39 : vector<8x8xf32> to vector<8x8xbf16>
      %cst_29 = arith.constant dense<0.000000e+00> : vector<8x8xf32>
      %54 = tpu.matmul %53, %24, %cst_29 {dimension_numbers = #tpu.dot_dimension_numbers<[1], [0], [0], [1], [0, 0, 1, 1], [], []>} : vector<8x8xbf16>, vector<8x8xbf16>, vector<8x8xf32> -> vector<8x8xf32>
      %55 = arith.addf %52, %54 : vector<8x8xf32>
      %c0_30 = arith.constant 0 : index
      %c0_31 = arith.constant 0 : index
      %c0_32 = arith.constant 0 : index
      %56 = vector.load %arg10[%c0_30, %c0_31, %c0_32] : memref<4x8x8xf32, #tpu.memory_space<vmem>>, vector<1x8x8xf32>
      %57 = vector.shape_cast %56 : vector<1x8x8xf32> to vector<8x8xf32>
      %58 = vector.shape_cast %55 : vector<8x8xf32> to vector<1x8x8xf32>
      tpu.vector_store %arg10[%c0_30, %c0_31, %c0_32], %58 {strides = array<i32>} : memref<4x8x8xf32, #tpu.memory_space<vmem>>, vector<1x8x8xf32>,
      %c0_33 = arith.constant 0 : index
      %c0_34 = arith.constant 0 : index
      %c0_35 = arith.constant 0 : index
      %59 = vector.load %arg11[%c0_33, %c0_34, %c0_35] : memref<4x8x1xf32, #tpu.memory_space<vmem>>, vector<1x8x1xf32>
      %60 = vector.shape_cast %59 : vector<1x8x1xf32> to vector<8x1xf32>
      %61 = vector.shape_cast %34 : vector<8x1xf32> to vector<1x8x1xf32>
      tpu.vector_store %arg11[%c0_33, %c0_34, %c0_35], %61 {strides = array<i32>} : memref<4x8x1xf32, #tpu.memory_space<vmem>>, vector<1x8x1xf32>,
      %c0_36 = arith.constant 0 : index
      %c0_37 = arith.constant 0 : index
      %c8 = arith.constant 8 : index
      %62 = vector.load %arg4[%c0_36, %c0_37, %c8] : memref<1x8x32xbf16, #tpu.memory_space<vmem>>, vector<1x8x8xbf16>
      %63 = vector.shape_cast %62 : vector<1x8x8xbf16> to vector<8x8xbf16>
      %c0_38 = arith.constant 0 : index
      %c0_39 = arith.constant 0 : index
      %c8_40 = arith.constant 8 : index
      %64 = vector.load %arg5[%c0_38, %c0_39, %c8_40] : memref<1x8x32xbf16, #tpu.memory_space<vmem>>, vector<1x8x8xbf16>
      %65 = vector.shape_cast %64 : vector<1x8x8xbf16> to vector<8x8xbf16>
      %c0_41 = arith.constant 0 : index
      %c0_42 = arith.constant 0 : index
      %c8_43 = arith.constant 8 : index
      %66 = vector.load %arg6[%c0_41, %c0_42, %c8_43] : memref<1x8x32xbf16, #tpu.memory_space<vmem>>, vector<1x8x8xbf16>
      %67 = vector.shape_cast %66 : vector<1x8x8xbf16> to vector<8x8xbf16>
      %cst_44 = arith.constant dense<0.000000e+00> : vector<8x8xf32>
      %68 = tpu.matmul %63, %65, %cst_44 {dimension_numbers = #tpu.dot_dimension_numbers<[1], [1], [0], [0], [0, 0, 1, 0], [], []>} : vector<8x8xbf16>, vector<8x8xbf16>, vector<8x8xf32> -> vector<8x8xf32>
      %cst_45 = arith.constant 0.353553385 : f32
      %69 = vector.broadcast %cst_45 : f32 to vector<8x8xf32>
      %70 = arith.mulf %68, %69 : vector<8x8xf32>
      %cst_46 = arith.constant -1.000000e+30 : f32
      %71 = vector.broadcast %cst_46 : f32 to vector<8x8xf32>
      %72 = arith.select %18, %70, %71 : vector<8x8xi1>, vector<8x8xf32>
      %c1 = arith.constant 1 : index
      %c0_47 = arith.constant 0 : index
      %c0_48 = arith.constant 0 : index
      %73 = vector.load %arg11[%c1, %c0_47, %c0_48] : memref<4x8x1xf32, #tpu.memory_space<vmem>>, vector<1x8x1xf32>
      %74 = vector.shape_cast %73 : vector<1x8x1xf32> to vector<8x1xf32>
      %cst_49 = arith.constant dense<0xFF800000> : vector<8xf32>
      %75 = vector.multi_reduction <maximumf>, %72, %cst_49 [1] : vector<8x8xf32> to vector<8xf32>
      %76 = vector.shape_cast %75 : vector<8xf32> to vector<8x1xf32>
      %77 = arith.maximumf %74, %76 : vector<8x1xf32>
      %78 = arith.subf %74, %77 : vector<8x1xf32>
      %79 = math.exp %78 : vector<8x1xf32>
      %80 = vector.broadcast %77 : vector<8x1xf32> to vector<8x8xf32>
      %81 = arith.subf %72, %80 : vector<8x8xf32>
      %82 = math.exp %81 : vector<8x8xf32>
      %c1_50 = arith.constant 1 : index
      %c0_51 = arith.constant 0 : index
      %c0_52 = arith.constant 0 : index
      %83 = vector.load %arg12[%c1_50, %c0_51, %c0_52] : memref<4x8x1xf32, #tpu.memory_space<vmem>>, vector<1x8x1xf32>
      %84 = vector.shape_cast %83 : vector<1x8x1xf32> to vector<8x1xf32>
      %85 = arith.mulf %79, %84 : vector<8x1xf32>
      %cst_53 = arith.constant dense<0.000000e+00> : vector<8xf32>
      %86 = vector.multi_reduction <add>, %82, %cst_53 [1] : vector<8x8xf32> to vector<8xf32>
      %87 = vector.shape_cast %86 : vector<8xf32> to vector<8x1xf32>
      %88 = arith.addf %85, %87 : vector<8x1xf32>
      %c1_54 = arith.constant 1 : index
      %c0_55 = arith.constant 0 : index
      %c0_56 = arith.constant 0 : index
      %89 = vector.load %arg12[%c1_54, %c0_55, %c0_56] : memref<4x8x1xf32, #tpu.memory_space<vmem>>, vector<1x8x1xf32>
      %90 = vector.shape_cast %89 : vector<1x8x1xf32> to vector<8x1xf32>
      %91 = vector.shape_cast %88 : vector<8x1xf32> to vector<1x8x1xf32>
      tpu.vector_store %arg12[%c1_54, %c0_55, %c0_56], %91 {strides = array<i32>} : memref<4x8x1xf32, #tpu.memory_space<vmem>>, vector<1x8x1xf32>,
      %c1_57 = arith.constant 1 : index
      %c0_58 = arith.constant 0 : index
      %c0_59 = arith.constant 0 : index
      %92 = vector.load %arg10[%c1_57, %c0_58, %c0_59] : memref<4x8x8xf32, #tpu.memory_space<vmem>>, vector<1x8x8xf32>
      %93 = vector.shape_cast %92 : vector<1x8x8xf32> to vector<8x8xf32>
      %94 = vector.broadcast %79 : vector<8x1xf32> to vector<8x8xf32>
      %95 = arith.mulf %94, %93 : vector<8x8xf32>
      %96 = arith.truncf %82 : vector<8x8xf32> to vector<8x8xbf16>
      %cst_60 = arith.constant dense<0.000000e+00> : vector<8x8xf32>
      %97 = tpu.matmul %96, %67, %cst_60 {dimension_numbers = #tpu.dot_dimension_numbers<[1], [0], [0], [1], [0, 0, 1, 1], [], []>} : vector<8x8xbf16>, vector<8x8xbf16>, vector<8x8xf32> -> vector<8x8xf32>
      %98 = arith.addf %95, %97 : vector<8x8xf32>
      %c1_61 = arith.constant 1 : index
      %c0_62 = arith.constant 0 : index
      %c0_63 = arith.constant 0 : index
      %99 = vector.load %arg10[%c1_61, %c0_62, %c0_63] : memref<4x8x8xf32, #tpu.memory_space<vmem>>, vector<1x8x8xf32>
      %100 = vector.shape_cast %99 : vector<1x8x8xf32> to vector<8x8xf32>
      %101 = vector.shape_cast %98 : vector<8x8xf32> to vector<1x8x8xf32>
      tpu.vector_store %arg10[%c1_61, %c0_62, %c0_63], %101 {strides = array<i32>} : memref<4x8x8xf32, #tpu.memory_space<vmem>>, vector<1x8x8xf32>,
      %c1_64 = arith.constant 1 : index
      %c0_65 = arith.constant 0 : index
      %c0_66 = arith.constant 0 : index
      %102 = vector.load %arg11[%c1_64, %c0_65, %c0_66] : memref<4x8x1xf32, #tpu.memory_space<vmem>>, vector<1x8x1xf32>
      %103 = vector.shape_cast %102 : vector<1x8x1xf32> to vector<8x1xf32>
      %104 = vector.shape_cast %77 : vector<8x1xf32> to vector<1x8x1xf32>
      tpu.vector_store %arg11[%c1_64, %c0_65, %c0_66], %104 {strides = array<i32>} : memref<4x8x1xf32, #tpu.memory_space<vmem>>, vector<1x8x1xf32>,
      %c0_67 = arith.constant 0 : index
      %c0_68 = arith.constant 0 : index
      %c16 = arith.constant 16 : index
      %105 = vector.load %arg4[%c0_67, %c0_68, %c16] : memref<1x8x32xbf16, #tpu.memory_space<vmem>>, vector<1x8x8xbf16>
      %106 = vector.shape_cast %105 : vector<1x8x8xbf16> to vector<8x8xbf16>
      %c0_69 = arith.constant 0 : index
      %c0_70 = arith.constant 0 : index
      %c16_71 = arith.constant 16 : index
      %107 = vector.load %arg5[%c0_69, %c0_70, %c16_71] : memref<1x8x32xbf16, #tpu.memory_space<vmem>>, vector<1x8x8xbf16>
      %108 = vector.shape_cast %107 : vector<1x8x8xbf16> to vector<8x8xbf16>
      %c0_72 = arith.constant 0 : index
      %c0_73 = arith.constant 0 : index
      %c16_74 = arith.constant 16 : index
      %109 = vector.load %arg6[%c0_72, %c0_73, %c16_74] : memref<1x8x32xbf16, #tpu.memory_space<vmem>>, vector<1x8x8xbf16>
      %110 = vector.shape_cast %109 : vector<1x8x8xbf16> to vector<8x8xbf16>
      %cst_75 = arith.constant dense<0.000000e+00> : vector<8x8xf32>
      %111 = tpu.matmul %106, %108, %cst_75 {dimension_numbers = #tpu.dot_dimension_numbers<[1], [1], [0], [0], [0, 0, 1, 0], [], []>} : vector<8x8xbf16>, vector<8x8xbf16>, vector<8x8xf32> -> vector<8x8xf32>
      %cst_76 = arith.constant 0.353553385 : f32
      %112 = vector.broadcast %cst_76 : f32 to vector<8x8xf32>
      %113 = arith.mulf %111, %112 : vector<8x8xf32>
      %cst_77 = arith.constant -1.000000e+30 : f32
      %114 = vector.broadcast %cst_77 : f32 to vector<8x8xf32>
      %115 = arith.select %18, %113, %114 : vector<8x8xi1>, vector<8x8xf32>
      %c2 = arith.constant 2 : index
      %c0_78 = arith.constant 0 : index
      %c0_79 = arith.constant 0 : index
      %116 = vector.load %arg11[%c2, %c0_78, %c0_79] : memref<4x8x1xf32, #tpu.memory_space<vmem>>, vector<1x8x1xf32>
      %117 = vector.shape_cast %116 : vector<1x8x1xf32> to vector<8x1xf32>
      %cst_80 = arith.constant dense<0xFF800000> : vector<8xf32>
      %118 = vector.multi_reduction <maximumf>, %115, %cst_80 [1] : vector<8x8xf32> to vector<8xf32>
      %119 = vector.shape_cast %118 : vector<8xf32> to vector<8x1xf32>
      %120 = arith.maximumf %117, %119 : vector<8x1xf32>
      %121 = arith.subf %117, %120 : vector<8x1xf32>
      %122 = math.exp %121 : vector<8x1xf32>
      %123 = vector.broadcast %120 : vector<8x1xf32> to vector<8x8xf32>
      %124 = arith.subf %115, %123 : vector<8x8xf32>
      %125 = math.exp %124 : vector<8x8xf32>
      %c2_81 = arith.constant 2 : index
      %c0_82 = arith.constant 0 : index
      %c0_83 = arith.constant 0 : index
      %126 = vector.load %arg12[%c2_81, %c0_82, %c0_83] : memref<4x8x1xf32, #tpu.memory_space<vmem>>, vector<1x8x1xf32>
      %127 = vector.shape_cast %126 : vector<1x8x1xf32> to vector<8x1xf32>
      %128 = arith.mulf %122, %127 : vector<8x1xf32>
      %cst_84 = arith.constant dense<0.000000e+00> : vector<8xf32>
      %129 = vector.multi_reduction <add>, %125, %cst_84 [1] : vector<8x8xf32> to vector<8xf32>
      %130 = vector.shape_cast %129 : vector<8xf32> to vector<8x1xf32>
      %131 = arith.addf %128, %130 : vector<8x1xf32>
      %c2_85 = arith.constant 2 : index
      %c0_86 = arith.constant 0 : index
      %c0_87 = arith.constant 0 : index
      %132 = vector.load %arg12[%c2_85, %c0_86, %c0_87] : memref<4x8x1xf32, #tpu.memory_space<vmem>>, vector<1x8x1xf32>
      %133 = vector.shape_cast %132 : vector<1x8x1xf32> to vector<8x1xf32>
      %134 = vector.shape_cast %131 : vector<8x1xf32> to vector<1x8x1xf32>
      tpu.vector_store %arg12[%c2_85, %c0_86, %c0_87], %134 {strides = array<i32>} : memref<4x8x1xf32, #tpu.memory_space<vmem>>, vector<1x8x1xf32>,
      %c2_88 = arith.constant 2 : index
      %c0_89 = arith.constant 0 : index
      %c0_90 = arith.constant 0 : index
      %135 = vector.load %arg10[%c2_88, %c0_89, %c0_90] : memref<4x8x8xf32, #tpu.memory_space<vmem>>, vector<1x8x8xf32>
      %136 = vector.shape_cast %135 : vector<1x8x8xf32> to vector<8x8xf32>
      %137 = vector.broadcast %122 : vector<8x1xf32> to vector<8x8xf32>
      %138 = arith.mulf %137, %136 : vector<8x8xf32>
      %139 = arith.truncf %125 : vector<8x8xf32> to vector<8x8xbf16>
      %cst_91 = arith.constant dense<0.000000e+00> : vector<8x8xf32>
      %140 = tpu.matmul %139, %110, %cst_91 {dimension_numbers = #tpu.dot_dimension_numbers<[1], [0], [0], [1], [0, 0, 1, 1], [], []>} : vector<8x8xbf16>, vector<8x8xbf16>, vector<8x8xf32> -> vector<8x8xf32>
      %141 = arith.addf %138, %140 : vector<8x8xf32>
      %c2_92 = arith.constant 2 : index
      %c0_93 = arith.constant 0 : index
      %c0_94 = arith.constant 0 : index
      %142 = vector.load %arg10[%c2_92, %c0_93, %c0_94] : memref<4x8x8xf32, #tpu.memory_space<vmem>>, vector<1x8x8xf32>
      %143 = vector.shape_cast %142 : vector<1x8x8xf32> to vector<8x8xf32>
      %144 = vector.shape_cast %141 : vector<8x8xf32> to vector<1x8x8xf32>
      tpu.vector_store %arg10[%c2_92, %c0_93, %c0_94], %144 {strides = array<i32>} : memref<4x8x8xf32, #tpu.memory_space<vmem>>, vector<1x8x8xf32>,
      %c2_95 = arith.constant 2 : index
      %c0_96 = arith.constant 0 : index
      %c0_97 = arith.constant 0 : index
      %145 = vector.load %arg11[%c2_95, %c0_96, %c0_97] : memref<4x8x1xf32, #tpu.memory_space<vmem>>, vector<1x8x1xf32>
      %146 = vector.shape_cast %145 : vector<1x8x1xf32> to vector<8x1xf32>
      %147 = vector.shape_cast %120 : vector<8x1xf32> to vector<1x8x1xf32>
      tpu.vector_store %arg11[%c2_95, %c0_96, %c0_97], %147 {strides = array<i32>} : memref<4x8x1xf32, #tpu.memory_space<vmem>>, vector<1x8x1xf32>,
      %c0_98 = arith.constant 0 : index
      %c0_99 = arith.constant 0 : index
      %c24 = arith.constant 24 : index
      %148 = vector.load %arg4[%c0_98, %c0_99, %c24] : memref<1x8x32xbf16, #tpu.memory_space<vmem>>, vector<1x8x8xbf16>
      %149 = vector.shape_cast %148 : vector<1x8x8xbf16> to vector<8x8xbf16>
      %c0_100 = arith.constant 0 : index
      %c0_101 = arith.constant 0 : index
      %c24_102 = arith.constant 24 : index
      %150 = vector.load %arg5[%c0_100, %c0_101, %c24_102] : memref<1x8x32xbf16, #tpu.memory_space<vmem>>, vector<1x8x8xbf16>
      %151 = vector.shape_cast %150 : vector<1x8x8xbf16> to vector<8x8xbf16>
      %c0_103 = arith.constant 0 : index
      %c0_104 = arith.constant 0 : index
      %c24_105 = arith.constant 24 : index
      %152 = vector.load %arg6[%c0_103, %c0_104, %c24_105] : memref<1x8x32xbf16, #tpu.memory_space<vmem>>, vector<1x8x8xbf16>
      %153 = vector.shape_cast %152 : vector<1x8x8xbf16> to vector<8x8xbf16>
      %cst_106 = arith.constant dense<0.000000e+00> : vector<8x8xf32>
      %154 = tpu.matmul %149, %151, %cst_106 {dimension_numbers = #tpu.dot_dimension_numbers<[1], [1], [0], [0], [0, 0, 1, 0], [], []>} : vector<8x8xbf16>, vector<8x8xbf16>, vector<8x8xf32> -> vector<8x8xf32>
      %cst_107 = arith.constant 0.353553385 : f32
      %155 = vector.broadcast %cst_107 : f32 to vector<8x8xf32>
      %156 = arith.mulf %154, %155 : vector<8x8xf32>
      %cst_108 = arith.constant -1.000000e+30 : f32
      %157 = vector.broadcast %cst_108 : f32 to vector<8x8xf32>
      %158 = arith.select %18, %156, %157 : vector<8x8xi1>, vector<8x8xf32>
      %c3 = arith.constant 3 : index
      %c0_109 = arith.constant 0 : index
      %c0_110 = arith.constant 0 : index
      %159 = vector.load %arg11[%c3, %c0_109, %c0_110] : memref<4x8x1xf32, #tpu.memory_space<vmem>>, vector<1x8x1xf32>
      %160 = vector.shape_cast %159 : vector<1x8x1xf32> to vector<8x1xf32>
      %cst_111 = arith.constant dense<0xFF800000> : vector<8xf32>
      %161 = vector.multi_reduction <maximumf>, %158, %cst_111 [1] : vector<8x8xf32> to vector<8xf32>
      %162 = vector.shape_cast %161 : vector<8xf32> to vector<8x1xf32>
      %163 = arith.maximumf %160, %162 : vector<8x1xf32>
      %164 = arith.subf %160, %163 : vector<8x1xf32>
      %165 = math.exp %164 : vector<8x1xf32>
      %166 = vector.broadcast %163 : vector<8x1xf32> to vector<8x8xf32>
      %167 = arith.subf %158, %166 : vector<8x8xf32>
      %168 = math.exp %167 : vector<8x8xf32>
      %c3_112 = arith.constant 3 : index
      %c0_113 = arith.constant 0 : index
      %c0_114 = arith.constant 0 : index
      %169 = vector.load %arg12[%c3_112, %c0_113, %c0_114] : memref<4x8x1xf32, #tpu.memory_space<vmem>>, vector<1x8x1xf32>
      %170 = vector.shape_cast %169 : vector<1x8x1xf32> to vector<8x1xf32>
      %171 = arith.mulf %165, %170 : vector<8x1xf32>
      %cst_115 = arith.constant dense<0.000000e+00> : vector<8xf32>
      %172 = vector.multi_reduction <add>, %168, %cst_115 [1] : vector<8x8xf32> to vector<8xf32>
      %173 = vector.shape_cast %172 : vector<8xf32> to vector<8x1xf32>
      %174 = arith.addf %171, %173 : vector<8x1xf32>
      %c3_116 = arith.constant 3 : index
      %c0_117 = arith.constant 0 : index
      %c0_118 = arith.constant 0 : index
      %175 = vector.load %arg12[%c3_116, %c0_117, %c0_118] : memref<4x8x1xf32, #tpu.memory_space<vmem>>, vector<1x8x1xf32>
      %176 = vector.shape_cast %175 : vector<1x8x1xf32> to vector<8x1xf32>
      %177 = vector.shape_cast %174 : vector<8x1xf32> to vector<1x8x1xf32>
      tpu.vector_store %arg12[%c3_116, %c0_117, %c0_118], %177 {strides = array<i32>} : memref<4x8x1xf32, #tpu.memory_space<vmem>>, vector<1x8x1xf32>,
      %c3_119 = arith.constant 3 : index
      %c0_120 = arith.constant 0 : index
      %c0_121 = arith.constant 0 : index
      %178 = vector.load %arg10[%c3_119, %c0_120, %c0_121] : memref<4x8x8xf32, #tpu.memory_space<vmem>>, vector<1x8x8xf32>
      %179 = vector.shape_cast %178 : vector<1x8x8xf32> to vector<8x8xf32>
      %180 = vector.broadcast %165 : vector<8x1xf32> to vector<8x8xf32>
      %181 = arith.mulf %180, %179 : vector<8x8xf32>
      %182 = arith.truncf %168 : vector<8x8xf32> to vector<8x8xbf16>
      %cst_122 = arith.constant dense<0.000000e+00> : vector<8x8xf32>
      %183 = tpu.matmul %182, %153, %cst_122 {dimension_numbers = #tpu.dot_dimension_numbers<[1], [0], [0], [1], [0, 0, 1, 1], [], []>} : vector<8x8xbf16>, vector<8x8xbf16>, vector<8x8xf32> -> vector<8x8xf32>
      %184 = arith.addf %181, %183 : vector<8x8xf32>
      %c3_123 = arith.constant 3 : index
      %c0_124 = arith.constant 0 : index
      %c0_125 = arith.constant 0 : index
      %185 = vector.load %arg10[%c3_123, %c0_124, %c0_125] : memref<4x8x8xf32, #tpu.memory_space<vmem>>, vector<1x8x8xf32>
      %186 = vector.shape_cast %185 : vector<1x8x8xf32> to vector<8x8xf32>
      %187 = vector.shape_cast %184 : vector<8x8xf32> to vector<1x8x8xf32>
      tpu.vector_store %arg10[%c3_123, %c0_124, %c0_125], %187 {strides = array<i32>} : memref<4x8x8xf32, #tpu.memory_space<vmem>>, vector<1x8x8xf32>,
      %c3_126 = arith.constant 3 : index
      %c0_127 = arith.constant 0 : index
      %c0_128 = arith.constant 0 : index
      %188 = vector.load %arg11[%c3_126, %c0_127, %c0_128] : memref<4x8x1xf32, #tpu.memory_space<vmem>>, vector<1x8x1xf32>
      %189 = vector.shape_cast %188 : vector<1x8x1xf32> to vector<8x1xf32>
      %190 = vector.shape_cast %163 : vector<8x1xf32> to vector<1x8x1xf32>
      tpu.vector_store %arg11[%c3_126, %c0_127, %c0_128], %190 {strides = array<i32>} : memref<4x8x1xf32, #tpu.memory_space<vmem>>, vector<1x8x1xf32>,
    } else {
    }
    %c0_i32_3 = arith.constant 0 : i32
    %9 = arith.cmpi eq, %arg2, %c0_i32_3 : i32
    %10 = arith.extui %9 : i1 to i32
    %c0_i32_4 = arith.constant 0 : i32
    %11 = arith.cmpi ne, %10, %c0_i32_4 : i32
    scf.if %11 {
      %c0 = arith.constant 0 : index
      %c0_5 = arith.constant 0 : index
      %c0_6 = arith.constant 0 : index
      %12 = vector.load %arg10[%c0, %c0_5, %c0_6] : memref<4x8x8xf32, #tpu.memory_space<vmem>>, vector<1x8x8xf32>
      %13 = vector.shape_cast %12 : vector<1x8x8xf32> to vector<8x8xf32>
      %c0_7 = arith.constant 0 : index
      %c0_8 = arith.constant 0 : index
      %c0_9 = arith.constant 0 : index
      %14 = vector.load %arg12[%c0_7, %c0_8, %c0_9] : memref<4x8x1xf32, #tpu.memory_space<vmem>>, vector<1x8x1xf32>
      %15 = vector.shape_cast %14 : vector<1x8x1xf32> to vector<8x1xf32>
      %16 = vector.broadcast %15 : vector<8x1xf32> to vector<8x8xf32>
      %17 = arith.divf %13, %16 : vector<8x8xf32>
      %18 = arith.truncf %17 : vector<8x8xf32> to vector<8x8xbf16>
      %c0_10 = arith.constant 0 : index
      %c0_11 = arith.constant 0 : index
      %19 = vector.load %arg7[%c0_10, %c0_11] : memref<32x32xbf16, #tpu.memory_space<vmem>>, vector<8x32xbf16>
      %cst = arith.constant dense<0.000000e+00> : vector<8x32xf32>
      %20 = tpu.matmul %18, %19, %cst {dimension_numbers = #tpu.dot_dimension_numbers<[1], [0], [0], [1], [0, 0, 1, 1], [], []>} : vector<8x8xbf16>, vector<8x32xbf16>, vector<8x32xf32> -> vector<8x32xf32>
      %c1 = arith.constant 1 : index
      %c0_12 = arith.constant 0 : index
      %c0_13 = arith.constant 0 : index
      %21 = vector.load %arg10[%c1, %c0_12, %c0_13] : memref<4x8x8xf32, #tpu.memory_space<vmem>>, vector<1x8x8xf32>
      %22 = vector.shape_cast %21 : vector<1x8x8xf32> to vector<8x8xf32>
      %c1_14 = arith.constant 1 : index
      %c0_15 = arith.constant 0 : index
      %c0_16 = arith.constant 0 : index
      %23 = vector.load %arg12[%c1_14, %c0_15, %c0_16] : memref<4x8x1xf32, #tpu.memory_space<vmem>>, vector<1x8x1xf32>
      %24 = vector.shape_cast %23 : vector<1x8x1xf32> to vector<8x1xf32>
      %25 = vector.broadcast %24 : vector<8x1xf32> to vector<8x8xf32>
      %26 = arith.divf %22, %25 : vector<8x8xf32>
      %27 = arith.truncf %26 : vector<8x8xf32> to vector<8x8xbf16>
      %c8 = arith.constant 8 : index
      %c0_17 = arith.constant 0 : index
      %28 = vector.load %arg7[%c8, %c0_17] : memref<32x32xbf16, #tpu.memory_space<vmem>>, vector<8x32xbf16>
      %cst_18 = arith.constant dense<0.000000e+00> : vector<8x32xf32>
      %29 = tpu.matmul %27, %28, %cst_18 {dimension_numbers = #tpu.dot_dimension_numbers<[1], [0], [0], [1], [0, 0, 1, 1], [], []>} : vector<8x8xbf16>, vector<8x32xbf16>, vector<8x32xf32> -> vector<8x32xf32>
      %30 = arith.addf %20, %29 : vector<8x32xf32>
      %c2 = arith.constant 2 : index
      %c0_19 = arith.constant 0 : index
      %c0_20 = arith.constant 0 : index
      %31 = vector.load %arg10[%c2, %c0_19, %c0_20] : memref<4x8x8xf32, #tpu.memory_space<vmem>>, vector<1x8x8xf32>
      %32 = vector.shape_cast %31 : vector<1x8x8xf32> to vector<8x8xf32>
      %c2_21 = arith.constant 2 : index
      %c0_22 = arith.constant 0 : index
      %c0_23 = arith.constant 0 : index
      %33 = vector.load %arg12[%c2_21, %c0_22, %c0_23] : memref<4x8x1xf32, #tpu.memory_space<vmem>>, vector<1x8x1xf32>
      %34 = vector.shape_cast %33 : vector<1x8x1xf32> to vector<8x1xf32>
      %35 = vector.broadcast %34 : vector<8x1xf32> to vector<8x8xf32>
      %36 = arith.divf %32, %35 : vector<8x8xf32>
      %37 = arith.truncf %36 : vector<8x8xf32> to vector<8x8xbf16>
      %c16 = arith.constant 16 : index
      %c0_24 = arith.constant 0 : index
      %38 = vector.load %arg7[%c16, %c0_24] : memref<32x32xbf16, #tpu.memory_space<vmem>>, vector<8x32xbf16>
      %cst_25 = arith.constant dense<0.000000e+00> : vector<8x32xf32>
      %39 = tpu.matmul %37, %38, %cst_25 {dimension_numbers = #tpu.dot_dimension_numbers<[1], [0], [0], [1], [0, 0, 1, 1], [], []>} : vector<8x8xbf16>, vector<8x32xbf16>, vector<8x32xf32> -> vector<8x32xf32>
      %40 = arith.addf %30, %39 : vector<8x32xf32>
      %c3 = arith.constant 3 : index
      %c0_26 = arith.constant 0 : index
      %c0_27 = arith.constant 0 : index
      %41 = vector.load %arg10[%c3, %c0_26, %c0_27] : memref<4x8x8xf32, #tpu.memory_space<vmem>>, vector<1x8x8xf32>
      %42 = vector.shape_cast %41 : vector<1x8x8xf32> to vector<8x8xf32>
      %c3_28 = arith.constant 3 : index
      %c0_29 = arith.constant 0 : index
      %c0_30 = arith.constant 0 : index
      %43 = vector.load %arg12[%c3_28, %c0_29, %c0_30] : memref<4x8x1xf32, #tpu.memory_space<vmem>>, vector<1x8x1xf32>
      %44 = vector.shape_cast %43 : vector<1x8x1xf32> to vector<8x1xf32>
      %45 = vector.broadcast %44 : vector<8x1xf32> to vector<8x8xf32>
      %46 = arith.divf %42, %45 : vector<8x8xf32>
      %47 = arith.truncf %46 : vector<8x8xf32> to vector<8x8xbf16>
      %c24 = arith.constant 24 : index
      %c0_31 = arith.constant 0 : index
      %48 = vector.load %arg7[%c24, %c0_31] : memref<32x32xbf16, #tpu.memory_space<vmem>>, vector<8x32xbf16>
      %cst_32 = arith.constant dense<0.000000e+00> : vector<8x32xf32>
      %49 = tpu.matmul %47, %48, %cst_32 {dimension_numbers = #tpu.dot_dimension_numbers<[1], [0], [0], [1], [0, 0, 1, 1], [], []>} : vector<8x8xbf16>, vector<8x32xbf16>, vector<8x32xf32> -> vector<8x32xf32>
      %50 = arith.addf %40, %49 : vector<8x32xf32>
      %c0_33 = arith.constant 0 : index
      %c0_34 = arith.constant 0 : index
      %51 = vector.load %arg8[%c0_33, %c0_34] : memref<1x32xf32, #tpu.memory_space<vmem>>, vector<1x32xf32>
      %52 = vector.broadcast %51 : vector<1x32xf32> to vector<8x32xf32>
      %53 = arith.addf %50, %52 : vector<8x32xf32>
      %c0_35 = arith.constant 0 : index
      %c0_36 = arith.constant 0 : index
      %c0_37 = arith.constant 0 : index
      %54 = vector.load %arg3[%c0_35, %c0_36, %c0_37] : memref<1x8x32xbf16, #tpu.memory_space<vmem>>, vector<1x8x32xbf16>
      %55 = vector.shape_cast %54 : vector<1x8x32xbf16> to vector<8x32xbf16>
      %56 = arith.extf %55 : vector<8x32xbf16> to vector<8x32xf32>
      %57 = arith.addf %56, %53 : vector<8x32xf32>
      %58 = arith.truncf %57 : vector<8x32xf32> to vector<8x32xbf16>
      %c0_38 = arith.constant 0 : index
      %c0_39 = arith.constant 0 : index
      %c0_40 = arith.constant 0 : index
      %59 = vector.load %arg9[%c0_38, %c0_39, %c0_40] : memref<1x8x32xbf16, #tpu.memory_space<vmem>>, vector<1x8x32xbf16>
      %60 = vector.shape_cast %59 : vector<1x8x32xbf16> to vector<8x32xbf16>
      %61 = vector.shape_cast %58 : vector<8x32xbf16> to vector<1x8x32xbf16>
      tpu.vector_store %arg9[%c0_38, %c0_39, %c0_40], %61 {strides = array<i32>} : memref<1x8x32xbf16, #tpu.memory_space<vmem>>, vector<1x8x32xbf16>,
    } else {
    }
    return
  }
  func.func @transform_0(%arg0: i32, %arg1: i32, %arg2: i32) -> (i32, i32, i32) {
    %c0_i32 = arith.constant 0 : i32
    %c0_i32_0 = arith.constant 0 : i32
    return %arg0, %arg1, %c0_i32 : i32, i32, i32
  }
  func.func @transform_1(%arg0: i32, %arg1: i32, %arg2: i32) -> (i32, i32, i32) {
    %c0_i32 = arith.constant 0 : i32
    %c0_i32_0 = arith.constant 0 : i32
    return %arg0, %arg1, %c0_i32 : i32, i32, i32
  }
  func.func @transform_2(%arg0: i32, %arg1: i32, %arg2: i32) -> (i32, i32, i32) {
    %c0_i32 = arith.constant 0 : i32
    %c0_i32_0 = arith.constant 0 : i32
    return %arg0, %arg2, %c0_i32 : i32, i32, i32
  }
  func.func @transform_3(%arg0: i32, %arg1: i32, %arg2: i32) -> (i32, i32, i32) {
    %c0_i32 = arith.constant 0 : i32
    %c0_i32_0 = arith.constant 0 : i32
    return %arg0, %arg2, %c0_i32 : i32, i32, i32
  }
  func.func @transform_4(%arg0: i32, %arg1: i32, %arg2: i32) -> (i32, i32) {
    %c0_i32 = arith.constant 0 : i32
    %c0_i32_0 = arith.constant 0 : i32
    %c0_i32_1 = arith.constant 0 : i32
    return %c0_i32, %c0_i32_0 : i32, i32
  }
  func.func @transform_5(%arg0: i32, %arg1: i32, %arg2: i32) -> (i32, i32) {
    %c0_i32 = arith.constant 0 : i32
    %c0_i32_0 = arith.constant 0 : i32
    %c0_i32_1 = arith.constant 0 : i32
    return %c0_i32, %c0_i32_0 : i32, i32
  }
  func.func @transform_6(%arg0: i32, %arg1: i32, %arg2: i32) -> (i32, i32, i32) {
    %c0_i32 = arith.constant 0 : i32
    %c0_i32_0 = arith.constant 0 : i32
    return %arg0, %arg1, %c0_i32 : i32, i32, i32
  }
}

module attributes {stable_mosaic.version = 11 : i64} {
  func.func @_ln_qkv_kernel(%arg0: i32, %arg1: memref<16x32xbf16, #tpu.memory_space<vmem>>, %arg2: memref<1x32xf32, #tpu.memory_space<vmem>>, %arg3: memref<1x32xf32, #tpu.memory_space<vmem>>, %arg4: memref<32x96xbf16, #tpu.memory_space<vmem>>, %arg5: memref<1x96xf32, #tpu.memory_space<vmem>>, %arg6: memref<16x32xbf16, #tpu.memory_space<vmem>>, %arg7: memref<16x32xbf16, #tpu.memory_space<vmem>>, %arg8: memref<16x32xbf16, #tpu.memory_space<vmem>>) attributes {dimension_semantics = [#tpu.dimension_semantics<parallel>], iteration_bounds = array<i64: 1>, scalar_prefetch = 0 : i64, scratch_operands = 0 : i64, tpu.core_type = #tpu.core_type<tc>, window_params = [{transform_indices = @transform_0, window_bounds = array<i64: 16, 32>}, {pipeline_mode = #tpu.pipeline_mode<synchronous>, transform_indices = @transform_1, window_bounds = array<i64: 1, 32>}, {pipeline_mode = #tpu.pipeline_mode<synchronous>, transform_indices = @transform_2, window_bounds = array<i64: 1, 32>}, {pipeline_mode = #tpu.pipeline_mode<synchronous>, transform_indices = @transform_3, window_bounds = array<i64: 32, 96>}, {pipeline_mode = #tpu.pipeline_mode<synchronous>, transform_indices = @transform_4, window_bounds = array<i64: 1, 96>}, {transform_indices = @transform_5, window_bounds = array<i64: 16, 32>}, {transform_indices = @transform_6, window_bounds = array<i64: 16, 32>}, {transform_indices = @transform_7, window_bounds = array<i64: 16, 32>}]} {
    %c0 = arith.constant 0 : index
    %c0_0 = arith.constant 0 : index
    %0 = vector.load %arg1[%c0, %c0_0] : memref<16x32xbf16, #tpu.memory_space<vmem>>, vector<16x32xbf16>
    %c0_1 = arith.constant 0 : index
    %c0_2 = arith.constant 0 : index
    %1 = vector.load %arg2[%c0_1, %c0_2] : memref<1x32xf32, #tpu.memory_space<vmem>>, vector<1x32xf32>
    %c0_3 = arith.constant 0 : index
    %c0_4 = arith.constant 0 : index
    %2 = vector.load %arg3[%c0_3, %c0_4] : memref<1x32xf32, #tpu.memory_space<vmem>>, vector<1x32xf32>
    %3 = arith.extf %0 : vector<16x32xbf16> to vector<16x32xf32>
    %cst = arith.constant dense<0.000000e+00> : vector<16xf32>
    %4 = vector.multi_reduction <add>, %3, %cst [1] : vector<16x32xf32> to vector<16xf32>
    %5 = vector.shape_cast %4 : vector<16xf32> to vector<16x1xf32>
    %cst_5 = arith.constant 3.200000e+01 : f32
    %6 = vector.broadcast %cst_5 : f32 to vector<16x1xf32>
    %7 = arith.divf %5, %6 : vector<16x1xf32>
    %8 = vector.broadcast %7 : vector<16x1xf32> to vector<16x32xf32>
    %9 = arith.subf %3, %8 : vector<16x32xf32>
    %10 = arith.mulf %9, %9 : vector<16x32xf32>
    %cst_6 = arith.constant dense<0.000000e+00> : vector<16xf32>
    %11 = vector.multi_reduction <add>, %10, %cst_6 [1] : vector<16x32xf32> to vector<16xf32>
    %12 = vector.shape_cast %11 : vector<16xf32> to vector<16x1xf32>
    %cst_7 = arith.constant 3.200000e+01 : f32
    %13 = vector.broadcast %cst_7 : f32 to vector<16x1xf32>
    %14 = arith.divf %12, %13 : vector<16x1xf32>
    %15 = vector.broadcast %7 : vector<16x1xf32> to vector<16x32xf32>
    %16 = arith.subf %3, %15 : vector<16x32xf32>
    %cst_8 = arith.constant 9.99999974E-6 : f32
    %17 = vector.broadcast %cst_8 : f32 to vector<16x1xf32>
    %18 = arith.addf %14, %17 : vector<16x1xf32>
    %19 = math.rsqrt %18 : vector<16x1xf32>
    %20 = vector.broadcast %19 : vector<16x1xf32> to vector<16x32xf32>
    %21 = arith.mulf %16, %20 : vector<16x32xf32>
    %22 = vector.broadcast %1 : vector<1x32xf32> to vector<16x32xf32>
    %23 = arith.mulf %21, %22 : vector<16x32xf32>
    %24 = vector.broadcast %2 : vector<1x32xf32> to vector<16x32xf32>
    %25 = arith.addf %23, %24 : vector<16x32xf32>
    %26 = arith.truncf %25 : vector<16x32xf32> to vector<16x32xbf16>
    %c0_9 = arith.constant 0 : index
    %c0_10 = arith.constant 0 : index
    %27 = vector.load %arg4[%c0_9, %c0_10] : memref<32x96xbf16, #tpu.memory_space<vmem>>, vector<32x96xbf16>
    %cst_11 = arith.constant dense<0.000000e+00> : vector<16x96xf32>
    %28 = tpu.matmul %26, %27, %cst_11 {dimension_numbers = #tpu.dot_dimension_numbers<[1], [0], [0], [1], [0, 0, 1, 1], [], []>} : vector<16x32xbf16>, vector<32x96xbf16>, vector<16x96xf32> -> vector<16x96xf32>
    %c0_12 = arith.constant 0 : index
    %c0_13 = arith.constant 0 : index
    %29 = vector.load %arg5[%c0_12, %c0_13] : memref<1x96xf32, #tpu.memory_space<vmem>>, vector<1x96xf32>
    %30 = vector.broadcast %29 : vector<1x96xf32> to vector<16x96xf32>
    %31 = arith.addf %28, %30 : vector<16x96xf32>
    %32 = arith.truncf %31 : vector<16x96xf32> to vector<16x96xbf16>
    %33 = vector.extract_strided_slice %32 {offsets = [0, 0], sizes = [16, 32], strides = [1, 1]} : vector<16x96xbf16> to vector<16x32xbf16>
    %c0_14 = arith.constant 0 : index
    %c0_15 = arith.constant 0 : index
    %34 = vector.load %arg6[%c0_14, %c0_15] : memref<16x32xbf16, #tpu.memory_space<vmem>>, vector<16x32xbf16>
    tpu.vector_store %arg6[%c0_14, %c0_15], %33 {strides = array<i32>} : memref<16x32xbf16, #tpu.memory_space<vmem>>, vector<16x32xbf16>,
    %35 = vector.extract_strided_slice %32 {offsets = [0, 32], sizes = [16, 32], strides = [1, 1]} : vector<16x96xbf16> to vector<16x32xbf16>
    %c0_16 = arith.constant 0 : index
    %c0_17 = arith.constant 0 : index
    %36 = vector.load %arg7[%c0_16, %c0_17] : memref<16x32xbf16, #tpu.memory_space<vmem>>, vector<16x32xbf16>
    tpu.vector_store %arg7[%c0_16, %c0_17], %35 {strides = array<i32>} : memref<16x32xbf16, #tpu.memory_space<vmem>>, vector<16x32xbf16>,
    %37 = vector.extract_strided_slice %32 {offsets = [0, 64], sizes = [16, 32], strides = [1, 1]} : vector<16x96xbf16> to vector<16x32xbf16>
    %c0_18 = arith.constant 0 : index
    %c0_19 = arith.constant 0 : index
    %38 = vector.load %arg8[%c0_18, %c0_19] : memref<16x32xbf16, #tpu.memory_space<vmem>>, vector<16x32xbf16>
    tpu.vector_store %arg8[%c0_18, %c0_19], %37 {strides = array<i32>} : memref<16x32xbf16, #tpu.memory_space<vmem>>, vector<16x32xbf16>,
    return
  }
  func.func @transform_0(%arg0: i32) -> (i32, i32) {
    %c0_i32 = arith.constant 0 : i32
    %c0_i32_0 = arith.constant 0 : i32
    return %arg0, %c0_i32 : i32, i32
  }
  func.func @transform_1(%arg0: i32) -> (i32, i32) {
    %c0_i32 = arith.constant 0 : i32
    %c0_i32_0 = arith.constant 0 : i32
    %c0_i32_1 = arith.constant 0 : i32
    return %c0_i32, %c0_i32_0 : i32, i32
  }
  func.func @transform_2(%arg0: i32) -> (i32, i32) {
    %c0_i32 = arith.constant 0 : i32
    %c0_i32_0 = arith.constant 0 : i32
    %c0_i32_1 = arith.constant 0 : i32
    return %c0_i32, %c0_i32_0 : i32, i32
  }
  func.func @transform_3(%arg0: i32) -> (i32, i32) {
    %c0_i32 = arith.constant 0 : i32
    %c0_i32_0 = arith.constant 0 : i32
    %c0_i32_1 = arith.constant 0 : i32
    return %c0_i32, %c0_i32_0 : i32, i32
  }
  func.func @transform_4(%arg0: i32) -> (i32, i32) {
    %c0_i32 = arith.constant 0 : i32
    %c0_i32_0 = arith.constant 0 : i32
    %c0_i32_1 = arith.constant 0 : i32
    return %c0_i32, %c0_i32_0 : i32, i32
  }
  func.func @transform_5(%arg0: i32) -> (i32, i32) {
    %c0_i32 = arith.constant 0 : i32
    %c0_i32_0 = arith.constant 0 : i32
    return %arg0, %c0_i32 : i32, i32
  }
  func.func @transform_6(%arg0: i32) -> (i32, i32) {
    %c0_i32 = arith.constant 0 : i32
    %c0_i32_0 = arith.constant 0 : i32
    return %arg0, %c0_i32 : i32, i32
  }
  func.func @transform_7(%arg0: i32) -> (i32, i32) {
    %c0_i32 = arith.constant 0 : i32
    %c0_i32_0 = arith.constant 0 : i32
    return %arg0, %c0_i32 : i32, i32
  }
}

module attributes {stable_mosaic.version = 11 : i64} {
  func.func @_ln_linear_kernel(%arg0: i32, %arg1: memref<16x32xbf16, #tpu.memory_space<vmem>>, %arg2: memref<1x32xf32, #tpu.memory_space<vmem>>, %arg3: memref<1x32xf32, #tpu.memory_space<vmem>>, %arg4: memref<32x32xbf16, #tpu.memory_space<vmem>>, %arg5: memref<1x32xf32, #tpu.memory_space<vmem>>, %arg6: memref<16x32xbf16, #tpu.memory_space<vmem>>) attributes {dimension_semantics = [#tpu.dimension_semantics<parallel>], iteration_bounds = array<i64: 1>, scalar_prefetch = 0 : i64, scratch_operands = 0 : i64, tpu.core_type = #tpu.core_type<tc>, window_params = [{transform_indices = @transform_0, window_bounds = array<i64: 16, 32>}, {pipeline_mode = #tpu.pipeline_mode<synchronous>, transform_indices = @transform_1, window_bounds = array<i64: 1, 32>}, {pipeline_mode = #tpu.pipeline_mode<synchronous>, transform_indices = @transform_2, window_bounds = array<i64: 1, 32>}, {pipeline_mode = #tpu.pipeline_mode<synchronous>, transform_indices = @transform_3, window_bounds = array<i64: 32, 32>}, {pipeline_mode = #tpu.pipeline_mode<synchronous>, transform_indices = @transform_4, window_bounds = array<i64: 1, 32>}, {transform_indices = @transform_5, window_bounds = array<i64: 16, 32>}]} {
    %c0 = arith.constant 0 : index
    %c0_0 = arith.constant 0 : index
    %0 = vector.load %arg1[%c0, %c0_0] : memref<16x32xbf16, #tpu.memory_space<vmem>>, vector<16x32xbf16>
    %c0_1 = arith.constant 0 : index
    %c0_2 = arith.constant 0 : index
    %1 = vector.load %arg2[%c0_1, %c0_2] : memref<1x32xf32, #tpu.memory_space<vmem>>, vector<1x32xf32>
    %c0_3 = arith.constant 0 : index
    %c0_4 = arith.constant 0 : index
    %2 = vector.load %arg3[%c0_3, %c0_4] : memref<1x32xf32, #tpu.memory_space<vmem>>, vector<1x32xf32>
    %3 = arith.extf %0 : vector<16x32xbf16> to vector<16x32xf32>
    %cst = arith.constant dense<0.000000e+00> : vector<16xf32>
    %4 = vector.multi_reduction <add>, %3, %cst [1] : vector<16x32xf32> to vector<16xf32>
    %5 = vector.shape_cast %4 : vector<16xf32> to vector<16x1xf32>
    %cst_5 = arith.constant 3.200000e+01 : f32
    %6 = vector.broadcast %cst_5 : f32 to vector<16x1xf32>
    %7 = arith.divf %5, %6 : vector<16x1xf32>
    %8 = vector.broadcast %7 : vector<16x1xf32> to vector<16x32xf32>
    %9 = arith.subf %3, %8 : vector<16x32xf32>
    %10 = arith.mulf %9, %9 : vector<16x32xf32>
    %cst_6 = arith.constant dense<0.000000e+00> : vector<16xf32>
    %11 = vector.multi_reduction <add>, %10, %cst_6 [1] : vector<16x32xf32> to vector<16xf32>
    %12 = vector.shape_cast %11 : vector<16xf32> to vector<16x1xf32>
    %cst_7 = arith.constant 3.200000e+01 : f32
    %13 = vector.broadcast %cst_7 : f32 to vector<16x1xf32>
    %14 = arith.divf %12, %13 : vector<16x1xf32>
    %15 = vector.broadcast %7 : vector<16x1xf32> to vector<16x32xf32>
    %16 = arith.subf %3, %15 : vector<16x32xf32>
    %cst_8 = arith.constant 9.99999974E-6 : f32
    %17 = vector.broadcast %cst_8 : f32 to vector<16x1xf32>
    %18 = arith.addf %14, %17 : vector<16x1xf32>
    %19 = math.rsqrt %18 : vector<16x1xf32>
    %20 = vector.broadcast %19 : vector<16x1xf32> to vector<16x32xf32>
    %21 = arith.mulf %16, %20 : vector<16x32xf32>
    %22 = vector.broadcast %1 : vector<1x32xf32> to vector<16x32xf32>
    %23 = arith.mulf %21, %22 : vector<16x32xf32>
    %24 = vector.broadcast %2 : vector<1x32xf32> to vector<16x32xf32>
    %25 = arith.addf %23, %24 : vector<16x32xf32>
    %26 = arith.truncf %25 : vector<16x32xf32> to vector<16x32xbf16>
    %c0_9 = arith.constant 0 : index
    %c0_10 = arith.constant 0 : index
    %27 = vector.load %arg4[%c0_9, %c0_10] : memref<32x32xbf16, #tpu.memory_space<vmem>>, vector<32x32xbf16>
    %cst_11 = arith.constant dense<0.000000e+00> : vector<16x32xf32>
    %28 = tpu.matmul %26, %27, %cst_11 {dimension_numbers = #tpu.dot_dimension_numbers<[1], [0], [0], [1], [0, 0, 1, 1], [], []>} : vector<16x32xbf16>, vector<32x32xbf16>, vector<16x32xf32> -> vector<16x32xf32>
    %c0_12 = arith.constant 0 : index
    %c0_13 = arith.constant 0 : index
    %29 = vector.load %arg5[%c0_12, %c0_13] : memref<1x32xf32, #tpu.memory_space<vmem>>, vector<1x32xf32>
    %30 = vector.broadcast %29 : vector<1x32xf32> to vector<16x32xf32>
    %31 = arith.addf %28, %30 : vector<16x32xf32>
    %32 = arith.truncf %31 : vector<16x32xf32> to vector<16x32xbf16>
    %c0_14 = arith.constant 0 : index
    %c0_15 = arith.constant 0 : index
    %33 = vector.load %arg6[%c0_14, %c0_15] : memref<16x32xbf16, #tpu.memory_space<vmem>>, vector<16x32xbf16>
    tpu.vector_store %arg6[%c0_14, %c0_15], %32 {strides = array<i32>} : memref<16x32xbf16, #tpu.memory_space<vmem>>, vector<16x32xbf16>,
    return
  }
  func.func @transform_0(%arg0: i32) -> (i32, i32) {
    %c0_i32 = arith.constant 0 : i32
    %c0_i32_0 = arith.constant 0 : i32
    return %arg0, %c0_i32 : i32, i32
  }
  func.func @transform_1(%arg0: i32) -> (i32, i32) {
    %c0_i32 = arith.constant 0 : i32
    %c0_i32_0 = arith.constant 0 : i32
    %c0_i32_1 = arith.constant 0 : i32
    return %c0_i32, %c0_i32_0 : i32, i32
  }
  func.func @transform_2(%arg0: i32) -> (i32, i32) {
    %c0_i32 = arith.constant 0 : i32
    %c0_i32_0 = arith.constant 0 : i32
    %c0_i32_1 = arith.constant 0 : i32
    return %c0_i32, %c0_i32_0 : i32, i32
  }
  func.func @transform_3(%arg0: i32) -> (i32, i32) {
    %c0_i32 = arith.constant 0 : i32
    %c0_i32_0 = arith.constant 0 : i32
    %c0_i32_1 = arith.constant 0 : i32
    return %c0_i32, %c0_i32_0 : i32, i32
  }
  func.func @transform_4(%arg0: i32) -> (i32, i32) {
    %c0_i32 = arith.constant 0 : i32
    %c0_i32_0 = arith.constant 0 : i32
    %c0_i32_1 = arith.constant 0 : i32
    return %c0_i32, %c0_i32_0 : i32, i32
  }
  func.func @transform_5(%arg0: i32) -> (i32, i32) {
    %c0_i32 = arith.constant 0 : i32
    %c0_i32_0 = arith.constant 0 : i32
    return %arg0, %c0_i32 : i32, i32
  }
}

module attributes {stable_mosaic.version = 11 : i64} {
  func.func @_kv_linear_kernel(%arg0: i32, %arg1: memref<16x32xbf16, #tpu.memory_space<vmem>>, %arg2: memref<32x64xbf16, #tpu.memory_space<vmem>>, %arg3: memref<1x64xf32, #tpu.memory_space<vmem>>, %arg4: memref<16x32xbf16, #tpu.memory_space<vmem>>, %arg5: memref<16x32xbf16, #tpu.memory_space<vmem>>) attributes {dimension_semantics = [#tpu.dimension_semantics<parallel>], iteration_bounds = array<i64: 1>, scalar_prefetch = 0 : i64, scratch_operands = 0 : i64, tpu.core_type = #tpu.core_type<tc>, window_params = [{transform_indices = @transform_0, window_bounds = array<i64: 16, 32>}, {pipeline_mode = #tpu.pipeline_mode<synchronous>, transform_indices = @transform_1, window_bounds = array<i64: 32, 64>}, {pipeline_mode = #tpu.pipeline_mode<synchronous>, transform_indices = @transform_2, window_bounds = array<i64: 1, 64>}, {transform_indices = @transform_3, window_bounds = array<i64: 16, 32>}, {transform_indices = @transform_4, window_bounds = array<i64: 16, 32>}]} {
    %c0 = arith.constant 0 : index
    %c0_0 = arith.constant 0 : index
    %0 = vector.load %arg1[%c0, %c0_0] : memref<16x32xbf16, #tpu.memory_space<vmem>>, vector<16x32xbf16>
    %c0_1 = arith.constant 0 : index
    %c0_2 = arith.constant 0 : index
    %1 = vector.load %arg2[%c0_1, %c0_2] : memref<32x64xbf16, #tpu.memory_space<vmem>>, vector<32x64xbf16>
    %cst = arith.constant dense<0.000000e+00> : vector<16x64xf32>
    %2 = tpu.matmul %0, %1, %cst {dimension_numbers = #tpu.dot_dimension_numbers<[1], [0], [0], [1], [0, 0, 1, 1], [], []>} : vector<16x32xbf16>, vector<32x64xbf16>, vector<16x64xf32> -> vector<16x64xf32>
    %c0_3 = arith.constant 0 : index
    %c0_4 = arith.constant 0 : index
    %3 = vector.load %arg3[%c0_3, %c0_4] : memref<1x64xf32, #tpu.memory_space<vmem>>, vector<1x64xf32>
    %4 = vector.broadcast %3 : vector<1x64xf32> to vector<16x64xf32>
    %5 = arith.addf %2, %4 : vector<16x64xf32>
    %6 = arith.truncf %5 : vector<16x64xf32> to vector<16x64xbf16>
    %7 = vector.extract_strided_slice %6 {offsets = [0, 0], sizes = [16, 32], strides = [1, 1]} : vector<16x64xbf16> to vector<16x32xbf16>
    %c0_5 = arith.constant 0 : index
    %c0_6 = arith.constant 0 : index
    %8 = vector.load %arg4[%c0_5, %c0_6] : memref<16x32xbf16, #tpu.memory_space<vmem>>, vector<16x32xbf16>
    tpu.vector_store %arg4[%c0_5, %c0_6], %7 {strides = array<i32>} : memref<16x32xbf16, #tpu.memory_space<vmem>>, vector<16x32xbf16>,
    %9 = vector.extract_strided_slice %6 {offsets = [0, 32], sizes = [16, 32], strides = [1, 1]} : vector<16x64xbf16> to vector<16x32xbf16>
    %c0_7 = arith.constant 0 : index
    %c0_8 = arith.constant 0 : index
    %10 = vector.load %arg5[%c0_7, %c0_8] : memref<16x32xbf16, #tpu.memory_space<vmem>>, vector<16x32xbf16>
    tpu.vector_store %arg5[%c0_7, %c0_8], %9 {strides = array<i32>} : memref<16x32xbf16, #tpu.memory_space<vmem>>, vector<16x32xbf16>,
    return
  }
  func.func @transform_0(%arg0: i32) -> (i32, i32) {
    %c0_i32 = arith.constant 0 : i32
    %c0_i32_0 = arith.constant 0 : i32
    return %arg0, %c0_i32 : i32, i32
  }
  func.func @transform_1(%arg0: i32) -> (i32, i32) {
    %c0_i32 = arith.constant 0 : i32
    %c0_i32_0 = arith.constant 0 : i32
    %c0_i32_1 = arith.constant 0 : i32
    return %c0_i32, %c0_i32_0 : i32, i32
  }
  func.func @transform_2(%arg0: i32) -> (i32, i32) {
    %c0_i32 = arith.constant 0 : i32
    %c0_i32_0 = arith.constant 0 : i32
    %c0_i32_1 = arith.constant 0 : i32
    return %c0_i32, %c0_i32_0 : i32, i32
  }
  func.func @transform_3(%arg0: i32) -> (i32, i32) {
    %c0_i32 = arith.constant 0 : i32
    %c0_i32_0 = arith.constant 0 : i32
    return %arg0, %c0_i32 : i32, i32
  }
  func.func @transform_4(%arg0: i32) -> (i32, i32) {
    %c0_i32 = arith.constant 0 : i32
    %c0_i32_0 = arith.constant 0 : i32
    return %arg0, %c0_i32 : i32, i32
  }
}

module attributes {stable_mosaic.version = 11 : i64} {
  func.func @_ffn_kernel(%arg0: i32, %arg1: memref<16x32xbf16, #tpu.memory_space<vmem>>, %arg2: memref<1x32xf32, #tpu.memory_space<vmem>>, %arg3: memref<1x32xf32, #tpu.memory_space<vmem>>, %arg4: memref<32x64xbf16, #tpu.memory_space<vmem>>, %arg5: memref<1x64xf32, #tpu.memory_space<vmem>>, %arg6: memref<64x32xbf16, #tpu.memory_space<vmem>>, %arg7: memref<1x32xf32, #tpu.memory_space<vmem>>, %arg8: memref<16x32xbf16, #tpu.memory_space<vmem>>) attributes {dimension_semantics = [#tpu.dimension_semantics<parallel>], iteration_bounds = array<i64: 1>, scalar_prefetch = 0 : i64, scratch_operands = 0 : i64, tpu.core_type = #tpu.core_type<tc>, window_params = [{transform_indices = @transform_0, window_bounds = array<i64: 16, 32>}, {pipeline_mode = #tpu.pipeline_mode<synchronous>, transform_indices = @transform_1, window_bounds = array<i64: 1, 32>}, {pipeline_mode = #tpu.pipeline_mode<synchronous>, transform_indices = @transform_2, window_bounds = array<i64: 1, 32>}, {pipeline_mode = #tpu.pipeline_mode<synchronous>, transform_indices = @transform_3, window_bounds = array<i64: 32, 64>}, {pipeline_mode = #tpu.pipeline_mode<synchronous>, transform_indices = @transform_4, window_bounds = array<i64: 1, 64>}, {pipeline_mode = #tpu.pipeline_mode<synchronous>, transform_indices = @transform_5, window_bounds = array<i64: 64, 32>}, {pipeline_mode = #tpu.pipeline_mode<synchronous>, transform_indices = @transform_6, window_bounds = array<i64: 1, 32>}, {transform_indices = @transform_7, window_bounds = array<i64: 16, 32>}]} {
    %c0 = arith.constant 0 : index
    %c0_0 = arith.constant 0 : index
    %0 = vector.load %arg1[%c0, %c0_0] : memref<16x32xbf16, #tpu.memory_space<vmem>>, vector<16x32xbf16>
    %c0_1 = arith.constant 0 : index
    %c0_2 = arith.constant 0 : index
    %1 = vector.load %arg2[%c0_1, %c0_2] : memref<1x32xf32, #tpu.memory_space<vmem>>, vector<1x32xf32>
    %c0_3 = arith.constant 0 : index
    %c0_4 = arith.constant 0 : index
    %2 = vector.load %arg3[%c0_3, %c0_4] : memref<1x32xf32, #tpu.memory_space<vmem>>, vector<1x32xf32>
    %3 = arith.extf %0 : vector<16x32xbf16> to vector<16x32xf32>
    %cst = arith.constant dense<0.000000e+00> : vector<16xf32>
    %4 = vector.multi_reduction <add>, %3, %cst [1] : vector<16x32xf32> to vector<16xf32>
    %5 = vector.shape_cast %4 : vector<16xf32> to vector<16x1xf32>
    %cst_5 = arith.constant 3.200000e+01 : f32
    %6 = vector.broadcast %cst_5 : f32 to vector<16x1xf32>
    %7 = arith.divf %5, %6 : vector<16x1xf32>
    %8 = vector.broadcast %7 : vector<16x1xf32> to vector<16x32xf32>
    %9 = arith.subf %3, %8 : vector<16x32xf32>
    %10 = arith.mulf %9, %9 : vector<16x32xf32>
    %cst_6 = arith.constant dense<0.000000e+00> : vector<16xf32>
    %11 = vector.multi_reduction <add>, %10, %cst_6 [1] : vector<16x32xf32> to vector<16xf32>
    %12 = vector.shape_cast %11 : vector<16xf32> to vector<16x1xf32>
    %cst_7 = arith.constant 3.200000e+01 : f32
    %13 = vector.broadcast %cst_7 : f32 to vector<16x1xf32>
    %14 = arith.divf %12, %13 : vector<16x1xf32>
    %15 = vector.broadcast %7 : vector<16x1xf32> to vector<16x32xf32>
    %16 = arith.subf %3, %15 : vector<16x32xf32>
    %cst_8 = arith.constant 9.99999974E-6 : f32
    %17 = vector.broadcast %cst_8 : f32 to vector<16x1xf32>
    %18 = arith.addf %14, %17 : vector<16x1xf32>
    %19 = math.rsqrt %18 : vector<16x1xf32>
    %20 = vector.broadcast %19 : vector<16x1xf32> to vector<16x32xf32>
    %21 = arith.mulf %16, %20 : vector<16x32xf32>
    %22 = vector.broadcast %1 : vector<1x32xf32> to vector<16x32xf32>
    %23 = arith.mulf %21, %22 : vector<16x32xf32>
    %24 = vector.broadcast %2 : vector<1x32xf32> to vector<16x32xf32>
    %25 = arith.addf %23, %24 : vector<16x32xf32>
    %26 = arith.truncf %25 : vector<16x32xf32> to vector<16x32xbf16>
    %c0_9 = arith.constant 0 : index
    %c0_10 = arith.constant 0 : index
    %27 = vector.load %arg4[%c0_9, %c0_10] : memref<32x64xbf16, #tpu.memory_space<vmem>>, vector<32x64xbf16>
    %cst_11 = arith.constant dense<0.000000e+00> : vector<16x64xf32>
    %28 = tpu.matmul %26, %27, %cst_11 {dimension_numbers = #tpu.dot_dimension_numbers<[1], [0], [0], [1], [0, 0, 1, 1], [], []>} : vector<16x32xbf16>, vector<32x64xbf16>, vector<16x64xf32> -> vector<16x64xf32>
    %c0_12 = arith.constant 0 : index
    %c0_13 = arith.constant 0 : index
    %29 = vector.load %arg5[%c0_12, %c0_13] : memref<1x64xf32, #tpu.memory_space<vmem>>, vector<1x64xf32>
    %30 = vector.broadcast %29 : vector<1x64xf32> to vector<16x64xf32>
    %31 = arith.addf %28, %30 : vector<16x64xf32>
    %cst_14 = arith.constant 0.000000e+00 : f32
    %32 = vector.broadcast %cst_14 : f32 to vector<16x64xf32>
    %33 = arith.maximumf %31, %32 : vector<16x64xf32>
    %34 = arith.truncf %33 : vector<16x64xf32> to vector<16x64xbf16>
    %c0_15 = arith.constant 0 : index
    %c0_16 = arith.constant 0 : index
    %35 = vector.load %arg6[%c0_15, %c0_16] : memref<64x32xbf16, #tpu.memory_space<vmem>>, vector<64x32xbf16>
    %cst_17 = arith.constant dense<0.000000e+00> : vector<16x32xf32>
    %36 = tpu.matmul %34, %35, %cst_17 {dimension_numbers = #tpu.dot_dimension_numbers<[1], [0], [0], [1], [0, 0, 1, 1], [], []>} : vector<16x64xbf16>, vector<64x32xbf16>, vector<16x32xf32> -> vector<16x32xf32>
    %c0_18 = arith.constant 0 : index
    %c0_19 = arith.constant 0 : index
    %37 = vector.load %arg7[%c0_18, %c0_19] : memref<1x32xf32, #tpu.memory_space<vmem>>, vector<1x32xf32>
    %38 = vector.broadcast %37 : vector<1x32xf32> to vector<16x32xf32>
    %39 = arith.addf %36, %38 : vector<16x32xf32>
    %40 = arith.extf %0 : vector<16x32xbf16> to vector<16x32xf32>
    %41 = arith.addf %40, %39 : vector<16x32xf32>
    %42 = arith.truncf %41 : vector<16x32xf32> to vector<16x32xbf16>
    %c0_20 = arith.constant 0 : index
    %c0_21 = arith.constant 0 : index
    %43 = vector.load %arg8[%c0_20, %c0_21] : memref<16x32xbf16, #tpu.memory_space<vmem>>, vector<16x32xbf16>
    tpu.vector_store %arg8[%c0_20, %c0_21], %42 {strides = array<i32>} : memref<16x32xbf16, #tpu.memory_space<vmem>>, vector<16x32xbf16>,
    return
  }
  func.func @transform_0(%arg0: i32) -> (i32, i32) {
    %c0_i32 = arith.constant 0 : i32
    %c0_i32_0 = arith.constant 0 : i32
    return %arg0, %c0_i32 : i32, i32
  }
  func.func @transform_1(%arg0: i32) -> (i32, i32) {
    %c0_i32 = arith.constant 0 : i32
    %c0_i32_0 = arith.constant 0 : i32
    %c0_i32_1 = arith.constant 0 : i32
    return %c0_i32, %c0_i32_0 : i32, i32
  }
  func.func @transform_2(%arg0: i32) -> (i32, i32) {
    %c0_i32 = arith.constant 0 : i32
    %c0_i32_0 = arith.constant 0 : i32
    %c0_i32_1 = arith.constant 0 : i32
    return %c0_i32, %c0_i32_0 : i32, i32
  }
  func.func @transform_3(%arg0: i32) -> (i32, i32) {
    %c0_i32 = arith.constant 0 : i32
    %c0_i32_0 = arith.constant 0 : i32
    %c0_i32_1 = arith.constant 0 : i32
    return %c0_i32, %c0_i32_0 : i32, i32
  }
  func.func @transform_4(%arg0: i32) -> (i32, i32) {
    %c0_i32 = arith.constant 0 : i32
    %c0_i32_0 = arith.constant 0 : i32
    %c0_i32_1 = arith.constant 0 : i32
    return %c0_i32, %c0_i32_0 : i32, i32
  }
  func.func @transform_5(%arg0: i32) -> (i32, i32) {
    %c0_i32 = arith.constant 0 : i32
    %c0_i32_0 = arith.constant 0 : i32
    %c0_i32_1 = arith.constant 0 : i32
    return %c0_i32, %c0_i32_0 : i32, i32
  }
  func.func @transform_6(%arg0: i32) -> (i32, i32) {
    %c0_i32 = arith.constant 0 : i32
    %c0_i32_0 = arith.constant 0 : i32
    %c0_i32_1 = arith.constant 0 : i32
    return %c0_i32, %c0_i32_0 : i32, i32
  }
  func.func @transform_7(%arg0: i32) -> (i32, i32) {
    %c0_i32 = arith.constant 0 : i32
    %c0_i32_0 = arith.constant 0 : i32
    return %arg0, %c0_i32 : i32, i32
  }
}

module attributes {stable_mosaic.version = 11 : i64} {
  func.func @_cross_attn_kernel(%arg0: i32, %arg1: i32, %arg2: i32, %arg3: memref<1x8x32xbf16, #tpu.memory_space<vmem>>, %arg4: memref<1x8x32xbf16, #tpu.memory_space<vmem>>, %arg5: memref<1x8x32xbf16, #tpu.memory_space<vmem>>, %arg6: memref<1x8x32xbf16, #tpu.memory_space<vmem>>, %arg7: memref<1x1x8xf32, #tpu.memory_space<vmem>>, %arg8: memref<32x32xbf16, #tpu.memory_space<vmem>>, %arg9: memref<1x32xf32, #tpu.memory_space<vmem>>, %arg10: memref<1x8x32xbf16, #tpu.memory_space<vmem>>, %arg11: memref<4x8x8xf32, #tpu.memory_space<vmem>>, %arg12: memref<4x8x1xf32, #tpu.memory_space<vmem>>, %arg13: memref<4x8x1xf32, #tpu.memory_space<vmem>>) attributes {dimension_semantics = [#tpu.dimension_semantics<parallel>, #tpu.dimension_semantics<parallel>, #tpu.dimension_semantics<arbitrary>], iteration_bounds = array<i64: 2, 1, 1>, scalar_prefetch = 0 : i64, scratch_operands = 3 : i64, tpu.core_type = #tpu.core_type<tc>, window_params = [{transform_indices = @transform_0, window_bounds = array<i64: 1, 8, 32>}, {transform_indices = @transform_1, window_bounds = array<i64: 1, 8, 32>}, {transform_indices = @transform_2, window_bounds = array<i64: 1, 8, 32>}, {transform_indices = @transform_3, window_bounds = array<i64: 1, 8, 32>}, {transform_indices = @transform_4, window_bounds = array<i64: 1, 1, 8>}, {pipeline_mode = #tpu.pipeline_mode<synchronous>, transform_indices = @transform_5, window_bounds = array<i64: 32, 32>}, {pipeline_mode = #tpu.pipeline_mode<synchronous>, transform_indices = @transform_6, window_bounds = array<i64: 1, 32>}, {transform_indices = @transform_7, window_bounds = array<i64: 1, 8, 32>}]} {
    %c0_i32 = arith.constant 0 : i32
    %0 = arith.cmpi eq, %arg2, %c0_i32 : i32
    %1 = arith.extui %0 : i1 to i32
    %c0_i32_0 = arith.constant 0 : i32
    %2 = arith.cmpi ne, %1, %c0_i32_0 : i32
    scf.if %2 {
      %cst_131 = arith.constant 0.000000e+00 : f32
      %190 = vector.broadcast %cst_131 : f32 to vector<4x8x8xf32>
      %c0_132 = arith.constant 0 : index
      %c0_133 = arith.constant 0 : index
      %c0_134 = arith.constant 0 : index
      %191 = vector.load %arg11[%c0_132, %c0_133, %c0_134] : memref<4x8x8xf32, #tpu.memory_space<vmem>>, vector<4x8x8xf32>
      tpu.vector_store %arg11[%c0_132, %c0_133, %c0_134], %190 {strides = array<i32>} : memref<4x8x8xf32, #tpu.memory_space<vmem>>, vector<4x8x8xf32>,
      %cst_135 = arith.constant -1.000000e+30 : f32
      %192 = vector.broadcast %cst_135 : f32 to vector<4x8x1xf32>
      %c0_136 = arith.constant 0 : index
      %c0_137 = arith.constant 0 : index
      %c0_138 = arith.constant 0 : index
      %193 = vector.load %arg12[%c0_136, %c0_137, %c0_138] : memref<4x8x1xf32, #tpu.memory_space<vmem>>, vector<4x8x1xf32>
      tpu.vector_store %arg12[%c0_136, %c0_137, %c0_138], %192 {strides = array<i32>} : memref<4x8x1xf32, #tpu.memory_space<vmem>>, vector<4x8x1xf32>,
      %cst_139 = arith.constant 0.000000e+00 : f32
      %194 = vector.broadcast %cst_139 : f32 to vector<4x8x1xf32>
      %c0_140 = arith.constant 0 : index
      %c0_141 = arith.constant 0 : index
      %c0_142 = arith.constant 0 : index
      %195 = vector.load %arg13[%c0_140, %c0_141, %c0_142] : memref<4x8x1xf32, #tpu.memory_space<vmem>>, vector<4x8x1xf32>
      tpu.vector_store %arg13[%c0_140, %c0_141, %c0_142], %194 {strides = array<i32>} : memref<4x8x1xf32, #tpu.memory_space<vmem>>, vector<4x8x1xf32>,
    } else {
    }
    %c0 = arith.constant 0 : index
    %c0_1 = arith.constant 0 : index
    %c0_2 = arith.constant 0 : index
    %3 = vector.load %arg7[%c0, %c0_1, %c0_2] : memref<1x1x8xf32, #tpu.memory_space<vmem>>, vector<1x1x8xf32>
    %4 = vector.shape_cast %3 : vector<1x1x8xf32> to vector<1x8xf32>
    %cst = arith.constant 0.000000e+00 : f32
    %5 = vector.broadcast %cst : f32 to vector<1x8xf32>
    %6 = arith.cmpf one, %4, %5 : vector<1x8xf32>
    %c0_3 = arith.constant 0 : index
    %c0_4 = arith.constant 0 : index
    %c0_5 = arith.constant 0 : index
    %7 = vector.load %arg4[%c0_3, %c0_4, %c0_5] : memref<1x8x32xbf16, #tpu.memory_space<vmem>>, vector<1x8x8xbf16>
    %8 = vector.shape_cast %7 : vector<1x8x8xbf16> to vector<8x8xbf16>
    %c0_6 = arith.constant 0 : index
    %c0_7 = arith.constant 0 : index
    %c0_8 = arith.constant 0 : index
    %9 = vector.load %arg5[%c0_6, %c0_7, %c0_8] : memref<1x8x32xbf16, #tpu.memory_space<vmem>>, vector<1x8x8xbf16>
    %10 = vector.shape_cast %9 : vector<1x8x8xbf16> to vector<8x8xbf16>
    %c0_9 = arith.constant 0 : index
    %c0_10 = arith.constant 0 : index
    %c0_11 = arith.constant 0 : index
    %11 = vector.load %arg6[%c0_9, %c0_10, %c0_11] : memref<1x8x32xbf16, #tpu.memory_space<vmem>>, vector<1x8x8xbf16>
    %12 = vector.shape_cast %11 : vector<1x8x8xbf16> to vector<8x8xbf16>
    %cst_12 = arith.constant dense<0.000000e+00> : vector<8x8xf32>
    %13 = tpu.matmul %8, %10, %cst_12 {dimension_numbers = #tpu.dot_dimension_numbers<[1], [1], [0], [0], [0, 0, 1, 0], [], []>} : vector<8x8xbf16>, vector<8x8xbf16>, vector<8x8xf32> -> vector<8x8xf32>
    %cst_13 = arith.constant 0.353553385 : f32
    %14 = vector.broadcast %cst_13 : f32 to vector<8x8xf32>
    %15 = arith.mulf %13, %14 : vector<8x8xf32>
    %cst_14 = arith.constant -1.000000e+30 : f32
    %16 = vector.shape_cast %6 : vector<1x8xi1> to vector<1x8xi1>
    %17 = vector.broadcast %16 : vector<1x8xi1> to vector<8x8xi1>
    %18 = vector.broadcast %cst_14 : f32 to vector<8x8xf32>
    %19 = arith.select %17, %15, %18 : vector<8x8xi1>, vector<8x8xf32>
    %c0_15 = arith.constant 0 : index
    %c0_16 = arith.constant 0 : index
    %c0_17 = arith.constant 0 : index
    %20 = vector.load %arg12[%c0_15, %c0_16, %c0_17] : memref<4x8x1xf32, #tpu.memory_space<vmem>>, vector<1x8x1xf32>
    %21 = vector.shape_cast %20 : vector<1x8x1xf32> to vector<8x1xf32>
    %cst_18 = arith.constant dense<0xFF800000> : vector<8xf32>
    %22 = vector.multi_reduction <maximumf>, %19, %cst_18 [1] : vector<8x8xf32> to vector<8xf32>
    %23 = vector.shape_cast %22 : vector<8xf32> to vector<8x1xf32>
    %24 = arith.maximumf %21, %23 : vector<8x1xf32>
    %25 = arith.subf %21, %24 : vector<8x1xf32>
    %26 = math.exp %25 : vector<8x1xf32>
    %27 = vector.broadcast %24 : vector<8x1xf32> to vector<8x8xf32>
    %28 = arith.subf %19, %27 : vector<8x8xf32>
    %29 = math.exp %28 : vector<8x8xf32>
    %c0_19 = arith.constant 0 : index
    %c0_20 = arith.constant 0 : index
    %c0_21 = arith.constant 0 : index
    %30 = vector.load %arg13[%c0_19, %c0_20, %c0_21] : memref<4x8x1xf32, #tpu.memory_space<vmem>>, vector<1x8x1xf32>
    %31 = vector.shape_cast %30 : vector<1x8x1xf32> to vector<8x1xf32>
    %32 = arith.mulf %26, %31 : vector<8x1xf32>
    %cst_22 = arith.constant dense<0.000000e+00> : vector<8xf32>
    %33 = vector.multi_reduction <add>, %29, %cst_22 [1] : vector<8x8xf32> to vector<8xf32>
    %34 = vector.shape_cast %33 : vector<8xf32> to vector<8x1xf32>
    %35 = arith.addf %32, %34 : vector<8x1xf32>
    %c0_23 = arith.constant 0 : index
    %c0_24 = arith.constant 0 : index
    %c0_25 = arith.constant 0 : index
    %36 = vector.load %arg13[%c0_23, %c0_24, %c0_25] : memref<4x8x1xf32, #tpu.memory_space<vmem>>, vector<1x8x1xf32>
    %37 = vector.shape_cast %36 : vector<1x8x1xf32> to vector<8x1xf32>
    %38 = vector.shape_cast %35 : vector<8x1xf32> to vector<1x8x1xf32>
    tpu.vector_store %arg13[%c0_23, %c0_24, %c0_25], %38 {strides = array<i32>} : memref<4x8x1xf32, #tpu.memory_space<vmem>>, vector<1x8x1xf32>,
    %c0_26 = arith.constant 0 : index
    %c0_27 = arith.constant 0 : index
    %c0_28 = arith.constant 0 : index
    %39 = vector.load %arg11[%c0_26, %c0_27, %c0_28] : memref<4x8x8xf32, #tpu.memory_space<vmem>>, vector<1x8x8xf32>
    %40 = vector.shape_cast %39 : vector<1x8x8xf32> to vector<8x8xf32>
    %41 = vector.broadcast %26 : vector<8x1xf32> to vector<8x8xf32>
    %42 = arith.mulf %41, %40 : vector<8x8xf32>
    %43 = arith.truncf %29 : vector<8x8xf32> to vector<8x8xbf16>
    %cst_29 = arith.constant dense<0.000000e+00> : vector<8x8xf32>
    %44 = tpu.matmul %43, %12, %cst_29 {dimension_numbers = #tpu.dot_dimension_numbers<[1], [0], [0], [1], [0, 0, 1, 1], [], []>} : vector<8x8xbf16>, vector<8x8xbf16>, vector<8x8xf32> -> vector<8x8xf32>
    %45 = arith.addf %42, %44 : vector<8x8xf32>
    %c0_30 = arith.constant 0 : index
    %c0_31 = arith.constant 0 : index
    %c0_32 = arith.constant 0 : index
    %46 = vector.load %arg11[%c0_30, %c0_31, %c0_32] : memref<4x8x8xf32, #tpu.memory_space<vmem>>, vector<1x8x8xf32>
    %47 = vector.shape_cast %46 : vector<1x8x8xf32> to vector<8x8xf32>
    %48 = vector.shape_cast %45 : vector<8x8xf32> to vector<1x8x8xf32>
    tpu.vector_store %arg11[%c0_30, %c0_31, %c0_32], %48 {strides = array<i32>} : memref<4x8x8xf32, #tpu.memory_space<vmem>>, vector<1x8x8xf32>,
    %c0_33 = arith.constant 0 : index
    %c0_34 = arith.constant 0 : index
    %c0_35 = arith.constant 0 : index
    %49 = vector.load %arg12[%c0_33, %c0_34, %c0_35] : memref<4x8x1xf32, #tpu.memory_space<vmem>>, vector<1x8x1xf32>
    %50 = vector.shape_cast %49 : vector<1x8x1xf32> to vector<8x1xf32>
    %51 = vector.shape_cast %24 : vector<8x1xf32> to vector<1x8x1xf32>
    tpu.vector_store %arg12[%c0_33, %c0_34, %c0_35], %51 {strides = array<i32>} : memref<4x8x1xf32, #tpu.memory_space<vmem>>, vector<1x8x1xf32>,
    %c0_36 = arith.constant 0 : index
    %c0_37 = arith.constant 0 : index
    %c8 = arith.constant 8 : index
    %52 = vector.load %arg4[%c0_36, %c0_37, %c8] : memref<1x8x32xbf16, #tpu.memory_space<vmem>>, vector<1x8x8xbf16>
    %53 = vector.shape_cast %52 : vector<1x8x8xbf16> to vector<8x8xbf16>
    %c0_38 = arith.constant 0 : index
    %c0_39 = arith.constant 0 : index
    %c8_40 = arith.constant 8 : index
    %54 = vector.load %arg5[%c0_38, %c0_39, %c8_40] : memref<1x8x32xbf16, #tpu.memory_space<vmem>>, vector<1x8x8xbf16>
    %55 = vector.shape_cast %54 : vector<1x8x8xbf16> to vector<8x8xbf16>
    %c0_41 = arith.constant 0 : index
    %c0_42 = arith.constant 0 : index
    %c8_43 = arith.constant 8 : index
    %56 = vector.load %arg6[%c0_41, %c0_42, %c8_43] : memref<1x8x32xbf16, #tpu.memory_space<vmem>>, vector<1x8x8xbf16>
    %57 = vector.shape_cast %56 : vector<1x8x8xbf16> to vector<8x8xbf16>
    %cst_44 = arith.constant dense<0.000000e+00> : vector<8x8xf32>
    %58 = tpu.matmul %53, %55, %cst_44 {dimension_numbers = #tpu.dot_dimension_numbers<[1], [1], [0], [0], [0, 0, 1, 0], [], []>} : vector<8x8xbf16>, vector<8x8xbf16>, vector<8x8xf32> -> vector<8x8xf32>
    %cst_45 = arith.constant 0.353553385 : f32
    %59 = vector.broadcast %cst_45 : f32 to vector<8x8xf32>
    %60 = arith.mulf %58, %59 : vector<8x8xf32>
    %cst_46 = arith.constant -1.000000e+30 : f32
    %61 = vector.shape_cast %6 : vector<1x8xi1> to vector<1x8xi1>
    %62 = vector.broadcast %61 : vector<1x8xi1> to vector<8x8xi1>
    %63 = vector.broadcast %cst_46 : f32 to vector<8x8xf32>
    %64 = arith.select %62, %60, %63 : vector<8x8xi1>, vector<8x8xf32>
    %c1 = arith.constant 1 : index
    %c0_47 = arith.constant 0 : index
    %c0_48 = arith.constant 0 : index
    %65 = vector.load %arg12[%c1, %c0_47, %c0_48] : memref<4x8x1xf32, #tpu.memory_space<vmem>>, vector<1x8x1xf32>
    %66 = vector.shape_cast %65 : vector<1x8x1xf32> to vector<8x1xf32>
    %cst_49 = arith.constant dense<0xFF800000> : vector<8xf32>
    %67 = vector.multi_reduction <maximumf>, %64, %cst_49 [1] : vector<8x8xf32> to vector<8xf32>
    %68 = vector.shape_cast %67 : vector<8xf32> to vector<8x1xf32>
    %69 = arith.maximumf %66, %68 : vector<8x1xf32>
    %70 = arith.subf %66, %69 : vector<8x1xf32>
    %71 = math.exp %70 : vector<8x1xf32>
    %72 = vector.broadcast %69 : vector<8x1xf32> to vector<8x8xf32>
    %73 = arith.subf %64, %72 : vector<8x8xf32>
    %74 = math.exp %73 : vector<8x8xf32>
    %c1_50 = arith.constant 1 : index
    %c0_51 = arith.constant 0 : index
    %c0_52 = arith.constant 0 : index
    %75 = vector.load %arg13[%c1_50, %c0_51, %c0_52] : memref<4x8x1xf32, #tpu.memory_space<vmem>>, vector<1x8x1xf32>
    %76 = vector.shape_cast %75 : vector<1x8x1xf32> to vector<8x1xf32>
    %77 = arith.mulf %71, %76 : vector<8x1xf32>
    %cst_53 = arith.constant dense<0.000000e+00> : vector<8xf32>
    %78 = vector.multi_reduction <add>, %74, %cst_53 [1] : vector<8x8xf32> to vector<8xf32>
    %79 = vector.shape_cast %78 : vector<8xf32> to vector<8x1xf32>
    %80 = arith.addf %77, %79 : vector<8x1xf32>
    %c1_54 = arith.constant 1 : index
    %c0_55 = arith.constant 0 : index
    %c0_56 = arith.constant 0 : index
    %81 = vector.load %arg13[%c1_54, %c0_55, %c0_56] : memref<4x8x1xf32, #tpu.memory_space<vmem>>, vector<1x8x1xf32>
    %82 = vector.shape_cast %81 : vector<1x8x1xf32> to vector<8x1xf32>
    %83 = vector.shape_cast %80 : vector<8x1xf32> to vector<1x8x1xf32>
    tpu.vector_store %arg13[%c1_54, %c0_55, %c0_56], %83 {strides = array<i32>} : memref<4x8x1xf32, #tpu.memory_space<vmem>>, vector<1x8x1xf32>,
    %c1_57 = arith.constant 1 : index
    %c0_58 = arith.constant 0 : index
    %c0_59 = arith.constant 0 : index
    %84 = vector.load %arg11[%c1_57, %c0_58, %c0_59] : memref<4x8x8xf32, #tpu.memory_space<vmem>>, vector<1x8x8xf32>
    %85 = vector.shape_cast %84 : vector<1x8x8xf32> to vector<8x8xf32>
    %86 = vector.broadcast %71 : vector<8x1xf32> to vector<8x8xf32>
    %87 = arith.mulf %86, %85 : vector<8x8xf32>
    %88 = arith.truncf %74 : vector<8x8xf32> to vector<8x8xbf16>
    %cst_60 = arith.constant dense<0.000000e+00> : vector<8x8xf32>
    %89 = tpu.matmul %88, %57, %cst_60 {dimension_numbers = #tpu.dot_dimension_numbers<[1], [0], [0], [1], [0, 0, 1, 1], [], []>} : vector<8x8xbf16>, vector<8x8xbf16>, vector<8x8xf32> -> vector<8x8xf32>
    %90 = arith.addf %87, %89 : vector<8x8xf32>
    %c1_61 = arith.constant 1 : index
    %c0_62 = arith.constant 0 : index
    %c0_63 = arith.constant 0 : index
    %91 = vector.load %arg11[%c1_61, %c0_62, %c0_63] : memref<4x8x8xf32, #tpu.memory_space<vmem>>, vector<1x8x8xf32>
    %92 = vector.shape_cast %91 : vector<1x8x8xf32> to vector<8x8xf32>
    %93 = vector.shape_cast %90 : vector<8x8xf32> to vector<1x8x8xf32>
    tpu.vector_store %arg11[%c1_61, %c0_62, %c0_63], %93 {strides = array<i32>} : memref<4x8x8xf32, #tpu.memory_space<vmem>>, vector<1x8x8xf32>,
    %c1_64 = arith.constant 1 : index
    %c0_65 = arith.constant 0 : index
    %c0_66 = arith.constant 0 : index
    %94 = vector.load %arg12[%c1_64, %c0_65, %c0_66] : memref<4x8x1xf32, #tpu.memory_space<vmem>>, vector<1x8x1xf32>
    %95 = vector.shape_cast %94 : vector<1x8x1xf32> to vector<8x1xf32>
    %96 = vector.shape_cast %69 : vector<8x1xf32> to vector<1x8x1xf32>
    tpu.vector_store %arg12[%c1_64, %c0_65, %c0_66], %96 {strides = array<i32>} : memref<4x8x1xf32, #tpu.memory_space<vmem>>, vector<1x8x1xf32>,
    %c0_67 = arith.constant 0 : index
    %c0_68 = arith.constant 0 : index
    %c16 = arith.constant 16 : index
    %97 = vector.load %arg4[%c0_67, %c0_68, %c16] : memref<1x8x32xbf16, #tpu.memory_space<vmem>>, vector<1x8x8xbf16>
    %98 = vector.shape_cast %97 : vector<1x8x8xbf16> to vector<8x8xbf16>
    %c0_69 = arith.constant 0 : index
    %c0_70 = arith.constant 0 : index
    %c16_71 = arith.constant 16 : index
    %99 = vector.load %arg5[%c0_69, %c0_70, %c16_71] : memref<1x8x32xbf16, #tpu.memory_space<vmem>>, vector<1x8x8xbf16>
    %100 = vector.shape_cast %99 : vector<1x8x8xbf16> to vector<8x8xbf16>
    %c0_72 = arith.constant 0 : index
    %c0_73 = arith.constant 0 : index
    %c16_74 = arith.constant 16 : index
    %101 = vector.load %arg6[%c0_72, %c0_73, %c16_74] : memref<1x8x32xbf16, #tpu.memory_space<vmem>>, vector<1x8x8xbf16>
    %102 = vector.shape_cast %101 : vector<1x8x8xbf16> to vector<8x8xbf16>
    %cst_75 = arith.constant dense<0.000000e+00> : vector<8x8xf32>
    %103 = tpu.matmul %98, %100, %cst_75 {dimension_numbers = #tpu.dot_dimension_numbers<[1], [1], [0], [0], [0, 0, 1, 0], [], []>} : vector<8x8xbf16>, vector<8x8xbf16>, vector<8x8xf32> -> vector<8x8xf32>
    %cst_76 = arith.constant 0.353553385 : f32
    %104 = vector.broadcast %cst_76 : f32 to vector<8x8xf32>
    %105 = arith.mulf %103, %104 : vector<8x8xf32>
    %cst_77 = arith.constant -1.000000e+30 : f32
    %106 = vector.shape_cast %6 : vector<1x8xi1> to vector<1x8xi1>
    %107 = vector.broadcast %106 : vector<1x8xi1> to vector<8x8xi1>
    %108 = vector.broadcast %cst_77 : f32 to vector<8x8xf32>
    %109 = arith.select %107, %105, %108 : vector<8x8xi1>, vector<8x8xf32>
    %c2 = arith.constant 2 : index
    %c0_78 = arith.constant 0 : index
    %c0_79 = arith.constant 0 : index
    %110 = vector.load %arg12[%c2, %c0_78, %c0_79] : memref<4x8x1xf32, #tpu.memory_space<vmem>>, vector<1x8x1xf32>
    %111 = vector.shape_cast %110 : vector<1x8x1xf32> to vector<8x1xf32>
    %cst_80 = arith.constant dense<0xFF800000> : vector<8xf32>
    %112 = vector.multi_reduction <maximumf>, %109, %cst_80 [1] : vector<8x8xf32> to vector<8xf32>
    %113 = vector.shape_cast %112 : vector<8xf32> to vector<8x1xf32>
    %114 = arith.maximumf %111, %113 : vector<8x1xf32>
    %115 = arith.subf %111, %114 : vector<8x1xf32>
    %116 = math.exp %115 : vector<8x1xf32>
    %117 = vector.broadcast %114 : vector<8x1xf32> to vector<8x8xf32>
    %118 = arith.subf %109, %117 : vector<8x8xf32>
    %119 = math.exp %118 : vector<8x8xf32>
    %c2_81 = arith.constant 2 : index
    %c0_82 = arith.constant 0 : index
    %c0_83 = arith.constant 0 : index
    %120 = vector.load %arg13[%c2_81, %c0_82, %c0_83] : memref<4x8x1xf32, #tpu.memory_space<vmem>>, vector<1x8x1xf32>
    %121 = vector.shape_cast %120 : vector<1x8x1xf32> to vector<8x1xf32>
    %122 = arith.mulf %116, %121 : vector<8x1xf32>
    %cst_84 = arith.constant dense<0.000000e+00> : vector<8xf32>
    %123 = vector.multi_reduction <add>, %119, %cst_84 [1] : vector<8x8xf32> to vector<8xf32>
    %124 = vector.shape_cast %123 : vector<8xf32> to vector<8x1xf32>
    %125 = arith.addf %122, %124 : vector<8x1xf32>
    %c2_85 = arith.constant 2 : index
    %c0_86 = arith.constant 0 : index
    %c0_87 = arith.constant 0 : index
    %126 = vector.load %arg13[%c2_85, %c0_86, %c0_87] : memref<4x8x1xf32, #tpu.memory_space<vmem>>, vector<1x8x1xf32>
    %127 = vector.shape_cast %126 : vector<1x8x1xf32> to vector<8x1xf32>
    %128 = vector.shape_cast %125 : vector<8x1xf32> to vector<1x8x1xf32>
    tpu.vector_store %arg13[%c2_85, %c0_86, %c0_87], %128 {strides = array<i32>} : memref<4x8x1xf32, #tpu.memory_space<vmem>>, vector<1x8x1xf32>,
    %c2_88 = arith.constant 2 : index
    %c0_89 = arith.constant 0 : index
    %c0_90 = arith.constant 0 : index
    %129 = vector.load %arg11[%c2_88, %c0_89, %c0_90] : memref<4x8x8xf32, #tpu.memory_space<vmem>>, vector<1x8x8xf32>
    %130 = vector.shape_cast %129 : vector<1x8x8xf32> to vector<8x8xf32>
    %131 = vector.broadcast %116 : vector<8x1xf32> to vector<8x8xf32>
    %132 = arith.mulf %131, %130 : vector<8x8xf32>
    %133 = arith.truncf %119 : vector<8x8xf32> to vector<8x8xbf16>
    %cst_91 = arith.constant dense<0.000000e+00> : vector<8x8xf32>
    %134 = tpu.matmul %133, %102, %cst_91 {dimension_numbers = #tpu.dot_dimension_numbers<[1], [0], [0], [1], [0, 0, 1, 1], [], []>} : vector<8x8xbf16>, vector<8x8xbf16>, vector<8x8xf32> -> vector<8x8xf32>
    %135 = arith.addf %132, %134 : vector<8x8xf32>
    %c2_92 = arith.constant 2 : index
    %c0_93 = arith.constant 0 : index
    %c0_94 = arith.constant 0 : index
    %136 = vector.load %arg11[%c2_92, %c0_93, %c0_94] : memref<4x8x8xf32, #tpu.memory_space<vmem>>, vector<1x8x8xf32>
    %137 = vector.shape_cast %136 : vector<1x8x8xf32> to vector<8x8xf32>
    %138 = vector.shape_cast %135 : vector<8x8xf32> to vector<1x8x8xf32>
    tpu.vector_store %arg11[%c2_92, %c0_93, %c0_94], %138 {strides = array<i32>} : memref<4x8x8xf32, #tpu.memory_space<vmem>>, vector<1x8x8xf32>,
    %c2_95 = arith.constant 2 : index
    %c0_96 = arith.constant 0 : index
    %c0_97 = arith.constant 0 : index
    %139 = vector.load %arg12[%c2_95, %c0_96, %c0_97] : memref<4x8x1xf32, #tpu.memory_space<vmem>>, vector<1x8x1xf32>
    %140 = vector.shape_cast %139 : vector<1x8x1xf32> to vector<8x1xf32>
    %141 = vector.shape_cast %114 : vector<8x1xf32> to vector<1x8x1xf32>
    tpu.vector_store %arg12[%c2_95, %c0_96, %c0_97], %141 {strides = array<i32>} : memref<4x8x1xf32, #tpu.memory_space<vmem>>, vector<1x8x1xf32>,
    %c0_98 = arith.constant 0 : index
    %c0_99 = arith.constant 0 : index
    %c24 = arith.constant 24 : index
    %142 = vector.load %arg4[%c0_98, %c0_99, %c24] : memref<1x8x32xbf16, #tpu.memory_space<vmem>>, vector<1x8x8xbf16>
    %143 = vector.shape_cast %142 : vector<1x8x8xbf16> to vector<8x8xbf16>
    %c0_100 = arith.constant 0 : index
    %c0_101 = arith.constant 0 : index
    %c24_102 = arith.constant 24 : index
    %144 = vector.load %arg5[%c0_100, %c0_101, %c24_102] : memref<1x8x32xbf16, #tpu.memory_space<vmem>>, vector<1x8x8xbf16>
    %145 = vector.shape_cast %144 : vector<1x8x8xbf16> to vector<8x8xbf16>
    %c0_103 = arith.constant 0 : index
    %c0_104 = arith.constant 0 : index
    %c24_105 = arith.constant 24 : index
    %146 = vector.load %arg6[%c0_103, %c0_104, %c24_105] : memref<1x8x32xbf16, #tpu.memory_space<vmem>>, vector<1x8x8xbf16>
    %147 = vector.shape_cast %146 : vector<1x8x8xbf16> to vector<8x8xbf16>
    %cst_106 = arith.constant dense<0.000000e+00> : vector<8x8xf32>
    %148 = tpu.matmul %143, %145, %cst_106 {dimension_numbers = #tpu.dot_dimension_numbers<[1], [1], [0], [0], [0, 0, 1, 0], [], []>} : vector<8x8xbf16>, vector<8x8xbf16>, vector<8x8xf32> -> vector<8x8xf32>
    %cst_107 = arith.constant 0.353553385 : f32
    %149 = vector.broadcast %cst_107 : f32 to vector<8x8xf32>
    %150 = arith.mulf %148, %149 : vector<8x8xf32>
    %cst_108 = arith.constant -1.000000e+30 : f32
    %151 = vector.shape_cast %6 : vector<1x8xi1> to vector<1x8xi1>
    %152 = vector.broadcast %151 : vector<1x8xi1> to vector<8x8xi1>
    %153 = vector.broadcast %cst_108 : f32 to vector<8x8xf32>
    %154 = arith.select %152, %150, %153 : vector<8x8xi1>, vector<8x8xf32>
    %c3 = arith.constant 3 : index
    %c0_109 = arith.constant 0 : index
    %c0_110 = arith.constant 0 : index
    %155 = vector.load %arg12[%c3, %c0_109, %c0_110] : memref<4x8x1xf32, #tpu.memory_space<vmem>>, vector<1x8x1xf32>
    %156 = vector.shape_cast %155 : vector<1x8x1xf32> to vector<8x1xf32>
    %cst_111 = arith.constant dense<0xFF800000> : vector<8xf32>
    %157 = vector.multi_reduction <maximumf>, %154, %cst_111 [1] : vector<8x8xf32> to vector<8xf32>
    %158 = vector.shape_cast %157 : vector<8xf32> to vector<8x1xf32>
    %159 = arith.maximumf %156, %158 : vector<8x1xf32>
    %160 = arith.subf %156, %159 : vector<8x1xf32>
    %161 = math.exp %160 : vector<8x1xf32>
    %162 = vector.broadcast %159 : vector<8x1xf32> to vector<8x8xf32>
    %163 = arith.subf %154, %162 : vector<8x8xf32>
    %164 = math.exp %163 : vector<8x8xf32>
    %c3_112 = arith.constant 3 : index
    %c0_113 = arith.constant 0 : index
    %c0_114 = arith.constant 0 : index
    %165 = vector.load %arg13[%c3_112, %c0_113, %c0_114] : memref<4x8x1xf32, #tpu.memory_space<vmem>>, vector<1x8x1xf32>
    %166 = vector.shape_cast %165 : vector<1x8x1xf32> to vector<8x1xf32>
    %167 = arith.mulf %161, %166 : vector<8x1xf32>
    %cst_115 = arith.constant dense<0.000000e+00> : vector<8xf32>
    %168 = vector.multi_reduction <add>, %164, %cst_115 [1] : vector<8x8xf32> to vector<8xf32>
    %169 = vector.shape_cast %168 : vector<8xf32> to vector<8x1xf32>
    %170 = arith.addf %167, %169 : vector<8x1xf32>
    %c3_116 = arith.constant 3 : index
    %c0_117 = arith.constant 0 : index
    %c0_118 = arith.constant 0 : index
    %171 = vector.load %arg13[%c3_116, %c0_117, %c0_118] : memref<4x8x1xf32, #tpu.memory_space<vmem>>, vector<1x8x1xf32>
    %172 = vector.shape_cast %171 : vector<1x8x1xf32> to vector<8x1xf32>
    %173 = vector.shape_cast %170 : vector<8x1xf32> to vector<1x8x1xf32>
    tpu.vector_store %arg13[%c3_116, %c0_117, %c0_118], %173 {strides = array<i32>} : memref<4x8x1xf32, #tpu.memory_space<vmem>>, vector<1x8x1xf32>,
    %c3_119 = arith.constant 3 : index
    %c0_120 = arith.constant 0 : index
    %c0_121 = arith.constant 0 : index
    %174 = vector.load %arg11[%c3_119, %c0_120, %c0_121] : memref<4x8x8xf32, #tpu.memory_space<vmem>>, vector<1x8x8xf32>
    %175 = vector.shape_cast %174 : vector<1x8x8xf32> to vector<8x8xf32>
    %176 = vector.broadcast %161 : vector<8x1xf32> to vector<8x8xf32>
    %177 = arith.mulf %176, %175 : vector<8x8xf32>
    %178 = arith.truncf %164 : vector<8x8xf32> to vector<8x8xbf16>
    %cst_122 = arith.constant dense<0.000000e+00> : vector<8x8xf32>
    %179 = tpu.matmul %178, %147, %cst_122 {dimension_numbers = #tpu.dot_dimension_numbers<[1], [0], [0], [1], [0, 0, 1, 1], [], []>} : vector<8x8xbf16>, vector<8x8xbf16>, vector<8x8xf32> -> vector<8x8xf32>
    %180 = arith.addf %177, %179 : vector<8x8xf32>
    %c3_123 = arith.constant 3 : index
    %c0_124 = arith.constant 0 : index
    %c0_125 = arith.constant 0 : index
    %181 = vector.load %arg11[%c3_123, %c0_124, %c0_125] : memref<4x8x8xf32, #tpu.memory_space<vmem>>, vector<1x8x8xf32>
    %182 = vector.shape_cast %181 : vector<1x8x8xf32> to vector<8x8xf32>
    %183 = vector.shape_cast %180 : vector<8x8xf32> to vector<1x8x8xf32>
    tpu.vector_store %arg11[%c3_123, %c0_124, %c0_125], %183 {strides = array<i32>} : memref<4x8x8xf32, #tpu.memory_space<vmem>>, vector<1x8x8xf32>,
    %c3_126 = arith.constant 3 : index
    %c0_127 = arith.constant 0 : index
    %c0_128 = arith.constant 0 : index
    %184 = vector.load %arg12[%c3_126, %c0_127, %c0_128] : memref<4x8x1xf32, #tpu.memory_space<vmem>>, vector<1x8x1xf32>
    %185 = vector.shape_cast %184 : vector<1x8x1xf32> to vector<8x1xf32>
    %186 = vector.shape_cast %159 : vector<8x1xf32> to vector<1x8x1xf32>
    tpu.vector_store %arg12[%c3_126, %c0_127, %c0_128], %186 {strides = array<i32>} : memref<4x8x1xf32, #tpu.memory_space<vmem>>, vector<1x8x1xf32>,
    %c0_i32_129 = arith.constant 0 : i32
    %187 = arith.cmpi eq, %arg2, %c0_i32_129 : i32
    %188 = arith.extui %187 : i1 to i32
    %c0_i32_130 = arith.constant 0 : i32
    %189 = arith.cmpi ne, %188, %c0_i32_130 : i32
    scf.if %189 {
      %c0_131 = arith.constant 0 : index
      %c0_132 = arith.constant 0 : index
      %c0_133 = arith.constant 0 : index
      %190 = vector.load %arg11[%c0_131, %c0_132, %c0_133] : memref<4x8x8xf32, #tpu.memory_space<vmem>>, vector<1x8x8xf32>
      %191 = vector.shape_cast %190 : vector<1x8x8xf32> to vector<8x8xf32>
      %c0_134 = arith.constant 0 : index
      %c0_135 = arith.constant 0 : index
      %c0_136 = arith.constant 0 : index
      %192 = vector.load %arg13[%c0_134, %c0_135, %c0_136] : memref<4x8x1xf32, #tpu.memory_space<vmem>>, vector<1x8x1xf32>
      %193 = vector.shape_cast %192 : vector<1x8x1xf32> to vector<8x1xf32>
      %194 = vector.broadcast %193 : vector<8x1xf32> to vector<8x8xf32>
      %195 = arith.divf %191, %194 : vector<8x8xf32>
      %196 = arith.truncf %195 : vector<8x8xf32> to vector<8x8xbf16>
      %c0_137 = arith.constant 0 : index
      %c0_138 = arith.constant 0 : index
      %197 = vector.load %arg8[%c0_137, %c0_138] : memref<32x32xbf16, #tpu.memory_space<vmem>>, vector<8x32xbf16>
      %cst_139 = arith.constant dense<0.000000e+00> : vector<8x32xf32>
      %198 = tpu.matmul %196, %197, %cst_139 {dimension_numbers = #tpu.dot_dimension_numbers<[1], [0], [0], [1], [0, 0, 1, 1], [], []>} : vector<8x8xbf16>, vector<8x32xbf16>, vector<8x32xf32> -> vector<8x32xf32>
      %c1_140 = arith.constant 1 : index
      %c0_141 = arith.constant 0 : index
      %c0_142 = arith.constant 0 : index
      %199 = vector.load %arg11[%c1_140, %c0_141, %c0_142] : memref<4x8x8xf32, #tpu.memory_space<vmem>>, vector<1x8x8xf32>
      %200 = vector.shape_cast %199 : vector<1x8x8xf32> to vector<8x8xf32>
      %c1_143 = arith.constant 1 : index
      %c0_144 = arith.constant 0 : index
      %c0_145 = arith.constant 0 : index
      %201 = vector.load %arg13[%c1_143, %c0_144, %c0_145] : memref<4x8x1xf32, #tpu.memory_space<vmem>>, vector<1x8x1xf32>
      %202 = vector.shape_cast %201 : vector<1x8x1xf32> to vector<8x1xf32>
      %203 = vector.broadcast %202 : vector<8x1xf32> to vector<8x8xf32>
      %204 = arith.divf %200, %203 : vector<8x8xf32>
      %205 = arith.truncf %204 : vector<8x8xf32> to vector<8x8xbf16>
      %c8_146 = arith.constant 8 : index
      %c0_147 = arith.constant 0 : index
      %206 = vector.load %arg8[%c8_146, %c0_147] : memref<32x32xbf16, #tpu.memory_space<vmem>>, vector<8x32xbf16>
      %cst_148 = arith.constant dense<0.000000e+00> : vector<8x32xf32>
      %207 = tpu.matmul %205, %206, %cst_148 {dimension_numbers = #tpu.dot_dimension_numbers<[1], [0], [0], [1], [0, 0, 1, 1], [], []>} : vector<8x8xbf16>, vector<8x32xbf16>, vector<8x32xf32> -> vector<8x32xf32>
      %208 = arith.addf %198, %207 : vector<8x32xf32>
      %c2_149 = arith.constant 2 : index
      %c0_150 = arith.constant 0 : index
      %c0_151 = arith.constant 0 : index
      %209 = vector.load %arg11[%c2_149, %c0_150, %c0_151] : memref<4x8x8xf32, #tpu.memory_space<vmem>>, vector<1x8x8xf32>
      %210 = vector.shape_cast %209 : vector<1x8x8xf32> to vector<8x8xf32>
      %c2_152 = arith.constant 2 : index
      %c0_153 = arith.constant 0 : index
      %c0_154 = arith.constant 0 : index
      %211 = vector.load %arg13[%c2_152, %c0_153, %c0_154] : memref<4x8x1xf32, #tpu.memory_space<vmem>>, vector<1x8x1xf32>
      %212 = vector.shape_cast %211 : vector<1x8x1xf32> to vector<8x1xf32>
      %213 = vector.broadcast %212 : vector<8x1xf32> to vector<8x8xf32>
      %214 = arith.divf %210, %213 : vector<8x8xf32>
      %215 = arith.truncf %214 : vector<8x8xf32> to vector<8x8xbf16>
      %c16_155 = arith.constant 16 : index
      %c0_156 = arith.constant 0 : index
      %216 = vector.load %arg8[%c16_155, %c0_156] : memref<32x32xbf16, #tpu.memory_space<vmem>>, vector<8x32xbf16>
      %cst_157 = arith.constant dense<0.000000e+00> : vector<8x32xf32>
      %217 = tpu.matmul %215, %216, %cst_157 {dimension_numbers = #tpu.dot_dimension_numbers<[1], [0], [0], [1], [0, 0, 1, 1], [], []>} : vector<8x8xbf16>, vector<8x32xbf16>, vector<8x32xf32> -> vector<8x32xf32>
      %218 = arith.addf %208, %217 : vector<8x32xf32>
      %c3_158 = arith.constant 3 : index
      %c0_159 = arith.constant 0 : index
      %c0_160 = arith.constant 0 : index
      %219 = vector.load %arg11[%c3_158, %c0_159, %c0_160] : memref<4x8x8xf32, #tpu.memory_space<vmem>>, vector<1x8x8xf32>
      %220 = vector.shape_cast %219 : vector<1x8x8xf32> to vector<8x8xf32>
      %c3_161 = arith.constant 3 : index
      %c0_162 = arith.constant 0 : index
      %c0_163 = arith.constant 0 : index
      %221 = vector.load %arg13[%c3_161, %c0_162, %c0_163] : memref<4x8x1xf32, #tpu.memory_space<vmem>>, vector<1x8x1xf32>
      %222 = vector.shape_cast %221 : vector<1x8x1xf32> to vector<8x1xf32>
      %223 = vector.broadcast %222 : vector<8x1xf32> to vector<8x8xf32>
      %224 = arith.divf %220, %223 : vector<8x8xf32>
      %225 = arith.truncf %224 : vector<8x8xf32> to vector<8x8xbf16>
      %c24_164 = arith.constant 24 : index
      %c0_165 = arith.constant 0 : index
      %226 = vector.load %arg8[%c24_164, %c0_165] : memref<32x32xbf16, #tpu.memory_space<vmem>>, vector<8x32xbf16>
      %cst_166 = arith.constant dense<0.000000e+00> : vector<8x32xf32>
      %227 = tpu.matmul %225, %226, %cst_166 {dimension_numbers = #tpu.dot_dimension_numbers<[1], [0], [0], [1], [0, 0, 1, 1], [], []>} : vector<8x8xbf16>, vector<8x32xbf16>, vector<8x32xf32> -> vector<8x32xf32>
      %228 = arith.addf %218, %227 : vector<8x32xf32>
      %c0_167 = arith.constant 0 : index
      %c0_168 = arith.constant 0 : index
      %229 = vector.load %arg9[%c0_167, %c0_168] : memref<1x32xf32, #tpu.memory_space<vmem>>, vector<1x32xf32>
      %230 = vector.broadcast %229 : vector<1x32xf32> to vector<8x32xf32>
      %231 = arith.addf %228, %230 : vector<8x32xf32>
      %c0_169 = arith.constant 0 : index
      %c0_170 = arith.constant 0 : index
      %c0_171 = arith.constant 0 : index
      %232 = vector.load %arg3[%c0_169, %c0_170, %c0_171] : memref<1x8x32xbf16, #tpu.memory_space<vmem>>, vector<1x8x32xbf16>
      %233 = vector.shape_cast %232 : vector<1x8x32xbf16> to vector<8x32xbf16>
      %234 = arith.extf %233 : vector<8x32xbf16> to vector<8x32xf32>
      %235 = arith.addf %234, %231 : vector<8x32xf32>
      %236 = arith.truncf %235 : vector<8x32xf32> to vector<8x32xbf16>
      %c0_172 = arith.constant 0 : index
      %c0_173 = arith.constant 0 : index
      %c0_174 = arith.constant 0 : index
      %237 = vector.load %arg10[%c0_172, %c0_173, %c0_174] : memref<1x8x32xbf16, #tpu.memory_space<vmem>>, vector<1x8x32xbf16>
      %238 = vector.shape_cast %237 : vector<1x8x32xbf16> to vector<8x32xbf16>
      %239 = vector.shape_cast %236 : vector<8x32xbf16> to vector<1x8x32xbf16>
      tpu.vector_store %arg10[%c0_172, %c0_173, %c0_174], %239 {strides = array<i32>} : memref<1x8x32xbf16, #tpu.memory_space<vmem>>, vector<1x8x32xbf16>,
    } else {
    }
    return
  }
  func.func @transform_0(%arg0: i32, %arg1: i32, %arg2: i32) -> (i32, i32, i32) {
    %c0_i32 = arith.constant 0 : i32
    %c0_i32_0 = arith.constant 0 : i32
    return %arg0, %arg1, %c0_i32 : i32, i32, i32
  }
  func.func @transform_1(%arg0: i32, %arg1: i32, %arg2: i32) -> (i32, i32, i32) {
    %c0_i32 = arith.constant 0 : i32
    %c0_i32_0 = arith.constant 0 : i32
    return %arg0, %arg1, %c0_i32 : i32, i32, i32
  }
  func.func @transform_2(%arg0: i32, %arg1: i32, %arg2: i32) -> (i32, i32, i32) {
    %c0_i32 = arith.constant 0 : i32
    %c0_i32_0 = arith.constant 0 : i32
    return %arg0, %arg2, %c0_i32 : i32, i32, i32
  }
  func.func @transform_3(%arg0: i32, %arg1: i32, %arg2: i32) -> (i32, i32, i32) {
    %c0_i32 = arith.constant 0 : i32
    %c0_i32_0 = arith.constant 0 : i32
    return %arg0, %arg2, %c0_i32 : i32, i32, i32
  }
  func.func @transform_4(%arg0: i32, %arg1: i32, %arg2: i32) -> (i32, i32, i32) {
    %c0_i32 = arith.constant 0 : i32
    %c0_i32_0 = arith.constant 0 : i32
    return %arg0, %c0_i32, %arg2 : i32, i32, i32
  }
  func.func @transform_5(%arg0: i32, %arg1: i32, %arg2: i32) -> (i32, i32) {
    %c0_i32 = arith.constant 0 : i32
    %c0_i32_0 = arith.constant 0 : i32
    %c0_i32_1 = arith.constant 0 : i32
    return %c0_i32, %c0_i32_0 : i32, i32
  }
  func.func @transform_6(%arg0: i32, %arg1: i32, %arg2: i32) -> (i32, i32) {
    %c0_i32 = arith.constant 0 : i32
    %c0_i32_0 = arith.constant 0 : i32
    %c0_i32_1 = arith.constant 0 : i32
    return %c0_i32, %c0_i32_0 : i32, i32
  }
  func.func @transform_7(%arg0: i32, %arg1: i32, %arg2: i32) -> (i32, i32, i32) {
    %c0_i32 = arith.constant 0 : i32
    %c0_i32_0 = arith.constant 0 : i32
    return %arg0, %arg1, %c0_i32 : i32, i32, i32
  }
}

module attributes {stable_mosaic.version = 11 : i64} {
  func.func @_layernorm_kernel(%arg0: i32, %arg1: memref<16x32xbf16, #tpu.memory_space<vmem>>, %arg2: memref<1x32xf32, #tpu.memory_space<vmem>>, %arg3: memref<1x32xf32, #tpu.memory_space<vmem>>, %arg4: memref<16x32xf32, #tpu.memory_space<vmem>>) attributes {dimension_semantics = [#tpu.dimension_semantics<parallel>], iteration_bounds = array<i64: 1>, scalar_prefetch = 0 : i64, scratch_operands = 0 : i64, tpu.core_type = #tpu.core_type<tc>, window_params = [{transform_indices = @transform_0, window_bounds = array<i64: 16, 32>}, {pipeline_mode = #tpu.pipeline_mode<synchronous>, transform_indices = @transform_1, window_bounds = array<i64: 1, 32>}, {pipeline_mode = #tpu.pipeline_mode<synchronous>, transform_indices = @transform_2, window_bounds = array<i64: 1, 32>}, {transform_indices = @transform_3, window_bounds = array<i64: 16, 32>}]} {
    %c0 = arith.constant 0 : index
    %c0_0 = arith.constant 0 : index
    %0 = vector.load %arg1[%c0, %c0_0] : memref<16x32xbf16, #tpu.memory_space<vmem>>, vector<16x32xbf16>
    %c0_1 = arith.constant 0 : index
    %c0_2 = arith.constant 0 : index
    %1 = vector.load %arg2[%c0_1, %c0_2] : memref<1x32xf32, #tpu.memory_space<vmem>>, vector<1x32xf32>
    %c0_3 = arith.constant 0 : index
    %c0_4 = arith.constant 0 : index
    %2 = vector.load %arg3[%c0_3, %c0_4] : memref<1x32xf32, #tpu.memory_space<vmem>>, vector<1x32xf32>
    %3 = arith.extf %0 : vector<16x32xbf16> to vector<16x32xf32>
    %cst = arith.constant dense<0.000000e+00> : vector<16xf32>
    %4 = vector.multi_reduction <add>, %3, %cst [1] : vector<16x32xf32> to vector<16xf32>
    %5 = vector.shape_cast %4 : vector<16xf32> to vector<16x1xf32>
    %cst_5 = arith.constant 3.200000e+01 : f32
    %6 = vector.broadcast %cst_5 : f32 to vector<16x1xf32>
    %7 = arith.divf %5, %6 : vector<16x1xf32>
    %8 = vector.broadcast %7 : vector<16x1xf32> to vector<16x32xf32>
    %9 = arith.subf %3, %8 : vector<16x32xf32>
    %10 = arith.mulf %9, %9 : vector<16x32xf32>
    %cst_6 = arith.constant dense<0.000000e+00> : vector<16xf32>
    %11 = vector.multi_reduction <add>, %10, %cst_6 [1] : vector<16x32xf32> to vector<16xf32>
    %12 = vector.shape_cast %11 : vector<16xf32> to vector<16x1xf32>
    %cst_7 = arith.constant 3.200000e+01 : f32
    %13 = vector.broadcast %cst_7 : f32 to vector<16x1xf32>
    %14 = arith.divf %12, %13 : vector<16x1xf32>
    %15 = vector.broadcast %7 : vector<16x1xf32> to vector<16x32xf32>
    %16 = arith.subf %3, %15 : vector<16x32xf32>
    %cst_8 = arith.constant 9.99999974E-6 : f32
    %17 = vector.broadcast %cst_8 : f32 to vector<16x1xf32>
    %18 = arith.addf %14, %17 : vector<16x1xf32>
    %19 = math.rsqrt %18 : vector<16x1xf32>
    %20 = vector.broadcast %19 : vector<16x1xf32> to vector<16x32xf32>
    %21 = arith.mulf %16, %20 : vector<16x32xf32>
    %22 = vector.broadcast %1 : vector<1x32xf32> to vector<16x32xf32>
    %23 = arith.mulf %21, %22 : vector<16x32xf32>
    %24 = vector.broadcast %2 : vector<1x32xf32> to vector<16x32xf32>
    %25 = arith.addf %23, %24 : vector<16x32xf32>
    %c0_9 = arith.constant 0 : index
    %c0_10 = arith.constant 0 : index
    %26 = vector.load %arg4[%c0_9, %c0_10] : memref<16x32xf32, #tpu.memory_space<vmem>>, vector<16x32xf32>
    tpu.vector_store %arg4[%c0_9, %c0_10], %25 {strides = array<i32>} : memref<16x32xf32, #tpu.memory_space<vmem>>, vector<16x32xf32>,
    return
  }
  func.func @transform_0(%arg0: i32) -> (i32, i32) {
    %c0_i32 = arith.constant 0 : i32
    %c0_i32_0 = arith.constant 0 : i32
    return %arg0, %c0_i32 : i32, i32
  }
  func.func @transform_1(%arg0: i32) -> (i32, i32) {
    %c0_i32 = arith.constant 0 : i32
    %c0_i32_0 = arith.constant 0 : i32
    %c0_i32_1 = arith.constant 0 : i32
    return %c0_i32, %c0_i32_0 : i32, i32
  }
  func.func @transform_2(%arg0: i32) -> (i32, i32) {
    %c0_i32 = arith.constant 0 : i32
    %c0_i32_0 = arith.constant 0 : i32
    %c0_i32_1 = arith.constant 0 : i32
    return %c0_i32, %c0_i32_0 : i32, i32
  }
  func.func @transform_3(%arg0: i32) -> (i32, i32) {
    %c0_i32 = arith.constant 0 : i32
    %c0_i32_0 = arith.constant 0 : i32
    return %arg0, %c0_i32 : i32, i32
  }
}

</mosaic_0001>

<bundles_post_ra>
// kernel: decoder_forward.13
= control target key start
LH: loop header
LB: loop body
LE: loop exit
PB: predicated region body
PF: predicated region fallthrough
CT: control target
= control target key end

     0   :  { %vm30_vm0 = vcmask 261120   ;;  %v192_v5 = vmov 32.0   ;;  %vm132_vm8 = vcmask 257024   ;;  %s194_s12 = smov 96   ;;  %s282_s0 = inlined_call_operand.vmem [shape: bf16[16,32], index: 0, kind: input, shape index: {}]   ;;  %s283_s1 = inlined_call_operand.vmem [shape: f32[1,32], index: 1, kind: input, shape index: {}]   ;;  %s284_s2 = inlined_call_operand.vmem [shape: f32[1,32], index: 2, kind: input, shape index: {}]   ;;  %s285_s4 = inlined_call_operand.vmem [shape: f32[1,96], index: 4, kind: input, shape index: {}]   ;;  %s286_s3 = inlined_call_operand.vmem [shape: bf16[32,96], index: 3, kind: input, shape index: {}]   ;;  %s287_s5 = inlined_call_operand.vmem [shape: bf16[16,32], index: 5, kind: output, shape index: {0}]   ;;  %s288_s6 = inlined_call_operand.vmem [shape: bf16[16,32], index: 6, kind: output, shape index: {1}]   ;;  %s289_s7 = inlined_call_operand.vmem [shape: bf16[16,32], index: 7, kind: output, shape index: {2}]  }
   0x1   :  { %v177_v0 = vld [vmem:[%s282_s0] sm:$0xff]   ;;  %186 = vrcp.f32 %v192_v5  ;;  %v175_v22 = vld [vmem:[%s286_s3 + $0x8] sm:$0xff] }
   0x2   :  { %v178_v1 = vunpack.c.l.bf16 %v177_v0  ;;  %v179_v3 = vunpack.c.h.bf16 %v177_v0  ;;  %122 = vmatpush.bf16.msra.mxu0 %v175_v22  ;;  %v174_v24 = vld [vmem:[%s286_s3] sm:$0xff] }
   0x3   :  { %v183_v43 = vld [vmem:[%s283_s1] ss:$0 sm:$0xff] }
   0x4   :  { %v31_v2 = vsel %vm30_vm0, %v178_v1, 0.0  ;;  %v34_v4 = vsel %vm30_vm0, %v179_v3, 0.0  ;;  %v184_v48 = vld [vmem:[%s284_s2] ss:$0 sm:$0xff]  ;;  %s193_s2 = smov 64  }
   0x5   :  { %32 = vadd.xlane.f32.xlu0 %v31_v2  ;;  %v185_v53 = vld [vmem:[%s285_s4] ss:$0 sm:$0xff] }
   0x6   :  { %123 = vmatpush.bf16.msra.mxu0 %v174_v24 }
   0x7   :  { %v187_v6 = vpop.eup %186 }
   0x8   :  { %v38_v7 = vmul.f32 32.0, %v187_v6  ;;  %vm42_vm1 = vweird.f32 %v187_v6 }
   0xa   :  { %v39_v8 = vsub.f32 1.0, %v38_v7 }
   0xc   :  { %v40_v9 = vmul.f32 %v187_v6, %v39_v8 }
   0xd   :  { %35 = vadd.xlane.f32.xlu0 %v34_v4 }
   0xe   :  { %v41_v10 = vadd.f32 %v187_v6, %v40_v9 }
  0x10   :  { %v43_v11 = vsel %vm42_vm1, %v187_v6, %v41_v10 }
  0x78   :  { %v33_v12 = vpop.xlane.xlu0 %32 }
  0x79   :  { %v44_v13 = vmul.f32 %v43_v11, %v33_v12 }
  0x7b   :  { %v46_v14 = vsub.f32 %v178_v1, %v44_v13 }
  0x7d   :  { %v48_v15 = vmul.f32 %v46_v14, %v46_v14 }
  0x7f   :  { %v50_v16 = vsel %vm30_vm0, %v48_v15, 0.0 }
  0x80   :  { %51 = vadd.xlane.f32.xlu1 %v50_v16  ;;  %v36_v17 = vpop.xlane.xlu0 %35 }
  0x81   :  { %v45_v18 = vmul.f32 %v43_v11, %v36_v17 }
  0x83   :  { %v47_v19 = vsub.f32 %v179_v3, %v45_v18 }
  0x85   :  { %v49_v20 = vmul.f32 %v47_v19, %v47_v19 }
  0x87   :  { %v53_v21 = vsel %vm30_vm0, %v49_v20, 0.0 }
  0x88   :  { %54 = vadd.xlane.f32.xlu1 %v53_v21 }
  0xf3   :  { %v52_v23 = vpop.xlane.xlu1 %51 }
  0xf4   :  { %v56_v25 = vmul.f32 %v52_v23, %v43_v11 }
  0xf6   :  { %v58_v26 = vadd.f32 1e-05, %v56_v25 }
  0xf8   :  { %188 = vrsqrt.f32 %v58_v26  ;;  %vm66_vm3 = vweird.f32 %v58_v26 }
  0xfb   :  { %v55_v27 = vpop.xlane.xlu1 %54 }
  0xfc   :  { %v57_v28 = vmul.f32 %v55_v27, %v43_v11 }
  0xfe   :  { %v189_v29 = vpop.eup %188  ;;  %v59_v30 = vadd.f32 1e-05, %v57_v28 }
  0xff   :  { %v61_v31 = vmul.f32 %v189_v29, %v58_v26  ;;  %vm67_vm2 = vweird.f32 %v189_v29 }
 0x100   :  { %190 = vrsqrt.f32 %v59_v30  ;;  %vm68_vm4 = vmor %vm66_vm3, %vm67_vm2  ;;  %vm76_vm6 = vweird.f32 %v59_v30 }
 0x101   :  { %v62_v32 = vmul.f32 %v189_v29, %v61_v31 }
 0x103   :  { %v63_v33 = vmul.f32 0.5, %v62_v32 }
 0x105   :  { %v64_v34 = vsub.f32 1.5, %v63_v33 }
 0x106   :  { %v191_v35 = vpop.eup %190 }
 0x107   :  { %v65_v36 = vmul.f32 %v189_v29, %v64_v34  ;;  %v71_v37 = vmul.f32 %v191_v35, %v59_v30  ;;  %vm77_vm5 = vweird.f32 %v191_v35 }
 0x108   :  { %vm78_vm7 = vmor %vm76_vm6, %vm77_vm5 }
 0x109   :  { %v72_v38 = vmul.f32 %v191_v35, %v71_v37  ;;  %v69_v39 = vsel %vm68_vm4, %v189_v29, %v65_v36 }
 0x10a   :  { %v80_v42 = vmul.f32 %v69_v39, %v46_v14 }
 0x10b   :  { %v73_v40 = vmul.f32 0.5, %v72_v38 }
 0x10c   :  { %v85_v47 = vmul.f32 %v183_v43, %v80_v42 }
 0x10d   :  { %v74_v41 = vsub.f32 1.5, %v73_v40 }
 0x10e   :  { %v90_v50 = vadd.f32 %v184_v48, %v85_v47 }
 0x10f   :  { %v75_v44 = vmul.f32 %v191_v35, %v74_v41 }
 0x111   :  { %v79_v45 = vsel %vm78_vm7, %v191_v35, %v75_v44 }
 0x112   :  { %v81_v46 = vmul.f32 %v79_v45, %v47_v19 }
 0x114   :  { %v86_v49 = vmul.f32 %v183_v43, %v81_v46 }
 0x116   :  { %v91_v51 = vadd.f32 %v184_v48, %v86_v49 }
 0x118   :  { %v92_v52 = vpack.c.bf16 %v91_v51, %v90_v50 }
 0x11a   :  { %173 = vmatmul.msk.bf16.vlgmr.msra.gmra.mxu0 %vm30_vm0, %v92_v52 }
 0x197   :  { %v125_v54 = vpop.f32.mrf.mxu0 }
 0x198   :  { %v126_v55 = vadd.f32 %v185_v53, %v125_v54 }
 0x19a   :  { %v130_v56 = vpack.c.bf16 %v126_v55, %v126_v55 }
 0x19c   :  { %133 = vst.msk [vmem:[%s287_s5] sm:$0xf] %vm132_vm8, %v130_v56  ;;  %145 = vrot.lane.b32.xlu0 %v130_v56, %s193_s2  ;;  %137 = vrot.lane.b32.xlu2 %v130_v56, %s194_s12 }
 0x19f   :  { %v127_v57 = vpop.f32.mrf.mxu0 }
 0x1a0   :  { %v128_v58 = vadd.f32 %v185_v53, %v127_v57 }
 0x1a2   :  { %v131_v59 = vpack.c.bf16 %v128_v58, %v128_v58 }
 0x1a4   :  { %134 = vst.msk [vmem:[%s287_s5 + $0x4] sm:$0xf] %vm132_vm8, %v131_v59  ;;  %147 = vrot.lane.b32.xlu1 %v131_v59, %s193_s2  ;;  %139 = vrot.lane.b32.xlu2 %v131_v59, %s194_s12 }
 0x1f6   :  { %v138_v60 = vpop.permute.xlu2 %137 }
 0x1f7   :  { %143 = vst.msk [vmem:[%s288_s6] sm:$0xf] %vm132_vm8, %v138_v60 }
 0x1fe   :  { %v140_v61 = vpop.permute.xlu2 %139 }
 0x1ff   :  { %144 = vst.msk [vmem:[%s288_s6 + $0x4] sm:$0xf] %vm132_vm8, %v140_v61 }
 0x20e   :  { %v146_v62 = vpop.permute.xlu0 %145 }
 0x20f   :  { %151 = vst.msk [vmem:[%s289_s7] sm:$0xf] %vm132_vm8, %v146_v62 }
 0x216   :  { %v148_v63 = vpop.permute.xlu1 %147 }
 0x217   :  { %152 = vst.msk [vmem:[%s289_s7 + $0x4] sm:$0xf] %vm132_vm8, %v148_v63 }

// kernel: decoder_forward.16
= control target key start
LH: loop header
LB: loop body
LE: loop exit
PB: predicated region body
PF: predicated region fallthrough
CT: control target
= control target key end

     0   :  { %vm44_vm0 = vcmask 261120   ;;  %vm64_vm1 = vcmask 257024   ;;  %s153_s1 = inlined_call_operand.vmem [shape: bf16[32,64], index: 1, kind: input, shape index: {}]   ;;  %s154_s2 = inlined_call_operand.vmem [shape: f32[1,64], index: 2, kind: input, shape index: {}]   ;;  %s155_s0 = inlined_call_operand.vmem [shape: bf16[16,32], index: 0, kind: input, shape index: {}]   ;;  %s156_s3 = inlined_call_operand.vmem [shape: bf16[16,32], index: 3, kind: output, shape index: {0}]   ;;  %s157_s4 = inlined_call_operand.vmem [shape: bf16[16,32], index: 4, kind: output, shape index: {1}]  }
   0x1   :  { %v100_v0 = vld [vmem:[%s153_s1 + $0x8] sm:$0xff]  ;;  %v99_v1 = vld [vmem:[%s153_s1] sm:$0xff]  ;;  %s103_s1 = smov 96  }
   0x2   :  { %54 = vmatpush.bf16.msra.mxu0 %v100_v0  ;;  %v98_v2 = vld [vmem:[%s155_s0] sm:$0xff] }
   0x3   :  { %v102_v3 = vld [vmem:[%s154_s2] ss:$0 sm:$0xff] }
   0x6   :  { %55 = vmatpush.bf16.msra.mxu0 %v99_v1 }
   0x9   :  { %97 = vmatmul.msk.bf16.vlgmr.msra.gmra.mxu0 %vm44_vm0, %v98_v2 }
  0x86   :  { %v57_v4 = vpop.f32.mrf.mxu0 }
  0x87   :  { %v58_v5 = vadd.f32 %v102_v3, %v57_v4 }
  0x89   :  { %v62_v6 = vpack.c.bf16 %v58_v5, %v58_v5 }
  0x8b   :  { %65 = vst.msk [vmem:[%s156_s3] sm:$0xf] %vm64_vm1, %v62_v6  ;;  %69 = vrot.lane.b32.xlu0 %v62_v6, %s103_s1 }
  0x8e   :  { %v59_v7 = vpop.f32.mrf.mxu0 }
  0x8f   :  { %v60_v8 = vadd.f32 %v102_v3, %v59_v7 }
  0x91   :  { %v63_v9 = vpack.c.bf16 %v60_v8, %v60_v8 }
  0x93   :  { %66 = vst.msk [vmem:[%s156_s3 + $0x4] sm:$0xf] %vm64_vm1, %v63_v9  ;;  %71 = vrot.lane.b32.xlu0 %v63_v9, %s103_s1 }
  0xfd   :  { %v70_v10 = vpop.permute.xlu0 %69 }
  0xfe   :  { %75 = vst.msk [vmem:[%s157_s4] sm:$0xf] %vm64_vm1, %v70_v10 }
 0x105   :  { %v72_v11 = vpop.permute.xlu0 %71 }
 0x106   :  { %76 = vst.msk [vmem:[%s157_s4 + $0x4] sm:$0xf] %vm64_vm1, %v72_v11 }

// kernel: decoder_forward.15
= control target key start
LH: loop header
LB: loop body
LE: loop exit
PB: predicated region body
PF: predicated region fallthrough
CT: control target
= control target key end

     0   :  { %vm27_vm0 = vcmask 261120   ;;  %v161_v5 = vmov 32.0   ;;  %vm129_vm8 = vcmask 257024   ;;  %s221_s0 = inlined_call_operand.vmem [shape: bf16[16,32], index: 0, kind: input, shape index: {}]   ;;  %s222_s1 = inlined_call_operand.vmem [shape: f32[1,32], index: 1, kind: input, shape index: {}]   ;;  %s223_s2 = inlined_call_operand.vmem [shape: f32[1,32], index: 2, kind: input, shape index: {}]   ;;  %s224_s4 = inlined_call_operand.vmem [shape: f32[1,32], index: 4, kind: input, shape index: {}]   ;;  %s225_s3 = inlined_call_operand.vmem [shape: bf16[32,32], index: 3, kind: input, shape index: {}]   ;;  %s226_s5 = inlined_call_operand.vmem [shape: bf16[16,32], index: 5, kind: output, shape index: {}]  }
   0x1   :  { %v148_v0 = vld [vmem:[%s221_s0] sm:$0xff]   ;;  %155 = vrcp.f32 %v161_v5  ;;  %v146_v22 = vld [vmem:[%s225_s3 + $0x8] sm:$0xff] }
   0x2   :  { %v149_v1 = vunpack.c.l.bf16 %v148_v0  ;;  %v150_v3 = vunpack.c.h.bf16 %v148_v0  ;;  %119 = vmatpush.bf16.msra.mxu0 %v146_v22  ;;  %v145_v24 = vld [vmem:[%s225_s3] sm:$0xff] }
   0x3   :  { %v152_v43 = vld [vmem:[%s222_s1] ss:$0 sm:$0xff] }
   0x4   :  { %v28_v2 = vsel %vm27_vm0, %v149_v1, 0.0  ;;  %v31_v4 = vsel %vm27_vm0, %v150_v3, 0.0  ;;  %v153_v48 = vld [vmem:[%s223_s2] ss:$0 sm:$0xff] }
   0x5   :  { %29 = vadd.xlane.f32.xlu0 %v28_v2  ;;  %v154_v53 = vld [vmem:[%s224_s4] ss:$0 sm:$0xff] }
   0x6   :  { %120 = vmatpush.bf16.msra.mxu0 %v145_v24 }
   0x7   :  { %v156_v6 = vpop.eup %155 }
   0x8   :  { %v35_v7 = vmul.f32 32.0, %v156_v6  ;;  %vm39_vm1 = vweird.f32 %v156_v6 }
   0xa   :  { %v36_v8 = vsub.f32 1.0, %v35_v7 }
   0xc   :  { %v37_v9 = vmul.f32 %v156_v6, %v36_v8 }
   0xd   :  { %32 = vadd.xlane.f32.xlu0 %v31_v4 }
   0xe   :  { %v38_v10 = vadd.f32 %v156_v6, %v37_v9 }
  0x10   :  { %v40_v11 = vsel %vm39_vm1, %v156_v6, %v38_v10 }
  0x78   :  { %v30_v12 = vpop.xlane.xlu0 %29 }
  0x79   :  { %v41_v13 = vmul.f32 %v40_v11, %v30_v12 }
  0x7b   :  { %v43_v14 = vsub.f32 %v149_v1, %v41_v13 }
  0x7d   :  { %v45_v15 = vmul.f32 %v43_v14, %v43_v14 }
  0x7f   :  { %v47_v16 = vsel %vm27_vm0, %v45_v15, 0.0 }
  0x80   :  { %48 = vadd.xlane.f32.xlu1 %v47_v16  ;;  %v33_v17 = vpop.xlane.xlu0 %32 }
  0x81   :  { %v42_v18 = vmul.f32 %v40_v11, %v33_v17 }
  0x83   :  { %v44_v19 = vsub.f32 %v150_v3, %v42_v18 }
  0x85   :  { %v46_v20 = vmul.f32 %v44_v19, %v44_v19 }
  0x87   :  { %v50_v21 = vsel %vm27_vm0, %v46_v20, 0.0 }
  0x88   :  { %51 = vadd.xlane.f32.xlu1 %v50_v21 }
  0xf3   :  { %v49_v23 = vpop.xlane.xlu1 %48 }
  0xf4   :  { %v53_v25 = vmul.f32 %v49_v23, %v40_v11 }
  0xf6   :  { %v55_v26 = vadd.f32 1e-05, %v53_v25 }
  0xf8   :  { %157 = vrsqrt.f32 %v55_v26  ;;  %vm63_vm3 = vweird.f32 %v55_v26 }
  0xfb   :  { %v52_v27 = vpop.xlane.xlu1 %51 }
  0xfc   :  { %v54_v28 = vmul.f32 %v52_v27, %v40_v11 }
  0xfe   :  { %v158_v29 = vpop.eup %157  ;;  %v56_v30 = vadd.f32 1e-05, %v54_v28 }
  0xff   :  { %v58_v31 = vmul.f32 %v158_v29, %v55_v26  ;;  %vm64_vm2 = vweird.f32 %v158_v29 }
 0x100   :  { %159 = vrsqrt.f32 %v56_v30  ;;  %vm65_vm4 = vmor %vm63_vm3, %vm64_vm2  ;;  %vm73_vm6 = vweird.f32 %v56_v30 }
 0x101   :  { %v59_v32 = vmul.f32 %v158_v29, %v58_v31 }
 0x103   :  { %v60_v33 = vmul.f32 0.5, %v59_v32 }
 0x105   :  { %v61_v34 = vsub.f32 1.5, %v60_v33 }
 0x106   :  { %v160_v35 = vpop.eup %159 }
 0x107   :  { %v62_v36 = vmul.f32 %v158_v29, %v61_v34  ;;  %v68_v37 = vmul.f32 %v160_v35, %v56_v30  ;;  %vm74_vm5 = vweird.f32 %v160_v35 }
 0x108   :  { %vm75_vm7 = vmor %vm73_vm6, %vm74_vm5 }
 0x109   :  { %v69_v38 = vmul.f32 %v160_v35, %v68_v37  ;;  %v66_v39 = vsel %vm65_vm4, %v158_v29, %v62_v36 }
 0x10a   :  { %v77_v42 = vmul.f32 %v66_v39, %v43_v14 }
 0x10b   :  { %v70_v40 = vmul.f32 0.5, %v69_v38 }
 0x10c   :  { %v82_v47 = vmul.f32 %v152_v43, %v77_v42 }
 0x10d   :  { %v71_v41 = vsub.f32 1.5, %v70_v40 }
 0x10e   :  { %v87_v50 = vadd.f32 %v153_v48, %v82_v47 }
 0x10f   :  { %v72_v44 = vmul.f32 %v160_v35, %v71_v41 }
 0x111   :  { %v76_v45 = vsel %vm75_vm7, %v160_v35, %v72_v44 }
 0x112   :  { %v78_v46 = vmul.f32 %v76_v45, %v44_v19 }
 0x114   :  { %v83_v49 = vmul.f32 %v152_v43, %v78_v46 }
 0x116   :  { %v88_v51 = vadd.f32 %v153_v48, %v83_v49 }
 0x118   :  { %v89_v52 = vpack.c.bf16 %v88_v51, %v87_v50 }
 0x11a   :  { %144 = vmatmul.msk.bf16.vlgmr.msra.gmra.mxu0 %vm27_vm0, %v89_v52 }
 0x197   :  { %v122_v54 = vpop.f32.mrf.mxu0 }
 0x198   :  { %v123_v55 = vadd.f32 %v154_v53, %v122_v54 }
 0x19a   :  { %v127_v56 = vpack.c.bf16 %v123_v55, %v123_v55 }
 0x19c   :  { %130 = vst.msk [vmem:[%s226_s5] sm:$0xf] %vm129_vm8, %v127_v56 }
 0x19f   :  { %v124_v57 = vpop.f32.mrf.mxu0 }
 0x1a0   :  { %v125_v58 = vadd.f32 %v154_v53, %v124_v57 }
 0x1a2   :  { %v128_v59 = vpack.c.bf16 %v125_v58, %v125_v58 }
 0x1a4   :  { %131 = vst.msk [vmem:[%s226_s5 + $0x4] sm:$0xf] %vm129_vm8, %v128_v59 }

// kernel: decoder_forward.14
= control target key start
LH: loop header
LB: loop body
LE: loop exit
PB: predicated region body
PF: predicated region fallthrough
CT: control target
= control target key end

     0   :  { %s1234_s21 = smov 0   ;;  %s1236_s22 = smov 0   ;;  %s1460_s0 = inlined_call_operand.vmem [shape: bf16[2,8,32], index: 0, kind: input, shape index: {}]   ;;  %s1461_s1 = inlined_call_operand.vmem [shape: bf16[2,8,32], index: 1, kind: input, shape index: {}]   ;;  %s1462_s2 = inlined_call_operand.vmem [shape: bf16[2,8,32], index: 2, kind: input, shape index: {}]   ;;  %s1463_s3 = inlined_call_operand.vmem [shape: bf16[2,8,32], index: 3, kind: input, shape index: {}]   ;;  %s1464_s4 = inlined_call_operand.vmem [shape: bf16[32,32], index: 4, kind: input, shape index: {}]   ;;  %s1465_s5 = inlined_call_operand.vmem [shape: f32[1,32], index: 5, kind: input, shape index: {}]   ;;  %s1466_s6 = inlined_call_operand.vmem [shape: bf16[2,8,32], index: 6, kind: output, shape index: {}]  }
   0x1   :  { %s1238_s23 = smov 0  }
   0x2 LB: > { %s35_s24 = sadd.s32 1, %s1187_s22  ;;  %p1091_p0 = scmp.ge.s32.totalorder %s1191_s23, 1  ;;  %s1191_s23 = sphi %s1238_s23, %s16_s23   ;;  %s1187_s22 = sphi %s1236_s22, %s1468_s22   ;;  %s1183_s21 = sphi %s1234_s21, %s1467_s21  }
   0x3   : > { %p37_p1 = scmp.ge.s32.totalorder %s35_s24, 2  ;;  %p279_p2 = scmp.lt.s32.totalorder %s1191_s23, 3 }
   0x5   : > { %s1470_s24 = smov (%p37_p1, %s35_s24), 0  ;;  %p280_p3 = pnand %p1091_p0, %p279_p2 }
   0x6   : > { %p334_p4 = scmp.lt.s32.totalorder (!%p280_p3), %s1183_s21, 1  ;;  %s1195_s8 = smov (!%p280_p3), 120  }
   0x7   : > { %283 = sbr.rel (%p280_p3) target bundleno = 1184 (0x4a0), region = 44  ;;  %s1197_s9 = smov (!%p280_p3), 104  }
   0x8   : > { %s1198_s10 = smov (!%p280_p3), 112  }
   0xc   : > { %s1472_s21 = smov (!%p334_p4, %s1183_s21), 1  ;;  %vm374_vm0 = vcmask 64512   ;;  %vm379_vm1 = vcmask 7168   ;;  %v1193_v3 = vmov -1e+30   ;;  %v395_v4 = vlaneseq }
   0xd   : > { %s1252_s25 = sshll.u32 %s1472_s21, 2  ;;  %380 = vst.msk [vmem:[#allocation3] sm:$0xff] %vm379_vm1, %v1193_v3  ;;  %v1194_v15 = vmov 0   ;;  %v1196_v16 = vmov 0.0   ;;  %vm464_vm3 = vcmask 1043456  }
   0xe   : > { %s1258_s28 = scalar_lea.vmem %s1462_s2, %s1252_s25  ;;  %s1266_s7 = scalar_lea.vmem %s1461_s1, %s1252_s25  ;;  %381 = vst.msk [vmem:[#allocation3 + $0x8] sm:$0xff] %vm379_vm1, %v1193_v3  ;;  %v1274_v5 = vshrl.u32 %v395_v4, 7  ;;  %v1276_v6 = vand.u32 127, %v395_v4  ;;  %1141 = vset.pattern.permute.xlu1 %v1194_v15  ;;  %1142 = vset.pattern.permute.xlu2 %v1194_v15 }
   0xf   : > { %v405_v0 = vld [vmem:[%s1258_s28] sm:$0xf]  ;;  %382 = vst.msk [vmem:[#allocation3 + $0x10] sm:$0xff] %vm379_vm1, %v1193_v3  ;;  %1143 = vset.pattern.permute.xlu0 %v1194_v15  ;;  %s1323_s13 = scalar_lea.vmem %s1463_s3, %s1252_s25 }
  0x10   : > { %v412_v1 = vsel %vm374_vm0, %v405_v0, 0  ;;  %v404_v2 = vld [vmem:[%s1266_s7] sm:$0xf]  ;;  %383 = vst.msk [vmem:[#allocation3 + $0x18] sm:$0xff] %vm379_vm1, %v1193_v3  ;;  %vm403_vm2 = vcmp.ge.s32.totalorder %v1274_v5, %v1276_v6 }
  0x11   : > { %421 = vmatpush.bf16.xpose.msra.mxu0 %v412_v1  ;;  %v485_v12 = vld [vmem:[%s1258_s28] sm:$0xf]  ;;  %384 = vst.msk [vmem:[#allocation4] sm:$0xff] %vm379_vm1, %v1196_v16 }
  0x12   : > { %v493_v13 = vunpack.c.l.b16 %v485_v12  ;;  %375 = vst.msk [vmem:[#allocation2] sm:$0xff] %vm374_vm0, %v1196_v16  ;;  %v675_v17 = vld [vmem:[%s1258_s28] sm:$0xf] }
  0x13   : > { %376 = vst.msk [vmem:[#allocation2 + $0x8] sm:$0xff] %vm374_vm0, %v1196_v16  ;;  %v683_v18 = vunpack.c.l.b16 %v675_v17  ;;  %v580_v19 = vld [vmem:[%s1258_s28] sm:$0xf]  ;;  %s340_s28 = scalar_lea.vmem %s1460_s0, %s1252_s25 }
  0x14   : > { %v494_v14 = vpack.c.b16 %v493_v13, %v493_v13  ;;  %377 = vst.msk [vmem:[#allocation2 + $0x10] sm:$0xff] %vm374_vm0, %v1196_v16  ;;  %v588_v21 = vunpack.c.l.b16 %v580_v19  ;;  %v579_v23 = vld [vmem:[%s1266_s7] sm:$0xf] }
  0x15   : > { %378 = vst.msk [vmem:[#allocation2 + $0x18] sm:$0xff] %vm374_vm0, %v1196_v16  ;;  %v684_v20 = vpack.c.b16 %v683_v18, %v683_v18  ;;  %v1301_v24 = vld [vmem:[#allocation3] sm:$0xff]  ;;  %v583_v27 = vunpack.c.l.b16 %v579_v23  ;;  %v1358_v5 = vld [vmem:[#allocation3 + $0x8] sm:$0xff] }
  0x16   : > { %385 = vst.msk [vmem:[#allocation4 + $0x8] sm:$0xff] %vm379_vm1, %v1196_v16  ;;  %v589_v22 = vpack.c.b16 %v588_v21, %v588_v21  ;;  %v484_v26 = vld [vmem:[%s1266_s7] sm:$0xf] }
  0x17   : > { %386 = vst.msk [vmem:[#allocation4 + $0x10] sm:$0xff] %vm379_vm1, %v1196_v16  ;;  %685 = vrot.lane.b32.xlu2 %v684_v20, %s1197_s9  ;;  %v488_v30 = vunpack.c.l.b16 %v484_v26  ;;  %v584_v31 = vpack.c.b16 %v583_v27, %v583_v27  ;;  %v674_v33 = vld [vmem:[%s1266_s7] sm:$0xf]  ;;  %v1378_v20 = vld [vmem:[#allocation3 + $0x10] sm:$0xff] }
  0x18   : > { %1097 = vmatmul.msk.bf16.vlgmr.msra.gmra.mxu0 %vm374_vm0, %v404_v2  ;;  %387 = vst.msk [vmem:[#allocation4 + $0x18] sm:$0xff] %vm379_vm1, %v1196_v16  ;;  %v678_v34 = vunpack.c.l.b16 %v674_v33  ;;  %v406_v40 = vld [vmem:[%s1323_s13] sm:$0xf] }
  0x19   : > { %v489_v32 = vpack.c.b16 %v488_v30, %v488_v30  ;;  %v466_v41 = vsel %vm464_vm3, %v406_v40, 0  ;;  %v486_v4 = vld [vmem:[%s1323_s13] sm:$0xf] }
  0x1a   : > { %v679_v35 = vpack.c.b16 %v678_v34, %v678_v34  ;;  %475 = vmatpush.bf16.msra.mxu1 %v466_v41 }
  0x1f   : > { %590 = vrot.lane.b32.xlu2 %v589_v22, %s1198_s10  ;;  %v581_v22 = vld [vmem:[%s1323_s13] sm:$0xf] }
  0x20   : > { %v648_v26 = vunpack.c.l.b16 %v581_v22 }
  0x22   : > { %v649_v27 = vpack.c.b16 %v648_v26, %v648_v26 }
  0x27   : > { %585 = vrot.lane.b32.xlu2 %v584_v31, %s1198_s10 }
  0x71   : > { %v686_v38 = vpop.permute.xlu2 %685 }
  0x72   : > { %v691_v39 = vsel %vm374_vm0, %v686_v38, 0 }
  0x73   : > { %700 = vmatpush.bf16.xpose.msrb.mxu0 %v691_v39 }
  0x79   : > { %v591_v42 = vpop.permute.xlu2 %590 }
  0x7a   : > { %v596_v43 = vsel %vm374_vm0, %v591_v42, 0 }
  0x7b   : > { %605 = vmatpush.bf16.xpose.msrb.mxu1 %v596_v43 }
  0x81   : > { %v586_v51 = vpop.permute.xlu2 %585 }
  0x95   : > { %v423_v7 = vpop.f32.mrf.mxu0 }
  0x96   : > { %v427_v8 = vmul.f32 0.35355338, %v423_v7  ;;  %v553_v7 = vunpack.c.l.b16 %v486_v4  ;;  %v631_v4 = vld [vmem:[#allocation4 + $0x10] sm:$0xff] }
  0x98   : > { %v1283_v9 = vsel %vm403_vm2, %v427_v8, -1e+30 }
  0x99   : > { %v430_v10 = vsel %vm374_vm0, %v1283_v9, -inf }
  0x9a   : > { %431 = vmax.xlane.f32.xlu0 %v430_v10  ;;  %v676_v10 = vld [vmem:[%s1323_s13] sm:$0xf] }
  0x9d   : > { %v425_v11 = vpop.f32.mrf.mxu0 }
  0x9e   : > { %v743_v11 = vunpack.c.l.b16 %v676_v10 }
  0xa0   : > { %v744_v12 = vpack.c.b16 %v743_v11, %v743_v11 }
  0xae   : > { %495 = vrot.lane.b32.xlu0 %v494_v14, %s1195_s8  ;;  %v1360_v14 = vld [vmem:[#allocation3 + $0x18] sm:$0xff] }
 0x10d   : > { %v432_v25 = vpop.xlane.xlu0 %431 }
 0x10e   : > { %v1306_v28 = vmax.f32 %v1301_v24, %v432_v25 }
 0x110   : > { %v434_v29 = vsub.f32 %v1301_v24, %v1306_v28  ;;  %483 = vst.msk [vmem:[#allocation3] sm:$0xff] %vm379_vm1, %v1306_v28  ;;  %439 = vperm.xlu1 %1141, %v1306_v28  }
 0x112   : > { %v435_v31 = vmul.f32 1.442695, %v434_v29 }
 0x118   : > { %490 = vrot.lane.b32.xlu1 %v489_v32, %s1195_s8 }
 0x120   : > { %680 = vrot.lane.b32.xlu1 %v679_v35, %s1197_s9  ;;  %v496_v36 = vpop.permute.xlu0 %495  ;;  %v445_v35 = vld [vmem:[#allocation4] sm:$0xff] }
 0x121   : > { %v501_v37 = vsel %vm374_vm0, %v496_v36, 0 }
 0x122   : > { %510 = vmatpush.bf16.xpose.msra.mxu2 %v501_v37 }
 0x182   : > { %v440_v44 = vpop.permute.xlu1 %439 }
 0x183   : > { %v442_v45 = vsub.f32 %v1283_v9, %v440_v44  ;;  %v554_v9 = vpack.c.b16 %v553_v7, %v553_v7 }
 0x185   : > { %v443_v46 = vmul.f32 1.442695, %v442_v45 }
 0x187   : > { %1145 = vpow2.f32 %v443_v46 }
 0x188   : > { %1147 = vpow2.f32 %v435_v31 }
 0x18a   : > { %v491_v47 = vpop.permute.xlu1 %490 }
 0x18b   : > { %1099 = vmatmul.msk.bf16.vlgmr.msra.gmra.mxu2 %vm374_vm0, %v491_v47 }
 0x18d   : > { %v1146_v48 = vpop.eup %1145 }
 0x18e   : > { %v460_v49 = vpack.c.bf16 %v1146_v48, %v1146_v48  ;;  %v447_v13 = vsel %vm374_vm0, %v1146_v48, 0.0  ;;  %v1148_v34 = vpop.eup %1147 }
 0x18f   : > { %v446_v36 = vmul.f32 %v1148_v34, %v445_v35 }
 0x190   : > { %1098 = vmatmul.msk.bf16.vlgmr.msra.gmra.mxu1 %vm374_vm0, %v460_v49 }
 0x192   : > { %v681_v50 = vpop.permute.xlu1 %680 }
 0x193   : > { %1103 = vmatmul.msk.bf16.vlgmr.msrb.gmra.mxu0 %vm374_vm0, %v681_v50 }
 0x1a0   : > { %1101 = vmatmul.msk.bf16.vlgmr.msrb.gmra.mxu1 %vm374_vm0, %v586_v51 }
 0x20d   : > { %v1333_v52 = vpop.f32.mrf.mxu1 }
 0x20e   : > { %v512_v53 = vpop.f32.mrf.mxu2 }
 0x20f   : > { %v516_v54 = vmul.f32 0.35355338, %v512_v53 }
 0x210   : > { %v702_v55 = vpop.f32.mrf.mxu0 }
 0x211   : > { %v706_v56 = vmul.f32 0.35355338, %v702_v55  ;;  %v1338_v57 = vsel %vm403_vm2, %v516_v54, -1e+30 }
 0x212   : > { %v520_v58 = vsel %vm374_vm0, %v1338_v57, -inf }
 0x213   : > { %521 = vmax.xlane.f32.xlu1 %v520_v58  ;;  %v1345_v59 = vsel %vm403_vm2, %v706_v56, -1e+30 }
 0x214   : > { %v710_v60 = vsel %vm374_vm0, %v1345_v59, -inf }
 0x215   : > { %v479_v61 = vpop.f32.mrf.mxu1  ;;  %711 = vmax.xlane.f32.xlu2 %v710_v60 }
 0x216   : > { %v514_v62 = vpop.f32.mrf.mxu2  ;;  %v536_v61 = vld [vmem:[#allocation4 + $0x8] sm:$0xff] }
 0x218   : > { %v704_v63 = vpop.f32.mrf.mxu0 }
 0x21d   : > { %v607_v0 = vpop.f32.mrf.mxu1 }
 0x21e   : > { %v611_v1 = vmul.f32 0.35355338, %v607_v0 }
 0x220   : > { %v612_v2 = vsel %vm403_vm2, %v611_v1, -1e+30 }
 0x221   : > { %v615_v3 = vsel %vm374_vm0, %v612_v2, -inf }
 0x222   : > { %616 = vmax.xlane.f32.xlu0 %v615_v3 }
 0x225   : > { %v609_v8 = vpop.f32.mrf.mxu1 }
 0x22c   : > { %555 = vrot.lane.b32.xlu1 %v554_v9, %s1195_s8 }
 0x234   : > { %745 = vrot.lane.b32.xlu1 %v744_v12, %s1197_s9  ;;  %v453_v12 = vld [vmem:[#allocation2] sm:$0xff]  ;;  %s368_s9 = scalar_lea.vmem %s1466_s6, %s1252_s25 }
 0x25e   : > { %448 = vadd.xlane.f32.xlu1 %v447_v13 }
 0x286   : > { %v522_v6 = vpop.xlane.xlu1 %521 }
 0x287   : > { %v1363_v15 = vmax.f32 %v1358_v5, %v522_v6 }
 0x288   : > { %v712_v16 = vpop.xlane.xlu2 %711 }
 0x289   : > { %v524_v17 = vsub.f32 %v1358_v5, %v1363_v15  ;;  %578 = vst.msk [vmem:[#allocation3 + $0x8] sm:$0xff] %vm379_vm1, %v1363_v15  ;;  %v1370_v18 = vmax.f32 %v1360_v14, %v712_v16  ;;  %529 = vperm.xlu2 %1142, %v1363_v15   ;;  %v795_v5 = vld [vmem:[%s1464_s4] sm:$0xf] }
 0x28a   : > { %v847_v15 = vsel %vm464_vm3, %v795_v5, 0 }
 0x28b   : > { %v714_v19 = vsub.f32 %v1360_v14, %v1370_v18  ;;  %768 = vst.msk [vmem:[#allocation3 + $0x18] sm:$0xff] %vm379_vm1, %v1370_v18  ;;  %719 = vperm.xlu0 %1143, %v1370_v18  }
 0x28d   : > { %v715_v7 = vmul.f32 1.442695, %v714_v19 }
 0x295   : > { %v617_v21 = vpop.xlane.xlu0 %616 }
 0x296   : > { %v618_v23 = vmax.f32 %v1378_v20, %v617_v21 }
 0x298   : > { %v619_v25 = vsub.f32 %v1378_v20, %v618_v23  ;;  %673 = vst.msk [vmem:[#allocation3 + $0x10] sm:$0xff] %vm379_vm1, %v618_v23  ;;  %624 = vperm.xlu2 %1142, %v618_v23  }
 0x29a   : > { %v620_v0 = vmul.f32 1.442695, %v619_v25 }
 0x29e   : > { %v556_v30 = vpop.permute.xlu1 %555 }
 0x29f   : > { %v561_v33 = vsel %vm464_vm3, %v556_v30, 0 }
 0x2a0   : > { %650 = vrot.lane.b32.xlu2 %v649_v27, %s1198_s10  ;;  %570 = vmatpush.bf16.msra.mxu3 %v561_v33 }
 0x2a6   : > { %v746_v32 = vpop.permute.xlu1 %745 }
 0x2a7   : > { %v751_v41 = vsel %vm464_vm3, %v746_v32, 0 }
 0x2a8   : > { %760 = vmatpush.bf16.msrb.mxu2 %v751_v41 }
 0x2d1   : > { %v449_v37 = vpop.xlane.xlu1 %448 }
 0x2d2   : > { %v450_v38 = vadd.f32 %v449_v37, %v446_v36 }
 0x2d4   : > { %452 = vst.msk [vmem:[#allocation4] sm:$0xff] %vm379_vm1, %v450_v38 }
 0x2db   : > { %v773_v58 = vld [vmem:[#allocation4] sm:$0xff] }
 0x2e3   : > { %v530_v39 = vpop.permute.xlu2 %529 }
 0x2e4   : > { %v532_v40 = vsub.f32 %v1338_v57, %v530_v39 }
 0x2e6   : > { %v533_v24 = vmul.f32 1.442695, %v532_v40 }
 0x2e8   : > { %1149 = vpow2.f32 %v533_v24 }
 0x2ee   : > { %v1150_v28 = vpop.eup %1149 }
 0x2ef   : > { %v538_v29 = vsel %vm374_vm0, %v1150_v28, 0.0  ;;  %v551_v42 = vpack.c.bf16 %v1150_v28, %v1150_v28 }
 0x2f0   : > { %539 = vadd.xlane.f32.xlu0 %v538_v29  ;;  %v821_v29 = vld [vmem:[%s1464_s4 + $0x4] sm:$0xf] }
 0x2f1   : > { %1100 = vmatmul.msk.bf16.vlgmr.msra.gmra.mxu3 %vm374_vm0, %v551_v42  ;;  %v828_v42 = vsel %vm464_vm3, %v821_v29, 0 }
 0x2f2   : > { %v625_v43 = vpop.permute.xlu2 %624  ;;  %837 = vmatpush.bf16.msra.mxu1 %v828_v42 }
 0x2f3   : > { %v627_v44 = vsub.f32 %v612_v2, %v625_v43 }
 0x2f5   : > { %v628_v45 = vmul.f32 1.442695, %v627_v44  ;;  %v544_v44 = vld [vmem:[#allocation2 + $0x8] sm:$0xff] }
 0x2f7   : > { %1151 = vpow2.f32 %v628_v45 }
 0x2fa   : > { %v651_v46 = vpop.permute.xlu2 %650 }
 0x2fb   : > { %v656_v47 = vsel %vm464_vm3, %v651_v46, 0 }
 0x2fc   : > { %665 = vmatpush.bf16.msrb.mxu3 %v656_v47 }
 0x2fd   : > { %v1152_v48 = vpop.eup %1151  ;;  %v720_v49 = vpop.permute.xlu0 %719 }
 0x2fe   : > { %v722_v50 = vsub.f32 %v1345_v59, %v720_v49  ;;  %v633_v51 = vsel %vm374_vm0, %v1152_v48, 0.0  ;;  %v646_v53 = vpack.c.bf16 %v1152_v48, %v1152_v48  ;;  %v525_v59 = vmul.f32 1.442695, %v524_v17  ;;  %v726_v17 = vld [vmem:[#allocation4 + $0x18] sm:$0xff] }
 0x2ff   : > { %634 = vadd.xlane.f32.xlu1 %v633_v51 }
 0x300   : > { %v723_v54 = vmul.f32 1.442695, %v722_v50  ;;  %856 = vmatpush.bf16.msra.mxu3 %v847_v15 }
 0x301   : > { %1102 = vmatmul.msk.bf16.vlgmr.msrb.gmra.mxu3 %vm374_vm0, %v646_v53 }
 0x302   : > { %1153 = vpow2.f32 %v723_v54 }
 0x303   : > { %1155 = vpow2.f32 %v525_v59 }
 0x304   : > { %456 = vperm.xlu0 %1143, %v1148_v34   ;;  %1157 = vpow2.f32 %v620_v0  ;;  %v933_v0 = vld [vmem:[%s1464_s4 + $0xc] sm:$0xf] }
 0x305   : > { %1159 = vpow2.f32 %v715_v7 }
 0x308   : > { %v1154_v55 = vpop.eup %1153 }
 0x309   : > { %v728_v56 = vsel %vm374_vm0, %v1154_v55, 0.0  ;;  %v741_v57 = vpack.c.bf16 %v1154_v55, %v1154_v55  ;;  %v1156_v60 = vpop.eup %1155 }
 0x30a   : > { %729 = vadd.xlane.f32.xlu2 %v728_v56  ;;  %v537_v62 = vmul.f32 %v1156_v60, %v536_v61  ;;  %v1158_v3 = vpop.eup %1157 }
 0x30b   : > { %1104 = vmatmul.msk.bf16.vlgmr.msrb.gmra.mxu2 %vm374_vm0, %v741_v57  ;;  %v632_v8 = vmul.f32 %v1158_v3, %v631_v4  ;;  %v1160_v14 = vpop.eup %1159 }
 0x30c   : > { %v727_v20 = vmul.f32 %v1160_v14, %v726_v17 }
 0x322   : > { %776 = vperm.xlu2 %1142, %v773_v58  }
 0x363   : > { %v540_v63 = vpop.xlane.xlu0 %539 }
 0x364   : > { %v541_v1 = vadd.f32 %v540_v63, %v537_v62  ;;  %v887_v62 = vld [vmem:[%s1464_s4 + $0x8] sm:$0xf] }
 0x365   : > { %v892_v63 = vsel %vm464_vm3, %v887_v62, 0 }
 0x366   : > { %542 = vst.msk [vmem:[#allocation4 + $0x8] sm:$0xff] %vm379_vm1, %v541_v1  ;;  %901 = vmatpush.bf16.msra.mxu0 %v892_v63  ;;  %v938_v1 = vsel %vm464_vm3, %v933_v0, 0 }
 0x367   : > { %947 = vmatpush.bf16.msra.mxu2 %v938_v1 }
 0x36d   : > { %v799_v2 = vld [vmem:[#allocation4 + $0x8] sm:$0xff] }
 0x36e   : > { %802 = vperm.xlu2 %1142, %v799_v2  }
 0x372   : > { %v635_v9 = vpop.xlane.xlu1 %634 }
 0x373   : > { %v636_v10 = vadd.f32 %v635_v9, %v632_v8 }
 0x374   : > { %v572_v11 = vpop.f32.mrf.mxu3 }
 0x375   : > { %637 = vst.msk [vmem:[#allocation4 + $0x10] sm:$0xff] %vm379_vm1, %v636_v10 }
 0x376   : > { %547 = vperm.xlu2 %1142, %v1156_v60   ;;  %v457_v13 = vpop.permute.xlu0 %456 }
 0x377   : > { %v459_v6 = vmul.f32 %v457_v13, %v453_v12 }
 0x379   : > { %v481_v16 = vadd.f32 %v1333_v52, %v459_v6 }
 0x37b   : > { %482 = vst.msk [vmem:[#allocation2] sm:$0xff] %vm374_vm0, %v481_v16  ;;  %v734_v16 = vld [vmem:[#allocation2 + $0x18] sm:$0xff] }
 0x37c   : > { %v574_v18 = vpop.f32.mrf.mxu3  ;;  %v865_v19 = vld [vmem:[#allocation4 + $0x10] sm:$0xff] }
 0x37d   : > { %868 = vperm.xlu0 %1143, %v865_v19   ;;  %v730_v21 = vpop.xlane.xlu2 %729 }
 0x37e   : > { %v731_v22 = vadd.f32 %v730_v21, %v727_v20 }
 0x380   : > { %732 = vst.msk [vmem:[#allocation4 + $0x18] sm:$0xff] %vm379_vm1, %v731_v22 }
 0x382   : > { %v772_v39 = vld [vmem:[#allocation2] sm:$0xff] }
 0x384   : > { %v1415_v23 = vpop.f32.mrf.mxu3 }
 0x385   : > { %642 = vperm.xlu0 %1143, %v1158_v3   ;;  %v777_v25 = vpop.permute.xlu2 %776  ;;  %v639_v3 = vld [vmem:[#allocation2 + $0x10] sm:$0xff] }
 0x386   : > { %1161 = vrcp.f32 %v777_v25  ;;  %v790_v33 = vand.u32 2147483648, %v777_v25  ;;  %v788_v35 = vand.u32 2147483647, %v777_v25  ;;  %vm784_vm5 = vweird.f32 %v777_v25 }
 0x387   : > { %v911_v26 = vld [vmem:[#allocation4 + $0x18] sm:$0xff] }
 0x388   : > { %914 = vperm.xlu1 %1141, %v911_v26   ;;  %v791_v37 = vor.u32 1.1754944e-38, %v790_v33  ;;  %vm789_vm7 = vcmp.eq.f32.partialorder %v788_v35, 8.507059e+37 }
 0x38c   : > { %v1162_v27 = vpop.eup %1161  ;;  %v669_v52 = vpop.f32.mrf.mxu3 }
 0x38d   : > { %v780_v30 = vmul.f32 %v1162_v27, %v777_v25  ;;  %vm785_vm4 = vweird.f32 %v1162_v27 }
 0x38e   : > { %v1417_v31 = vpop.f32.mrf.mxu2  ;;  %vm786_vm6 = vmor %vm784_vm5, %vm785_vm4 }
 0x38f   : > { %v781_v32 = vsub.f32 1.0, %v780_v30 }
 0x390   : > { %737 = vperm.xlu1 %1141, %v1160_v14  }
 0x391   : > { %v782_v34 = vmul.f32 %v1162_v27, %v781_v32 }
 0x393   : > { %v783_v36 = vadd.f32 %v1162_v27, %v782_v34 }
 0x395   : > { %v787_v38 = vsel %vm786_vm6, %v1162_v27, %v783_v36 }
 0x396   : > { %v792_v40 = vsel %vm789_vm7, %v791_v37, %v787_v38  ;;  %v764_v41 = vpop.f32.mrf.mxu2 }
 0x397   : > { %v793_v24 = vmul.f32 %v792_v40, %v772_v39 }
 0x399   : > { %v794_v28 = vpack.c.bf16 %v793_v24, %v793_v24 }
 0x39b   : > { %1106 = vmatmul.msk.bf16.vlgmr.msra.gmra.mxu3 %vm374_vm0, %v794_v28 }
 0x3c8   : > { %v803_v43 = vpop.permute.xlu2 %802 }
 0x3c9   : > { %1163 = vrcp.f32 %v803_v43  ;;  %v816_v54 = vand.u32 2147483648, %v803_v43  ;;  %vm810_vm9 = vweird.f32 %v803_v43  ;;  %v814_v55 = vand.u32 2147483647, %v803_v43 }
 0x3cb   : > { %v817_v57 = vor.u32 1.1754944e-38, %v816_v54  ;;  %vm815_vm11 = vcmp.eq.f32.partialorder %v814_v55, 8.507059e+37 }
 0x3cf   : > { %v1164_v45 = vpop.eup %1163 }
 0x3d0   : > { %v806_v46 = vmul.f32 %v1164_v45, %v803_v43  ;;  %v548_v47 = vpop.permute.xlu2 %547  ;;  %vm811_vm8 = vweird.f32 %v1164_v45 }
 0x3d1   : > { %v550_v48 = vmul.f32 %v548_v47, %v544_v44  ;;  %vm812_vm10 = vmor %vm810_vm9, %vm811_vm8  ;;  %v959_v44 = vld [vmem:[%s340_s28] sm:$0xf] }
 0x3d2   : > { %v807_v49 = vsub.f32 1.0, %v806_v46  ;;  %v1144_v46 = vld [vmem:[%s1465_s5] ss:$0 sm:$0xff] }
 0x3d3   : > { %v576_v50 = vadd.f32 %v572_v11, %v550_v48 }
 0x3d4   : > { %v808_v51 = vmul.f32 %v1164_v45, %v807_v49  ;;  %v960_v49 = vunpack.c.l.bf16 %v959_v44 }
 0x3d5   : > { %577 = vst.msk [vmem:[#allocation2 + $0x8] sm:$0xff] %vm374_vm0, %v576_v50 }
 0x3d6   : > { %v809_v53 = vadd.f32 %v1164_v45, %v808_v51 }
 0x3d8   : > { %v813_v56 = vsel %vm812_vm10, %v1164_v45, %v809_v53 }
 0x3d9   : > { %v818_v58 = vsel %vm815_vm11, %v817_v57, %v813_v56 }
 0x3dc   : > { %v797_v59 = vld [vmem:[#allocation2 + $0x8] sm:$0xff] }
 0x3dd   : > { %v819_v60 = vmul.f32 %v818_v58, %v797_v59 }
 0x3df   : > { %v820_v61 = vpack.c.bf16 %v819_v60, %v819_v60 }
 0x3e1   : > { %1105 = vmatmul.msk.bf16.vlgmr.msra.gmra.mxu1 %vm374_vm0, %v820_v61 }
 0x3ef   : > { %v869_v2 = vpop.permute.xlu0 %868 }
 0x3f0   : > { %1165 = vrcp.f32 %v869_v2  ;;  %v882_v6 = vand.u32 2147483648, %v869_v2  ;;  %vm876_vm13 = vweird.f32 %v869_v2  ;;  %v880_v15 = vand.u32 2147483647, %v869_v2 }
 0x3f2   : > { %v883_v18 = vor.u32 1.1754944e-38, %v882_v6  ;;  %vm881_vm15 = vcmp.eq.f32.partialorder %v880_v15, 8.507059e+37 }
 0x3f6   : > { %v1166_v4 = vpop.eup %1165 }
 0x3f7   : > { %v872_v7 = vmul.f32 %v1166_v4, %v869_v2  ;;  %v643_v8 = vpop.permute.xlu0 %642  ;;  %vm877_vm12 = vweird.f32 %v1166_v4 }
 0x3f8   : > { %v645_v9 = vmul.f32 %v643_v8, %v639_v3  ;;  %vm878_vm14 = vmor %vm876_vm13, %vm877_vm12 }
 0x3f9   : > { %v873_v10 = vsub.f32 1.0, %v872_v7 }
 0x3fa   : > { %v671_v11 = vadd.f32 %v1415_v23, %v645_v9  ;;  %v915_v12 = vpop.permute.xlu1 %914 }
 0x3fb   : > { %v874_v13 = vmul.f32 %v1166_v4, %v873_v10  ;;  %1167 = vrcp.f32 %v915_v12  ;;  %v928_v33 = vand.u32 2147483648, %v915_v12  ;;  %vm922_vm2 = vweird.f32 %v915_v12 }
 0x3fc   : > { %672 = vst.msk [vmem:[#allocation2 + $0x10] sm:$0xff] %vm374_vm0, %v671_v11  ;;  %v926_v34 = vand.u32 2147483647, %v915_v12 }
 0x3fd   : > { %v875_v5 = vadd.f32 %v1166_v4, %v874_v13  ;;  %v929_v36 = vor.u32 1.1754944e-38, %v928_v33 }
 0x3fe   : > { %vm927_vm4 = vcmp.eq.f32.partialorder %v926_v34, 8.507059e+37 }
 0x3ff   : > { %v879_v14 = vsel %vm878_vm14, %v1166_v4, %v875_v5 }
 0x400   : > { %v884_v21 = vsel %vm881_vm15, %v883_v18, %v879_v14 }
 0x401   : > { %v1168_v17 = vpop.eup %1167 }
 0x402   : > { %v918_v19 = vmul.f32 %v1168_v17, %v915_v12  ;;  %v738_v20 = vpop.permute.xlu1 %737  ;;  %vm923_vm1 = vweird.f32 %v1168_v17 }
 0x403   : > { %v740_v22 = vmul.f32 %v738_v20, %v734_v16  ;;  %v863_v23 = vld [vmem:[#allocation2 + $0x10] sm:$0xff]  ;;  %vm924_vm3 = vmor %vm922_vm2, %vm923_vm1 }
 0x404   : > { %v919_v25 = vsub.f32 1.0, %v918_v19  ;;  %v885_v26 = vmul.f32 %v884_v21, %v863_v23 }
 0x405   : > { %v766_v27 = vadd.f32 %v1417_v31, %v740_v22 }
 0x406   : > { %v920_v52 = vmul.f32 %v1168_v17, %v919_v25  ;;  %v886_v30 = vpack.c.bf16 %v885_v26, %v885_v26 }
 0x407   : > { %767 = vst.msk [vmem:[#allocation2 + $0x18] sm:$0xff] %vm374_vm0, %v766_v27 }
 0x408   : > { %v921_v32 = vadd.f32 %v1168_v17, %v920_v52  ;;  %1107 = vmatmul.msk.bf16.vlgmr.msra.gmra.mxu0 %vm374_vm0, %v886_v30 }
 0x40a   : > { %v925_v35 = vsel %vm924_vm3, %v1168_v17, %v921_v32 }
 0x40b   : > { %v930_v37 = vsel %vm927_vm4, %v929_v36, %v925_v35 }
 0x40e   : > { %v909_v38 = vld [vmem:[#allocation2 + $0x18] sm:$0xff] }
 0x40f   : > { %v931_v39 = vmul.f32 %v930_v37, %v909_v38 }
 0x411   : > { %v932_v31 = vpack.c.bf16 %v931_v39, %v931_v39 }
 0x413   : > { %1108 = vmatmul.msk.bf16.vlgmr.msra.gmra.mxu2 %vm374_vm0, %v932_v31  ;;  %vm963_vm0 = vcmask 257024  }
 0x41e   : > { %v858_v40 = vpop.f32.mrf.mxu3 }
 0x426   : > { %v860_v41 = vpop.f32.mrf.mxu3 }
 0x45e   : > { %v839_v24 = vpop.f32.mrf.mxu1 }
 0x45f   : > { %v859_v43 = vadd.f32 %v858_v40, %v839_v24 }
 0x466   : > { %v841_v28 = vpop.f32.mrf.mxu1 }
 0x485   : > { %v903_v29 = vpop.f32.mrf.mxu0 }
 0x486   : > { %v907_v45 = vadd.f32 %v903_v29, %v859_v43 }
 0x48d   : > { %v905_v42 = vpop.f32.mrf.mxu0 }
 0x496   : > { %v949_v47 = vpop.f32.mrf.mxu2 }
 0x497   : > { %v953_v48 = vadd.f32 %v949_v47, %v907_v45 }
 0x499   : > { %v958_v50 = vadd.f32 %v1144_v46, %v953_v48 }
 0x49b   : > { %v961_v51 = vadd.f32 %v960_v49, %v958_v50 }
 0x49d   : > { %v962_v53 = vpack.c.bf16 %v961_v51, %v961_v51 }
 0x49e   : > { %v951_v54 = vpop.f32.mrf.mxu2 }
 0x49f   : > { %964 = vst.msk [vmem:[%s368_s9] sm:$0xf] %vm963_vm0, %v962_v53 }
 0x4a0 PF: > { %s16_s23 = sadd.s32 1, %s1191_s23   ;;  %s1467_s21 = smov %s1187_s22 }
 0x4a1   : > { %p13_p5 = scmp.ge.s32.totalorder %s16_s23, 4   ;;  %s1468_s22 = smov %s1470_s24 }
 0x4a3   :  { %15 = sbr.rel (!%p13_p5) target bundleno = 2 (0x2), region = 110 }

// kernel: decoder_forward.25
= control target key start
LH: loop header
LB: loop body
LE: loop exit
PB: predicated region body
PF: predicated region fallthrough
CT: control target
= control target key end

     0   :  { %vm21_vm0 = vcmask 261120   ;;  %s187_s0 = inlined_call_operand.vmem [shape: bf16[16,32], index: 0, kind: input, shape index: {}]   ;;  %s188_s1 = inlined_call_operand.vmem [shape: f32[1,32], index: 1, kind: input, shape index: {}]   ;;  %s189_s2 = inlined_call_operand.vmem [shape: f32[1,32], index: 2, kind: input, shape index: {}]   ;;  %s190_s3 = inlined_call_operand.hbm [shape: f32[16,32], index: 3, kind: output, shape index: {}]  }
   0x1   :  { %v104_v0 = vld [vmem:[%s187_s0] sm:$0xff]  }
   0x2   :  { %v105_v1 = vunpack.c.l.bf16 %v104_v0 }
   0x3   :  { %8 = vsyncpa [#allocation3], 0  ;;  %v106_v3 = vunpack.c.h.bf16 %v104_v0  ;;  %v145_v5 = vmov 32.0   ;;  %v111_v36 = vld [vmem:[%s188_s1] ss:$0 sm:$0xff]  ;;  %s146_s1 = smov [#allocation2]  }
   0x4   :  { %v22_v2 = vsel %vm21_vm0, %v105_v1, 0.0  ;;  %113 = vrcp.f32 %v145_v5  ;;  %v112_v40 = vld [vmem:[%s189_s2] ss:$0 sm:$0xff]  ;;  %s89_s17 = sshll.u32 %s146_s1, 4  ;;  %s91_s20 = sshll.u32 %s190_s3, 4  ;;  %s90_s17 = int_to_ptr.vmem [resolvable:$true] %s89_s17  ;;  %s92_s20 = int_to_ptr.hbm [resolvable:$true] %s91_s20 }
   0x5   :  { %23 = vadd.xlane.f32.xlu0 %v22_v2  ;;  %v25_v4 = vsel %vm21_vm0, %v106_v3, 0.0  ;;  %s147_s2 = smov 128   ;;  %s148_s21 = smov 8  }
   0xa   :  { %v114_v6 = vpop.eup %113 }
   0xb   :  { %v29_v7 = vmul.f32 32.0, %v114_v6  ;;  %vm33_vm1 = vweird.f32 %v114_v6 }
   0xd   :  { %26 = vadd.xlane.f32.xlu0 %v25_v4  ;;  %v30_v8 = vsub.f32 1.0, %v29_v7 }
   0xf   :  { %v31_v9 = vmul.f32 %v114_v6, %v30_v8 }
  0x11   :  { %v32_v10 = vadd.f32 %v114_v6, %v31_v9 }
  0x13   :  { %v34_v11 = vsel %vm33_vm1, %v114_v6, %v32_v10 }
  0x78   :  { %v24_v12 = vpop.xlane.xlu0 %23 }
  0x79   :  { %v35_v13 = vmul.f32 %v34_v11, %v24_v12 }
  0x7b   :  { %v37_v14 = vsub.f32 %v105_v1, %v35_v13 }
  0x7d   :  { %v39_v15 = vmul.f32 %v37_v14, %v37_v14 }
  0x7f   :  { %v41_v16 = vsel %vm21_vm0, %v39_v15, 0.0 }
  0x80   :  { %42 = vadd.xlane.f32.xlu1 %v41_v16  ;;  %v27_v17 = vpop.xlane.xlu0 %26 }
  0x81   :  { %v36_v18 = vmul.f32 %v34_v11, %v27_v17 }
  0x83   :  { %v38_v19 = vsub.f32 %v106_v3, %v36_v18 }
  0x85   :  { %v40_v20 = vmul.f32 %v38_v19, %v38_v19 }
  0x87   :  { %v44_v21 = vsel %vm21_vm0, %v40_v20, 0.0 }
  0x88   :  { %45 = vadd.xlane.f32.xlu1 %v44_v21 }
  0xf3   :  { %v43_v22 = vpop.xlane.xlu1 %42 }
  0xf4   :  { %v47_v23 = vmul.f32 %v43_v22, %v34_v11 }
  0xf6   :  { %v49_v24 = vadd.f32 1e-05, %v47_v23 }
  0xf8   :  { %115 = vrsqrt.f32 %v49_v24  ;;  %vm57_vm3 = vweird.f32 %v49_v24 }
  0xfb   :  { %v46_v25 = vpop.xlane.xlu1 %45 }
  0xfc   :  { %v48_v26 = vmul.f32 %v46_v25, %v34_v11 }
  0xfe   :  { %v116_v27 = vpop.eup %115  ;;  %v50_v28 = vadd.f32 1e-05, %v48_v26 }
  0xff   :  { %v52_v29 = vmul.f32 %v116_v27, %v49_v24  ;;  %vm58_vm2 = vweird.f32 %v116_v27 }
 0x100   :  { %117 = vrsqrt.f32 %v50_v28  ;;  %vm59_vm4 = vmor %vm57_vm3, %vm58_vm2  ;;  %vm67_vm6 = vweird.f32 %v50_v28 }
 0x101   :  { %v53_v30 = vmul.f32 %v116_v27, %v52_v29 }
 0x103   :  { %v54_v31 = vmul.f32 0.5, %v53_v30 }
 0x105   :  { %v55_v32 = vsub.f32 1.5, %v54_v31 }
 0x106   :  { %v118_v33 = vpop.eup %117 }
 0x107   :  { %v56_v34 = vmul.f32 %v116_v27, %v55_v32  ;;  %v62_v35 = vmul.f32 %v118_v33, %v50_v28  ;;  %vm68_vm5 = vweird.f32 %v118_v33 }
 0x108   :  { %vm69_vm7 = vmor %vm67_vm6, %vm68_vm5 }
 0x109   :  { %v60_v37 = vsel %vm59_vm4, %v116_v27, %v56_v34  ;;  %v63_v38 = vmul.f32 %v118_v33, %v62_v35 }
 0x10a   :  { %v71_v39 = vmul.f32 %v60_v37, %v37_v14 }
 0x10b   :  { %v64_v41 = vmul.f32 0.5, %v63_v38 }
 0x10c   :  { %v76_v42 = vmul.f32 %v111_v36, %v71_v39 }
 0x10d   :  { %v65_v43 = vsub.f32 1.5, %v64_v41 }
 0x10e   :  { %v81_v44 = vadd.f32 %v112_v40, %v76_v42 }
 0x10f   :  { %v66_v45 = vmul.f32 %v118_v33, %v65_v43 }
 0x110   :  { %83 = vst.msk [vmem:[#allocation2] sm:$0xff] %vm21_vm0, %v81_v44 }
 0x111   :  { %v70_v46 = vsel %vm69_vm7, %v118_v33, %v66_v45 }
 0x112   :  { %v72_v47 = vmul.f32 %v70_v46, %v38_v19 }
 0x114   :  { %v77_v48 = vmul.f32 %v111_v36, %v72_v47 }
 0x116   :  { %v82_v49 = vadd.f32 %v112_v40, %v77_v48 }
 0x118   :  { %84 = vst.msk [vmem:[#allocation2 + $0x8] sm:$0xff] %vm21_vm0, %v82_v49 }
 0x119   :  { %97 = dma.vmem_to_hbm [thread:$0]  %s90_s17, 256, %s92_s20, [#allocation3], %s147_s2, %s147_s2, %s148_s21  }
 0x11a   :  { %143 = dma.done.wait [#allocation3], 256  }
 0x11b   :  { %144 = vsyncadd [#allocation3], 4294967040 }
 0x11c   :  { %102 = vsyncpa [#allocation3], 1 }

// kernel: decoder_forward.18
= control target key start
LH: loop header
LB: loop body
LE: loop exit
PB: predicated region body
PF: predicated region fallthrough
CT: control target
= control target key end

     0   :  { %vm33_vm0 = vcmask 261120   ;;  %v248_v5 = vmov 32.0   ;;  %vm172_vm8 = vcmask 523264   ;;  %vm194_vm9 = vcmask 257024   ;;  %s343_s0 = inlined_call_operand.vmem [shape: bf16[16,32], index: 0, kind: input, shape index: {}]   ;;  %s344_s1 = inlined_call_operand.vmem [shape: f32[1,32], index: 1, kind: input, shape index: {}]   ;;  %s345_s2 = inlined_call_operand.vmem [shape: f32[1,32], index: 2, kind: input, shape index: {}]   ;;  %s346_s4 = inlined_call_operand.vmem [shape: f32[1,64], index: 4, kind: input, shape index: {}]   ;;  %s347_s3 = inlined_call_operand.vmem [shape: bf16[32,64], index: 3, kind: input, shape index: {}]   ;;  %s348_s6 = inlined_call_operand.vmem [shape: f32[1,32], index: 6, kind: input, shape index: {}]   ;;  %s349_s5 = inlined_call_operand.vmem [shape: bf16[64,32], index: 5, kind: input, shape index: {}]   ;;  %s350_s7 = inlined_call_operand.vmem [shape: bf16[16,32], index: 7, kind: output, shape index: {}]  }
   0x1   :  { %v234_v0 = vld [vmem:[%s343_s0] sm:$0xff]   ;;  %242 = vrcp.f32 %v248_v5  ;;  %v228_v22 = vld [vmem:[%s347_s3 + $0x8] sm:$0xff]  ;;  %v232_v53 = vld [vmem:[%s349_s5 + $0x18] sm:$0xff] }
   0x2   :  { %v292_v1 = vunpack.c.l.bf16 %v234_v0  ;;  %v296_v3 = vunpack.c.h.bf16 %v234_v0  ;;  %125 = vmatpush.bf16.msra.mxu0 %v228_v22  ;;  %v227_v24 = vld [vmem:[%s347_s3] sm:$0xff]  ;;  %180 = vmatpush.bf16.msra.mxu1 %v232_v53  ;;  %v231_v54 = vld [vmem:[%s349_s5 + $0x10] sm:$0xff]  ;;  %v230_v55 = vld [vmem:[%s349_s5 + $0x8] sm:$0xff] }
   0x3   :  { %v238_v43 = vld [vmem:[%s344_s1] ss:$0 sm:$0xff] }
   0x4   :  { %v34_v2 = vsel %vm33_vm0, %v292_v1, 0.0  ;;  %v37_v4 = vsel %vm33_vm0, %v296_v3, 0.0  ;;  %v239_v48 = vld [vmem:[%s345_s2] ss:$0 sm:$0xff] }
   0x5   :  { %35 = vadd.xlane.f32.xlu0 %v34_v2  ;;  %v229_v56 = vld [vmem:[%s349_s5] sm:$0xff] }
   0x6   :  { %126 = vmatpush.bf16.msra.mxu0 %v227_v24  ;;  %181 = vmatpush.bf16.msra.mxu1 %v231_v54  ;;  %v240_v58 = vld [vmem:[%s346_s4] ss:$0 sm:$0xff] }
   0x7   :  { %v243_v6 = vpop.eup %242  ;;  %v241_v2 = vld [vmem:[%s348_s6] ss:$0 sm:$0xff] }
   0x8   :  { %v41_v7 = vmul.f32 32.0, %v243_v6  ;;  %vm45_vm1 = vweird.f32 %v243_v6 }
   0xa   :  { %v42_v8 = vsub.f32 1.0, %v41_v7  ;;  %182 = vmatpush.bf16.msra.mxu1 %v230_v55 }
   0xc   :  { %v43_v9 = vmul.f32 %v243_v6, %v42_v8 }
   0xd   :  { %38 = vadd.xlane.f32.xlu0 %v37_v4 }
   0xe   :  { %v44_v10 = vadd.f32 %v243_v6, %v43_v9  ;;  %183 = vmatpush.bf16.msra.mxu1 %v229_v56 }
  0x10   :  { %v46_v11 = vsel %vm45_vm1, %v243_v6, %v44_v10 }
  0x78   :  { %v36_v12 = vpop.xlane.xlu0 %35 }
  0x79   :  { %v47_v13 = vmul.f32 %v46_v11, %v36_v12 }
  0x7b   :  { %v49_v14 = vsub.f32 %v292_v1, %v47_v13 }
  0x7d   :  { %v51_v15 = vmul.f32 %v49_v14, %v49_v14 }
  0x7f   :  { %v53_v16 = vsel %vm33_vm0, %v51_v15, 0.0 }
  0x80   :  { %54 = vadd.xlane.f32.xlu1 %v53_v16  ;;  %v39_v17 = vpop.xlane.xlu0 %38 }
  0x81   :  { %v48_v18 = vmul.f32 %v46_v11, %v39_v17 }
  0x83   :  { %v50_v19 = vsub.f32 %v296_v3, %v48_v18 }
  0x85   :  { %v52_v20 = vmul.f32 %v50_v19, %v50_v19 }
  0x87   :  { %v56_v21 = vsel %vm33_vm0, %v52_v20, 0.0 }
  0x88   :  { %57 = vadd.xlane.f32.xlu1 %v56_v21 }
  0xf3   :  { %v55_v23 = vpop.xlane.xlu1 %54 }
  0xf4   :  { %v59_v25 = vmul.f32 %v55_v23, %v46_v11 }
  0xf6   :  { %v61_v26 = vadd.f32 1e-05, %v59_v25 }
  0xf8   :  { %244 = vrsqrt.f32 %v61_v26  ;;  %vm69_vm3 = vweird.f32 %v61_v26 }
  0xfb   :  { %v58_v27 = vpop.xlane.xlu1 %57 }
  0xfc   :  { %v60_v28 = vmul.f32 %v58_v27, %v46_v11 }
  0xfe   :  { %v245_v29 = vpop.eup %244  ;;  %v62_v30 = vadd.f32 1e-05, %v60_v28 }
  0xff   :  { %v64_v31 = vmul.f32 %v245_v29, %v61_v26  ;;  %vm70_vm2 = vweird.f32 %v245_v29 }
 0x100   :  { %246 = vrsqrt.f32 %v62_v30  ;;  %vm71_vm4 = vmor %vm69_vm3, %vm70_vm2  ;;  %vm79_vm6 = vweird.f32 %v62_v30 }
 0x101   :  { %v65_v32 = vmul.f32 %v245_v29, %v64_v31 }
 0x103   :  { %v66_v33 = vmul.f32 0.5, %v65_v32 }
 0x105   :  { %v67_v34 = vsub.f32 1.5, %v66_v33 }
 0x106   :  { %v247_v35 = vpop.eup %246 }
 0x107   :  { %v68_v36 = vmul.f32 %v245_v29, %v67_v34  ;;  %v74_v37 = vmul.f32 %v247_v35, %v62_v30  ;;  %vm80_vm5 = vweird.f32 %v247_v35 }
 0x108   :  { %vm81_vm7 = vmor %vm79_vm6, %vm80_vm5 }
 0x109   :  { %v75_v38 = vmul.f32 %v247_v35, %v74_v37  ;;  %v72_v39 = vsel %vm71_vm4, %v245_v29, %v68_v36 }
 0x10a   :  { %v83_v42 = vmul.f32 %v72_v39, %v49_v14 }
 0x10b   :  { %v76_v40 = vmul.f32 0.5, %v75_v38 }
 0x10c   :  { %v88_v47 = vmul.f32 %v238_v43, %v83_v42 }
 0x10d   :  { %v77_v41 = vsub.f32 1.5, %v76_v40 }
 0x10e   :  { %v93_v50 = vadd.f32 %v239_v48, %v88_v47 }
 0x10f   :  { %v78_v44 = vmul.f32 %v247_v35, %v77_v41 }
 0x111   :  { %v82_v45 = vsel %vm81_vm7, %v247_v35, %v78_v44 }
 0x112   :  { %v84_v46 = vmul.f32 %v82_v45, %v50_v19 }
 0x114   :  { %v89_v49 = vmul.f32 %v238_v43, %v84_v46 }
 0x116   :  { %v94_v51 = vadd.f32 %v239_v48, %v89_v49 }
 0x118   :  { %v95_v52 = vpack.c.bf16 %v94_v51, %v93_v50 }
 0x11a   :  { %209 = vmatmul.msk.bf16.vlgmr.msra.gmra.mxu0 %vm33_vm0, %v95_v52 }
 0x197   :  { %v128_v57 = vpop.f32.mrf.mxu0 }
 0x198   :  { %v129_v59 = vadd.f32 %v240_v58, %v128_v57 }
 0x19a   :  { %v133_v62 = vmax.f32 %v129_v59, 0.0 }
 0x19f   :  { %v130_v60 = vpop.f32.mrf.mxu0 }
 0x1a0   :  { %v131_v61 = vadd.f32 %v240_v58, %v130_v60 }
 0x1a2   :  { %v134_v63 = vmax.f32 %v131_v61, 0.0 }
 0x1a4   :  { %v135_v0 = vpack.c.bf16 %v134_v63, %v133_v62 }
 0x1a6   :  { %226 = vmatmul.msk.bf16.vlgmr.msra.gmra.mxu1 %vm172_vm8, %v135_v0 }
 0x223   :  { %v185_v4 = vpop.f32.mrf.mxu1 }
 0x224   :  { %v186_v5 = vadd.f32 %v241_v2, %v185_v4 }
 0x226   :  { %v190_v6 = vadd.f32 %v292_v1, %v186_v5 }
 0x228   :  { %v192_v7 = vpack.c.bf16 %v190_v6, %v190_v6 }
 0x22a   :  { %195 = vst.msk [vmem:[%s350_s7] sm:$0xf] %vm194_vm9, %v192_v7 }
 0x22b   :  { %v187_v8 = vpop.f32.mrf.mxu1 }
 0x22c   :  { %v188_v9 = vadd.f32 %v241_v2, %v187_v8 }
 0x22e   :  { %v191_v10 = vadd.f32 %v296_v3, %v188_v9 }
 0x230   :  { %v193_v11 = vpack.c.bf16 %v191_v10, %v191_v10 }
 0x232   :  { %196 = vst.msk [vmem:[%s350_s7 + $0x4] sm:$0xf] %vm194_vm9, %v193_v11 }

// kernel: decoder_forward.17
= control target key start
LH: loop header
LB: loop body
LE: loop exit
PB: predicated region body
PF: predicated region fallthrough
CT: control target
= control target key end

     0   :  { %s1284_s24 = smov 0   ;;  %s1286_s25 = smov 0   ;;  %s1503_s0 = inlined_call_operand.vmem [shape: bf16[2,8,32], index: 0, kind: input, shape index: {}]   ;;  %s1504_s1 = inlined_call_operand.vmem [shape: bf16[2,8,32], index: 1, kind: input, shape index: {}]   ;;  %s1505_s2 = inlined_call_operand.vmem [shape: bf16[2,8,32], index: 2, kind: input, shape index: {}]   ;;  %s1506_s3 = inlined_call_operand.vmem [shape: bf16[2,8,32], index: 3, kind: input, shape index: {}]   ;;  %s1507_s4 = inlined_call_operand.vmem [shape: f32[2,1,8], index: 4, kind: input, shape index: {}]   ;;  %s1508_s5 = inlined_call_operand.vmem [shape: bf16[32,32], index: 5, kind: input, shape index: {}]   ;;  %s1509_s6 = inlined_call_operand.vmem [shape: f32[1,32], index: 6, kind: input, shape index: {}]   ;;  %s1510_s7 = inlined_call_operand.vmem [shape: bf16[2,8,32], index: 7, kind: output, shape index: {}]  }
   0x1   :  { %s1288_s26 = smov 0  }
   0x2 LB: > { %s36_s27 = sadd.s32 1, %s1232_s25  ;;  %p1136_p0 = scmp.ge.s32.totalorder %s1236_s26, 1  ;;  %s1236_s26 = sphi %s1288_s26, %s17_s26   ;;  %s1232_s25 = sphi %s1286_s25, %s1514_s25   ;;  %s1228_s24 = sphi %s1284_s24, %s1513_s24  }
   0x3   : > { %p38_p1 = scmp.ge.s32.totalorder %s36_s27, 2  ;;  %p317_p2 = scmp.lt.s32.totalorder %s1236_s26, 3 }
   0x5   : > { %s1516_s27 = smov (%p38_p1, %s36_s27), 0  ;;  %p318_p3 = pnand %p1136_p0, %p317_p2 }
   0x6   : > { %p380_p4 = scmp.lt.s32.totalorder (!%p318_p3), %s1228_s24, 1  ;;  %s1240_s15 = smov (!%p318_p3), 120  }
   0x7   : > { %321 = sbr.rel (%p318_p3) target bundleno = 1184 (0x4a0), region = 48  ;;  %s1242_s16 = smov (!%p318_p3), 104  }
   0x8   : > { %s1243_s17 = smov (!%p318_p3), 112  }
   0xc   : > { %s1518_s24 = smov (!%p380_p4, %s1228_s24), 1  ;;  %vm426_vm0 = vcmask 64512   ;;  %v1238_v3 = vmov 0   ;;  %vm431_vm1 = vcmask 7168   ;;  %v1239_v4 = vmov -1e+30  }
   0xd   : > { %s1302_s28 = sshll.u32 %s1518_s24, 2  ;;  %1186 = vset.pattern.permute.xlu1 %v1238_v3  ;;  %1187 = vset.pattern.permute.xlu2 %v1238_v3  ;;  %432 = vst.msk [vmem:[#allocation3] sm:$0xff] %vm431_vm1, %v1239_v4  ;;  %s413_s14 = scalar_lea.vmem %s1507_s4, %s1518_s24  ;;  %v1241_v17 = vmov 0.0   ;;  %vm505_vm4 = vcmask 1043456  }
   0xe   : > { %s1308_s8 = scalar_lea.vmem %s1505_s2, %s1302_s28  ;;  %s1316_s11 = scalar_lea.vmem %s1504_s1, %s1302_s28  ;;  %1188 = vset.pattern.permute.xlu0 %v1238_v3  ;;  %433 = vst.msk [vmem:[#allocation3 + $0x8] sm:$0xff] %vm431_vm1, %v1239_v4  ;;  %v440_v5 = vld [vmem:[%s413_s14] sm:$0x1] }
   0xf   : > { %v443_v0 = vld [vmem:[%s1308_s8] sm:$0xf]  ;;  %434 = vst.msk [vmem:[#allocation3 + $0x10] sm:$0xff] %vm431_vm1, %v1239_v4  ;;  %vm441_vm2 = vcmp.ne.f32.partialorder %v440_v5, 0.0  ;;  %s1370_s20 = scalar_lea.vmem %s1506_s3, %s1302_s28  ;;  %s386_s12 = scalar_lea.vmem %s1503_s0, %s1302_s28 }
  0x10   : > { %v450_v1 = vsel %vm426_vm0, %v443_v0, 0  ;;  %v442_v2 = vld [vmem:[%s1316_s11] sm:$0xf]  ;;  %435 = vst.msk [vmem:[#allocation3 + $0x18] sm:$0xff] %vm431_vm1, %v1239_v4  ;;  %v466_v6 = vsel %vm441_vm2, 1, %v1238_v3 }
  0x11   : > { %459 = vmatpush.bf16.xpose.msra.mxu0 %v450_v1  ;;  %v467_v7 = vperm.slane %v466_v6, 0  ;;  %v526_v14 = vld [vmem:[%s1308_s8] sm:$0xf]  ;;  %436 = vst.msk [vmem:[#allocation4] sm:$0xff] %vm431_vm1, %v1241_v17 }
  0x12   : > { %v534_v15 = vunpack.c.l.b16 %v526_v14  ;;  %427 = vst.msk [vmem:[#allocation2] sm:$0xff] %vm426_vm0, %v1241_v17  ;;  %v716_v18 = vld [vmem:[%s1308_s8] sm:$0xf] }
  0x13   : > { %vm1327_vm3 = vcmp.eq.s32.totalorder %v467_v7, 1  ;;  %428 = vst.msk [vmem:[#allocation2 + $0x8] sm:$0xff] %vm426_vm0, %v1241_v17  ;;  %v724_v19 = vunpack.c.l.b16 %v716_v18  ;;  %v621_v20 = vld [vmem:[%s1308_s8] sm:$0xf] }
  0x14   : > { %v535_v16 = vpack.c.b16 %v534_v15, %v534_v15  ;;  %429 = vst.msk [vmem:[#allocation2 + $0x10] sm:$0xff] %vm426_vm0, %v1241_v17  ;;  %v629_v22 = vunpack.c.l.b16 %v621_v20  ;;  %v620_v24 = vld [vmem:[%s1316_s11] sm:$0xf] }
  0x15   : > { %430 = vst.msk [vmem:[#allocation2 + $0x18] sm:$0xff] %vm426_vm0, %v1241_v17  ;;  %v725_v21 = vpack.c.b16 %v724_v19, %v724_v19  ;;  %v1348_v25 = vld [vmem:[#allocation3] sm:$0xff]  ;;  %v624_v28 = vunpack.c.l.b16 %v620_v24  ;;  %v1401_v9 = vld [vmem:[#allocation3 + $0x8] sm:$0xff] }
  0x16   : > { %437 = vst.msk [vmem:[#allocation4 + $0x8] sm:$0xff] %vm431_vm1, %v1241_v17  ;;  %v630_v23 = vpack.c.b16 %v629_v22, %v629_v22  ;;  %v525_v27 = vld [vmem:[%s1316_s11] sm:$0xf] }
  0x17   : > { %438 = vst.msk [vmem:[#allocation4 + $0x10] sm:$0xff] %vm431_vm1, %v1241_v17  ;;  %726 = vrot.lane.b32.xlu2 %v725_v21, %s1242_s16  ;;  %v529_v31 = vunpack.c.l.b16 %v525_v27  ;;  %v625_v32 = vpack.c.b16 %v624_v28, %v624_v28  ;;  %v715_v34 = vld [vmem:[%s1316_s11] sm:$0xf]  ;;  %v1403_v15 = vld [vmem:[#allocation3 + $0x18] sm:$0xff]  ;;  %v1421_v21 = vld [vmem:[#allocation3 + $0x10] sm:$0xff] }
  0x18   : > { %1142 = vmatmul.msk.bf16.vlgmr.msra.gmra.mxu0 %vm426_vm0, %v442_v2  ;;  %439 = vst.msk [vmem:[#allocation4 + $0x18] sm:$0xff] %vm431_vm1, %v1241_v17  ;;  %v719_v35 = vunpack.c.l.b16 %v715_v34  ;;  %v444_v41 = vld [vmem:[%s1370_s20] sm:$0xf] }
  0x19   : > { %v530_v33 = vpack.c.b16 %v529_v31, %v529_v31  ;;  %v507_v42 = vsel %vm505_vm4, %v444_v41, 0  ;;  %v527_v5 = vld [vmem:[%s1370_s20] sm:$0xf] }
  0x1a   : > { %v720_v36 = vpack.c.b16 %v719_v35, %v719_v35  ;;  %516 = vmatpush.bf16.msra.mxu1 %v507_v42  ;;  %v594_v6 = vunpack.c.l.b16 %v527_v5 }
  0x1e   : > { %v672_v5 = vld [vmem:[#allocation4 + $0x10] sm:$0xff] }
  0x1f   : > { %631 = vrot.lane.b32.xlu2 %v630_v23, %s1243_s17  ;;  %v622_v23 = vld [vmem:[%s1370_s20] sm:$0xf] }
  0x20   : > { %v689_v27 = vunpack.c.l.b16 %v622_v23 }
  0x22   : > { %v690_v28 = vpack.c.b16 %v689_v27, %v689_v27 }
  0x27   : > { %626 = vrot.lane.b32.xlu2 %v625_v32, %s1243_s17 }
  0x71   : > { %v727_v39 = vpop.permute.xlu2 %726 }
  0x72   : > { %v732_v40 = vsel %vm426_vm0, %v727_v39, 0 }
  0x73   : > { %741 = vmatpush.bf16.xpose.msrb.mxu0 %v732_v40 }
  0x79   : > { %v632_v43 = vpop.permute.xlu2 %631 }
  0x7a   : > { %v637_v44 = vsel %vm426_vm0, %v632_v43, 0 }
  0x7b   : > { %646 = vmatpush.bf16.xpose.msrb.mxu1 %v637_v44 }
  0x81   : > { %v627_v52 = vpop.permute.xlu2 %626 }
  0x95   : > { %v461_v8 = vpop.f32.mrf.mxu0 }
  0x96   : > { %v465_v10 = vmul.f32 0.35355338, %v461_v8  ;;  %v595_v8 = vpack.c.b16 %v594_v6, %v594_v6 }
  0x98   : > { %v469_v11 = vsel %vm1327_vm3, %v465_v10, -1e+30  ;;  %v717_v10 = vld [vmem:[%s1370_s20] sm:$0xf] }
  0x99   : > { %v471_v12 = vsel %vm426_vm0, %v469_v11, -inf }
  0x9a   : > { %472 = vmax.xlane.f32.xlu0 %v471_v12 }
  0x9d   : > { %v463_v13 = vpop.f32.mrf.mxu0 }
  0xae   : > { %536 = vrot.lane.b32.xlu0 %v535_v16, %s1240_s15 }
 0x10d   : > { %v473_v26 = vpop.xlane.xlu0 %472 }
 0x10e   : > { %v1353_v29 = vmax.f32 %v1348_v25, %v473_v26 }
 0x110   : > { %v475_v30 = vsub.f32 %v1348_v25, %v1353_v29  ;;  %524 = vst.msk [vmem:[#allocation3] sm:$0xff] %vm431_vm1, %v1353_v29  ;;  %480 = vperm.xlu1 %1186, %v1353_v29  }
 0x112   : > { %v476_v32 = vmul.f32 1.442695, %v475_v30 }
 0x118   : > { %531 = vrot.lane.b32.xlu1 %v530_v33, %s1240_s15 }
 0x120   : > { %721 = vrot.lane.b32.xlu1 %v720_v36, %s1242_s16  ;;  %v537_v37 = vpop.permute.xlu0 %536  ;;  %v486_v36 = vld [vmem:[#allocation4] sm:$0xff] }
 0x121   : > { %v542_v38 = vsel %vm426_vm0, %v537_v37, 0 }
 0x122   : > { %551 = vmatpush.bf16.xpose.msra.mxu2 %v542_v38 }
 0x182   : > { %v481_v45 = vpop.permute.xlu1 %480 }
 0x183   : > { %v483_v46 = vsub.f32 %v469_v11, %v481_v45  ;;  %v784_v11 = vunpack.c.l.b16 %v717_v10 }
 0x185   : > { %v484_v47 = vmul.f32 1.442695, %v483_v46  ;;  %v785_v12 = vpack.c.b16 %v784_v11, %v784_v11 }
 0x187   : > { %1190 = vpow2.f32 %v484_v47 }
 0x188   : > { %1192 = vpow2.f32 %v476_v32 }
 0x18a   : > { %v532_v48 = vpop.permute.xlu1 %531 }
 0x18b   : > { %1144 = vmatmul.msk.bf16.vlgmr.msra.gmra.mxu2 %vm426_vm0, %v532_v48 }
 0x18d   : > { %v1191_v49 = vpop.eup %1190 }
 0x18e   : > { %v501_v50 = vpack.c.bf16 %v1191_v49, %v1191_v49  ;;  %v488_v13 = vsel %vm426_vm0, %v1191_v49, 0.0  ;;  %v1193_v35 = vpop.eup %1192 }
 0x18f   : > { %v487_v37 = vmul.f32 %v1193_v35, %v486_v36 }
 0x190   : > { %1143 = vmatmul.msk.bf16.vlgmr.msra.gmra.mxu1 %vm426_vm0, %v501_v50 }
 0x192   : > { %v722_v51 = vpop.permute.xlu1 %721 }
 0x193   : > { %1148 = vmatmul.msk.bf16.vlgmr.msrb.gmra.mxu0 %vm426_vm0, %v722_v51 }
 0x1a0   : > { %1146 = vmatmul.msk.bf16.vlgmr.msrb.gmra.mxu1 %vm426_vm0, %v627_v52 }
 0x20d   : > { %v1379_v53 = vpop.f32.mrf.mxu1 }
 0x20e   : > { %v553_v54 = vpop.f32.mrf.mxu2 }
 0x20f   : > { %v557_v55 = vmul.f32 0.35355338, %v553_v54 }
 0x210   : > { %v743_v56 = vpop.f32.mrf.mxu0 }
 0x211   : > { %v747_v57 = vmul.f32 0.35355338, %v743_v56  ;;  %v1383_v58 = vsel %vm1327_vm3, %v557_v55, -1e+30 }
 0x212   : > { %v561_v59 = vsel %vm426_vm0, %v1383_v58, -inf }
 0x213   : > { %562 = vmax.xlane.f32.xlu1 %v561_v59  ;;  %v1389_v60 = vsel %vm1327_vm3, %v747_v57, -1e+30 }
 0x214   : > { %v751_v61 = vsel %vm426_vm0, %v1389_v60, -inf }
 0x215   : > { %v520_v62 = vpop.f32.mrf.mxu1  ;;  %752 = vmax.xlane.f32.xlu2 %v751_v61 }
 0x216   : > { %v555_v63 = vpop.f32.mrf.mxu2  ;;  %v577_v62 = vld [vmem:[#allocation4 + $0x8] sm:$0xff] }
 0x218   : > { %v745_v0 = vpop.f32.mrf.mxu0 }
 0x21d   : > { %v648_v1 = vpop.f32.mrf.mxu1 }
 0x21e   : > { %v652_v2 = vmul.f32 0.35355338, %v648_v1 }
 0x220   : > { %v653_v3 = vsel %vm1327_vm3, %v652_v2, -1e+30 }
 0x221   : > { %v656_v4 = vsel %vm426_vm0, %v653_v3, -inf }
 0x222   : > { %657 = vmax.xlane.f32.xlu0 %v656_v4 }
 0x225   : > { %v650_v7 = vpop.f32.mrf.mxu1 }
 0x22c   : > { %596 = vrot.lane.b32.xlu1 %v595_v8, %s1240_s15 }
 0x234   : > { %786 = vrot.lane.b32.xlu1 %v785_v12, %s1242_s16  ;;  %v494_v12 = vld [vmem:[#allocation2] sm:$0xff] }
 0x25e   : > { %489 = vadd.xlane.f32.xlu1 %v488_v13 }
 0x286   : > { %v563_v14 = vpop.xlane.xlu1 %562 }
 0x287   : > { %v1406_v16 = vmax.f32 %v1401_v9, %v563_v14 }
 0x288   : > { %v753_v17 = vpop.xlane.xlu2 %752 }
 0x289   : > { %v565_v18 = vsub.f32 %v1401_v9, %v1406_v16  ;;  %619 = vst.msk [vmem:[#allocation3 + $0x8] sm:$0xff] %vm431_vm1, %v1406_v16  ;;  %v1413_v19 = vmax.f32 %v1403_v15, %v753_v17  ;;  %570 = vperm.xlu2 %1187, %v1406_v16   ;;  %v836_v9 = vld [vmem:[%s1508_s5] sm:$0xf] }
 0x28a   : > { %v884_v16 = vsel %vm505_vm4, %v836_v9, 0 }
 0x28b   : > { %v755_v20 = vsub.f32 %v1403_v15, %v1413_v19  ;;  %809 = vst.msk [vmem:[#allocation3 + $0x18] sm:$0xff] %vm431_vm1, %v1413_v19  ;;  %760 = vperm.xlu0 %1188, %v1413_v19  }
 0x28d   : > { %v756_v6 = vmul.f32 1.442695, %v755_v20 }
 0x295   : > { %v658_v22 = vpop.xlane.xlu0 %657 }
 0x296   : > { %v659_v24 = vmax.f32 %v1421_v21, %v658_v22 }
 0x298   : > { %v660_v26 = vsub.f32 %v1421_v21, %v659_v24  ;;  %714 = vst.msk [vmem:[#allocation3 + $0x10] sm:$0xff] %vm431_vm1, %v659_v24  ;;  %665 = vperm.xlu2 %1187, %v659_v24  }
 0x29a   : > { %v661_v1 = vmul.f32 1.442695, %v660_v26 }
 0x29e   : > { %v597_v31 = vpop.permute.xlu1 %596 }
 0x29f   : > { %v602_v34 = vsel %vm505_vm4, %v597_v31, 0 }
 0x2a0   : > { %691 = vrot.lane.b32.xlu2 %v690_v28, %s1243_s17  ;;  %611 = vmatpush.bf16.msra.mxu3 %v602_v34  ;;  %s420_s17 = scalar_lea.vmem %s1510_s7, %s1302_s28 }
 0x2a6   : > { %v787_v33 = vpop.permute.xlu1 %786 }
 0x2a7   : > { %v792_v42 = vsel %vm505_vm4, %v787_v33, 0 }
 0x2a8   : > { %801 = vmatpush.bf16.msrb.mxu2 %v792_v42 }
 0x2d1   : > { %v490_v38 = vpop.xlane.xlu1 %489 }
 0x2d2   : > { %v491_v39 = vadd.f32 %v490_v38, %v487_v37 }
 0x2d4   : > { %493 = vst.msk [vmem:[#allocation4] sm:$0xff] %vm431_vm1, %v491_v39 }
 0x2db   : > { %v814_v59 = vld [vmem:[#allocation4] sm:$0xff] }
 0x2e3   : > { %v571_v40 = vpop.permute.xlu2 %570 }
 0x2e4   : > { %v573_v41 = vsub.f32 %v1383_v58, %v571_v40 }
 0x2e6   : > { %v574_v25 = vmul.f32 1.442695, %v573_v41 }
 0x2e8   : > { %1194 = vpow2.f32 %v574_v25 }
 0x2ee   : > { %v1195_v29 = vpop.eup %1194 }
 0x2ef   : > { %v579_v30 = vsel %vm426_vm0, %v1195_v29, 0.0  ;;  %v592_v43 = vpack.c.bf16 %v1195_v29, %v1195_v29 }
 0x2f0   : > { %580 = vadd.xlane.f32.xlu0 %v579_v30  ;;  %v860_v30 = vld [vmem:[%s1508_s5 + $0x4] sm:$0xf] }
 0x2f1   : > { %1145 = vmatmul.msk.bf16.vlgmr.msra.gmra.mxu3 %vm426_vm0, %v592_v43  ;;  %v865_v43 = vsel %vm505_vm4, %v860_v30, 0 }
 0x2f2   : > { %v666_v44 = vpop.permute.xlu2 %665  ;;  %874 = vmatpush.bf16.msra.mxu1 %v865_v43 }
 0x2f3   : > { %v668_v45 = vsub.f32 %v653_v3, %v666_v44 }
 0x2f5   : > { %v669_v46 = vmul.f32 1.442695, %v668_v45  ;;  %v585_v45 = vld [vmem:[#allocation2 + $0x8] sm:$0xff] }
 0x2f7   : > { %1196 = vpow2.f32 %v669_v46 }
 0x2fa   : > { %v692_v47 = vpop.permute.xlu2 %691 }
 0x2fb   : > { %v697_v48 = vsel %vm505_vm4, %v692_v47, 0 }
 0x2fc   : > { %706 = vmatpush.bf16.msrb.mxu3 %v697_v48 }
 0x2fd   : > { %v1197_v49 = vpop.eup %1196  ;;  %v761_v50 = vpop.permute.xlu0 %760 }
 0x2fe   : > { %v763_v51 = vsub.f32 %v1389_v60, %v761_v50  ;;  %v674_v52 = vsel %vm426_vm0, %v1197_v49, 0.0  ;;  %v687_v54 = vpack.c.bf16 %v1197_v49, %v1197_v49  ;;  %v566_v60 = vmul.f32 1.442695, %v565_v18  ;;  %v767_v18 = vld [vmem:[#allocation4 + $0x18] sm:$0xff] }
 0x2ff   : > { %675 = vadd.xlane.f32.xlu1 %v674_v52 }
 0x300   : > { %v764_v55 = vmul.f32 1.442695, %v763_v51  ;;  %893 = vmatpush.bf16.msra.mxu3 %v884_v16 }
 0x301   : > { %1147 = vmatmul.msk.bf16.vlgmr.msrb.gmra.mxu3 %vm426_vm0, %v687_v54 }
 0x302   : > { %1198 = vpow2.f32 %v764_v55 }
 0x303   : > { %1200 = vpow2.f32 %v566_v60 }
 0x304   : > { %497 = vperm.xlu0 %1188, %v1193_v35   ;;  %1202 = vpow2.f32 %v661_v1  ;;  %v966_v1 = vld [vmem:[%s1508_s5 + $0xc] sm:$0xf] }
 0x305   : > { %1204 = vpow2.f32 %v756_v6 }
 0x308   : > { %v1199_v56 = vpop.eup %1198 }
 0x309   : > { %v769_v57 = vsel %vm426_vm0, %v1199_v56, 0.0  ;;  %v782_v58 = vpack.c.bf16 %v1199_v56, %v1199_v56  ;;  %v1201_v61 = vpop.eup %1200 }
 0x30a   : > { %770 = vadd.xlane.f32.xlu2 %v769_v57  ;;  %v578_v63 = vmul.f32 %v1201_v61, %v577_v62  ;;  %v1203_v4 = vpop.eup %1202 }
 0x30b   : > { %1149 = vmatmul.msk.bf16.vlgmr.msrb.gmra.mxu2 %vm426_vm0, %v782_v58  ;;  %v673_v7 = vmul.f32 %v1203_v4, %v672_v5  ;;  %v1205_v15 = vpop.eup %1204 }
 0x30c   : > { %v768_v21 = vmul.f32 %v1205_v15, %v767_v18 }
 0x322   : > { %817 = vperm.xlu2 %1187, %v814_v59  }
 0x363   : > { %v581_v0 = vpop.xlane.xlu0 %580 }
 0x364   : > { %v582_v2 = vadd.f32 %v581_v0, %v578_v63  ;;  %v922_v63 = vld [vmem:[%s1508_s5 + $0x8] sm:$0xf] }
 0x365   : > { %v927_v0 = vsel %vm505_vm4, %v922_v63, 0 }
 0x366   : > { %583 = vst.msk [vmem:[#allocation4 + $0x8] sm:$0xff] %vm431_vm1, %v582_v2  ;;  %936 = vmatpush.bf16.msra.mxu0 %v927_v0  ;;  %v971_v2 = vsel %vm505_vm4, %v966_v1, 0 }
 0x367   : > { %980 = vmatpush.bf16.msra.mxu2 %v971_v2 }
 0x36d   : > { %v838_v3 = vld [vmem:[#allocation4 + $0x8] sm:$0xff] }
 0x36e   : > { %841 = vperm.xlu2 %1187, %v838_v3  }
 0x372   : > { %v676_v8 = vpop.xlane.xlu1 %675 }
 0x373   : > { %v677_v10 = vadd.f32 %v676_v8, %v673_v7 }
 0x374   : > { %v613_v11 = vpop.f32.mrf.mxu3 }
 0x375   : > { %678 = vst.msk [vmem:[#allocation4 + $0x10] sm:$0xff] %vm431_vm1, %v677_v10 }
 0x376   : > { %588 = vperm.xlu2 %1187, %v1201_v61   ;;  %v498_v13 = vpop.permute.xlu0 %497 }
 0x377   : > { %v500_v14 = vmul.f32 %v498_v13, %v494_v12 }
 0x379   : > { %v522_v17 = vadd.f32 %v1379_v53, %v500_v14 }
 0x37b   : > { %523 = vst.msk [vmem:[#allocation2] sm:$0xff] %vm426_vm0, %v522_v17  ;;  %v775_v17 = vld [vmem:[#allocation2 + $0x18] sm:$0xff] }
 0x37c   : > { %v615_v19 = vpop.f32.mrf.mxu3  ;;  %v900_v20 = vld [vmem:[#allocation4 + $0x10] sm:$0xff] }
 0x37d   : > { %903 = vperm.xlu0 %1188, %v900_v20   ;;  %v771_v22 = vpop.xlane.xlu2 %770 }
 0x37e   : > { %v772_v23 = vadd.f32 %v771_v22, %v768_v21 }
 0x380   : > { %773 = vst.msk [vmem:[#allocation4 + $0x18] sm:$0xff] %vm431_vm1, %v772_v23 }
 0x382   : > { %v813_v40 = vld [vmem:[#allocation2] sm:$0xff] }
 0x384   : > { %v1458_v24 = vpop.f32.mrf.mxu3 }
 0x385   : > { %683 = vperm.xlu0 %1188, %v1203_v4   ;;  %v818_v26 = vpop.permute.xlu2 %817  ;;  %v680_v4 = vld [vmem:[#allocation2 + $0x10] sm:$0xff] }
 0x386   : > { %1206 = vrcp.f32 %v818_v26  ;;  %v831_v34 = vand.u32 2147483648, %v818_v26  ;;  %v829_v36 = vand.u32 2147483647, %v818_v26  ;;  %vm825_vm6 = vweird.f32 %v818_v26 }
 0x387   : > { %v944_v27 = vld [vmem:[#allocation4 + $0x18] sm:$0xff] }
 0x388   : > { %947 = vperm.xlu1 %1186, %v944_v27   ;;  %v832_v38 = vor.u32 1.1754944e-38, %v831_v34  ;;  %vm830_vm8 = vcmp.eq.f32.partialorder %v829_v36, 8.507059e+37 }
 0x38c   : > { %v1207_v28 = vpop.eup %1206  ;;  %v710_v53 = vpop.f32.mrf.mxu3 }
 0x38d   : > { %v821_v31 = vmul.f32 %v1207_v28, %v818_v26  ;;  %vm826_vm5 = vweird.f32 %v1207_v28 }
 0x38e   : > { %v1460_v32 = vpop.f32.mrf.mxu2  ;;  %vm827_vm7 = vmor %vm825_vm6, %vm826_vm5 }
 0x38f   : > { %v822_v33 = vsub.f32 1.0, %v821_v31 }
 0x390   : > { %778 = vperm.xlu1 %1186, %v1205_v15  }
 0x391   : > { %v823_v35 = vmul.f32 %v1207_v28, %v822_v33 }
 0x393   : > { %v824_v37 = vadd.f32 %v1207_v28, %v823_v35 }
 0x395   : > { %v828_v39 = vsel %vm827_vm7, %v1207_v28, %v824_v37 }
 0x396   : > { %v833_v41 = vsel %vm830_vm8, %v832_v38, %v828_v39  ;;  %v805_v42 = vpop.f32.mrf.mxu2 }
 0x397   : > { %v834_v25 = vmul.f32 %v833_v41, %v813_v40 }
 0x399   : > { %v835_v29 = vpack.c.bf16 %v834_v25, %v834_v25 }
 0x39b   : > { %1151 = vmatmul.msk.bf16.vlgmr.msra.gmra.mxu3 %vm426_vm0, %v835_v29 }
 0x3c8   : > { %v842_v44 = vpop.permute.xlu2 %841 }
 0x3c9   : > { %1208 = vrcp.f32 %v842_v44  ;;  %v855_v55 = vand.u32 2147483648, %v842_v44  ;;  %vm849_vm10 = vweird.f32 %v842_v44  ;;  %v853_v56 = vand.u32 2147483647, %v842_v44 }
 0x3cb   : > { %v856_v58 = vor.u32 1.1754944e-38, %v855_v55  ;;  %vm854_vm12 = vcmp.eq.f32.partialorder %v853_v56, 8.507059e+37 }
 0x3cf   : > { %v1209_v46 = vpop.eup %1208 }
 0x3d0   : > { %v845_v47 = vmul.f32 %v1209_v46, %v842_v44  ;;  %v589_v48 = vpop.permute.xlu2 %588  ;;  %vm850_vm9 = vweird.f32 %v1209_v46 }
 0x3d1   : > { %v591_v49 = vmul.f32 %v589_v48, %v585_v45  ;;  %vm851_vm11 = vmor %vm849_vm10, %vm850_vm9  ;;  %v992_v45 = vld [vmem:[%s386_s12] sm:$0xf] }
 0x3d2   : > { %v846_v50 = vsub.f32 1.0, %v845_v47  ;;  %v1189_v47 = vld [vmem:[%s1509_s6] ss:$0 sm:$0xff] }
 0x3d3   : > { %v617_v51 = vadd.f32 %v613_v11, %v591_v49 }
 0x3d4   : > { %v847_v52 = vmul.f32 %v1209_v46, %v846_v50  ;;  %v993_v50 = vunpack.c.l.bf16 %v992_v45 }
 0x3d5   : > { %618 = vst.msk [vmem:[#allocation2 + $0x8] sm:$0xff] %vm426_vm0, %v617_v51 }
 0x3d6   : > { %v848_v54 = vadd.f32 %v1209_v46, %v847_v52 }
 0x3d8   : > { %v852_v57 = vsel %vm851_vm11, %v1209_v46, %v848_v54 }
 0x3d9   : > { %v857_v59 = vsel %vm854_vm12, %v856_v58, %v852_v57 }
 0x3dc   : > { %v837_v60 = vld [vmem:[#allocation2 + $0x8] sm:$0xff] }
 0x3dd   : > { %v858_v61 = vmul.f32 %v857_v59, %v837_v60 }
 0x3df   : > { %v859_v62 = vpack.c.bf16 %v858_v61, %v858_v61 }
 0x3e1   : > { %1150 = vmatmul.msk.bf16.vlgmr.msra.gmra.mxu1 %vm426_vm0, %v859_v62 }
 0x3ef   : > { %v904_v3 = vpop.permute.xlu0 %903 }
 0x3f0   : > { %1210 = vrcp.f32 %v904_v3  ;;  %v917_v14 = vand.u32 2147483648, %v904_v3  ;;  %vm911_vm14 = vweird.f32 %v904_v3  ;;  %v915_v16 = vand.u32 2147483647, %v904_v3 }
 0x3f2   : > { %v918_v19 = vor.u32 1.1754944e-38, %v917_v14  ;;  %vm916_vm1 = vcmp.eq.f32.partialorder %v915_v16, 8.507059e+37 }
 0x3f6   : > { %v1211_v5 = vpop.eup %1210 }
 0x3f7   : > { %v907_v6 = vmul.f32 %v1211_v5, %v904_v3  ;;  %v684_v7 = vpop.permute.xlu0 %683  ;;  %vm912_vm13 = vweird.f32 %v1211_v5 }
 0x3f8   : > { %v686_v8 = vmul.f32 %v684_v7, %v680_v4  ;;  %vm913_vm15 = vmor %vm911_vm14, %vm912_vm13 }
 0x3f9   : > { %v908_v10 = vsub.f32 1.0, %v907_v6 }
 0x3fa   : > { %v712_v11 = vadd.f32 %v1458_v24, %v686_v8  ;;  %v948_v12 = vpop.permute.xlu1 %947 }
 0x3fb   : > { %v909_v13 = vmul.f32 %v1211_v5, %v908_v10  ;;  %1212 = vrcp.f32 %v948_v12  ;;  %v961_v34 = vand.u32 2147483648, %v948_v12  ;;  %vm955_vm3 = vweird.f32 %v948_v12 }
 0x3fc   : > { %713 = vst.msk [vmem:[#allocation2 + $0x10] sm:$0xff] %vm426_vm0, %v712_v11  ;;  %v959_v35 = vand.u32 2147483647, %v948_v12 }
 0x3fd   : > { %v910_v9 = vadd.f32 %v1211_v5, %v909_v13  ;;  %v962_v37 = vor.u32 1.1754944e-38, %v961_v34 }
 0x3fe   : > { %vm960_vm5 = vcmp.eq.f32.partialorder %v959_v35, 8.507059e+37 }
 0x3ff   : > { %v914_v15 = vsel %vm913_vm15, %v1211_v5, %v910_v9 }
 0x400   : > { %v919_v22 = vsel %vm916_vm1, %v918_v19, %v914_v15 }
 0x401   : > { %v1213_v18 = vpop.eup %1212 }
 0x402   : > { %v951_v20 = vmul.f32 %v1213_v18, %v948_v12  ;;  %v779_v21 = vpop.permute.xlu1 %778  ;;  %vm956_vm2 = vweird.f32 %v1213_v18 }
 0x403   : > { %v781_v23 = vmul.f32 %v779_v21, %v775_v17  ;;  %v899_v24 = vld [vmem:[#allocation2 + $0x10] sm:$0xff]  ;;  %vm957_vm4 = vmor %vm955_vm3, %vm956_vm2 }
 0x404   : > { %v952_v26 = vsub.f32 1.0, %v951_v20  ;;  %v920_v27 = vmul.f32 %v919_v22, %v899_v24 }
 0x405   : > { %v807_v28 = vadd.f32 %v1460_v32, %v781_v23 }
 0x406   : > { %v953_v53 = vmul.f32 %v1213_v18, %v952_v26  ;;  %v921_v31 = vpack.c.bf16 %v920_v27, %v920_v27 }
 0x407   : > { %808 = vst.msk [vmem:[#allocation2 + $0x18] sm:$0xff] %vm426_vm0, %v807_v28 }
 0x408   : > { %v954_v33 = vadd.f32 %v1213_v18, %v953_v53  ;;  %1152 = vmatmul.msk.bf16.vlgmr.msra.gmra.mxu0 %vm426_vm0, %v921_v31 }
 0x40a   : > { %v958_v36 = vsel %vm957_vm4, %v1213_v18, %v954_v33 }
 0x40b   : > { %v963_v38 = vsel %vm960_vm5, %v962_v37, %v958_v36 }
 0x40e   : > { %v943_v39 = vld [vmem:[#allocation2 + $0x18] sm:$0xff] }
 0x40f   : > { %v964_v40 = vmul.f32 %v963_v38, %v943_v39 }
 0x411   : > { %v965_v32 = vpack.c.bf16 %v964_v40, %v964_v40 }
 0x413   : > { %1153 = vmatmul.msk.bf16.vlgmr.msra.gmra.mxu2 %vm426_vm0, %v965_v32  ;;  %vm996_vm0 = vcmask 257024  }
 0x41e   : > { %v895_v41 = vpop.f32.mrf.mxu3 }
 0x426   : > { %v897_v42 = vpop.f32.mrf.mxu3 }
 0x45e   : > { %v876_v25 = vpop.f32.mrf.mxu1 }
 0x45f   : > { %v896_v44 = vadd.f32 %v895_v41, %v876_v25 }
 0x466   : > { %v878_v29 = vpop.f32.mrf.mxu1 }
 0x485   : > { %v938_v30 = vpop.f32.mrf.mxu0 }
 0x486   : > { %v942_v46 = vadd.f32 %v938_v30, %v896_v44 }
 0x48d   : > { %v940_v43 = vpop.f32.mrf.mxu0 }
 0x496   : > { %v982_v48 = vpop.f32.mrf.mxu2 }
 0x497   : > { %v986_v49 = vadd.f32 %v982_v48, %v942_v46 }
 0x499   : > { %v991_v51 = vadd.f32 %v1189_v47, %v986_v49 }
 0x49b   : > { %v994_v52 = vadd.f32 %v993_v50, %v991_v51 }
 0x49d   : > { %v995_v54 = vpack.c.bf16 %v994_v52, %v994_v52 }
 0x49e   : > { %v984_v55 = vpop.f32.mrf.mxu2 }
 0x49f   : > { %997 = vst.msk [vmem:[%s420_s17] sm:$0xf] %vm996_vm0, %v995_v54 }
 0x4a0 PF: > { %s17_s26 = sadd.s32 1, %s1236_s26   ;;  %s1513_s24 = smov %s1232_s25 }
 0x4a1   : > { %p14_p5 = scmp.ge.s32.totalorder %s17_s26, 4   ;;  %s1514_s25 = smov %s1516_s27 }
 0x4a3   :  { %16 = sbr.rel (!%p14_p5) target bundleno = 2 (0x2), region = 107 }

</bundles_post_ra>
